<compile_context>
chip_gen: v7x
topology: tpu7x:2x2x1
jax: 0.10.0
libtpu: 0.0.40
codegen_flags: <defaults>
</compile_context>

<pallas_src>
import functools

import jax
import jax.numpy as jnp
import numpy as np
from jax import lax
from jax.experimental import pallas as pl
from jax.experimental.pallas import tpu as pltpu

LN_EPS = 1e-5
LEAKY_SLOPE = 0.01
VOCAB_BLOCK = 2048      # lanes of fc2 / logits per head grid step
ROW_BLOCK = 256         # rows per head grid step (fills the 256-wide MXU on v6e/v7x)


def _layernorm(v, gamma, beta):
    mu = jnp.mean(v, axis=-1, keepdims=True)
    var = jnp.mean((v - mu) * (v - mu), axis=-1, keepdims=True)
    return (v - mu) * lax.rsqrt(var + LN_EPS) * gamma + beta


def _round_up(x, m):
    return ((x + m - 1) // m) * m


def _pick_time_block(T):
    for cand in (32, 16, 8, 4, 2):
        if T % cand == 0:
            return cand
    return 1


def _vmem_limit(block_bytes):
    """Scoped-VMEM request: 2x the static block budget, clamped to [32 MiB, 96 MiB]."""
    return int(min(96 * 1024 * 1024, max(32 * 1024 * 1024, 2 * int(block_bytes))))


# --------------------------- recurrent (serial) kernel ---------------------------
def gru_recurrent_kernel(gi_ref, w_h_ref, b_hn_ref, ln_g_ref, ln_b_ref,
                         h_out_ref, h_scratch, *, tt, hidden):
    # gi_ref:    (TT, 3, Bb, H) bf16  precomputed input gates (paired biases folded)
    # w_h_ref:   (H, 3H)        bf16  fused hidden->hidden weights [r|z|n]
    # b_hn_ref:  (1, H)         f32   hidden n-gate bias (must stay inside r*(gh_n+b_hn))
    # ln_*_ref:  (1, H)         f32
    # h_out_ref: (TT, Bb, H)    bf16  per-step post-LayerNorm hidden state
    # h_scratch: (Bb, H)        f32   persists across time grid steps
    H = hidden
    tb = pl.program_id(1)

    @pl.when(tb == 0)
    def _():
        h_scratch[...] = jnp.zeros_like(h_scratch)

    w_h = w_h_ref[...]
    b_hn = b_hn_ref[...]
    ln_g = ln_g_ref[...]
    ln_b = ln_b_ref[...]

    def step(i, h):
        gi = gi_ref[i].astype(jnp.float32)                         # (3, Bb, H)
        gh = jnp.dot(h.astype(jnp.bfloat16), w_h,
                     preferred_element_type=jnp.float32)           # (Bb, 3H): one MXU push
        r = jax.nn.sigmoid(gi[0] + gh[:, 0:H])
        z = jax.nn.sigmoid(gi[1] + gh[:, H:2 * H])
        n = jnp.tanh(gi[2] + r * (gh[:, 2 * H:3 * H] + b_hn))
        h_new = n + z * (h - n)                                    # == (1-z)*n + z*h
        h_norm = _layernorm(h_new, ln_g, ln_b)
        h_out_ref[i] = h_norm.astype(h_out_ref.dtype)
        return h_norm

    h_final = lax.fori_loop(0, tt, step, h_scratch[...], unroll=True)
    h_scratch[...] = h_final


# --------------------------- MLP head (parallel) kernel ---------------------------
def mlp_head_kernel(h_ref, fc1_w_ref, fc1_b_ref, ln2_g_ref, ln2_b_ref,
                    fc2_w_ref, fc2_b_ref, out_ref, y_scratch):
    # h_ref:     (RB, H)  bf16  post-LN hidden rows (constant along the vocab axis)
    # fc1_w_ref: (H, H)   bf16
    # fc2_w_ref: (H, VB)  bf16  one vocab tile
    # out_ref:   (RB, VB) f32   lane-dense logits tile
    # y_scratch: (RB, H)  f32   fc1 -> LeakyReLU -> LN, reused across vocab tiles
    vi = pl.program_id(1)

    @pl.when(vi == 0)
    def _():
        y = jnp.dot(h_ref[...], fc1_w_ref[...],
                    preferred_element_type=jnp.float32) + fc1_b_ref[...]
        y = jnp.where(y >= 0.0, y, LEAKY_SLOPE * y)
        y_scratch[...] = _layernorm(y, ln2_g_ref[...], ln2_b_ref[...])

    logits = jnp.dot(y_scratch[...].astype(fc2_w_ref.dtype), fc2_w_ref[...],
                     preferred_element_type=jnp.float32) + fc2_b_ref[...]
    out_ref[...] = logits.astype(out_ref.dtype)


# --------------------------- parameter prep (one-time, outside the hot path) ---------------------------
def prepare_params(params):
    """Fuse GRU gate weights, fold paired r/z biases, pad the vocab axis to the tile
    size and pre-cast matmul weights to bf16 (done once, not per forward call)."""
    V = params["fc2_w"].shape[1]
    vblk = min(VOCAB_BLOCK, _round_up(V, 128))
    Vp = _round_up(V, vblk)
    p = dict(params)
    p["w_i"] = jnp.concatenate([params["w_ir"], params["w_iz"], params["w_in"]], axis=1)
    p["b_i"] = jnp.concatenate([params["b_ir"] + params["b_hr"],
                                params["b_iz"] + params["b_hz"],
                                params["b_in"]], axis=1)
    p["w_h_bf16"] = jnp.concatenate(
        [params["w_hr"], params["w_hz"], params["w_hn"]], axis=1).astype(jnp.bfloat16)
    p["fc1_w_bf16"] = params["fc1_w"].astype(jnp.bfloat16)
    p["fc2_w_bf16"] = jnp.pad(params["fc2_w"], ((0, 0), (0, Vp - V))).astype(jnp.bfloat16)
    p["fc2_b_pad"] = jnp.pad(params["fc2_b"], ((0, 0), (0, Vp - V)))
    return p


# --------------------------- forward ---------------------------
@functools.partial(jax.jit, static_argnames=("batch_split",))
def autoregerting_forward(tokens, params, *, batch_split=1):
    """tokens: (B, T) int32 -> logits (B, T, V) float32.

    batch_split: set to 2 on v7x to shard the recurrence across both TensorCores via
    the leading "parallel" grid axis; leave at 1 on single-TC chips (v5e / v6e).
    """
    B, T = tokens.shape
    E = params["embd"].shape[1]
    H = params["w_hr"].shape[0]
    V = params["fc2_w"].shape[1]
    Vp = params["fc2_w_bf16"].shape[1]

    # ---- glue: embedding gather + hoisted input-side gate matmul (one big matmul) ----
    x = jnp.take(params["embd"], tokens, axis=0).astype(jnp.float32)       # (B, T, E)
    x_tm = jnp.transpose(x, (1, 0, 2)).reshape(T * B, E)                   # (T*B, E)
    gi = x_tm @ params["w_i"] + params["b_i"]                              # (T*B, 3H) f32
    gi = gi.reshape(T, B, 3, H).transpose(0, 2, 1, 3).astype(jnp.bfloat16)  # (T, 3, B, H)

    # ---- serial recurrence ----
    nb = batch_split if (batch_split > 1 and B % batch_split == 0
                         and (B // batch_split) % 8 == 0) else 1
    Bb = B // nb
    tt = _pick_time_block(T)
    grid_t = T // tt

    rec_block_bytes = (2 * tt * 3 * Bb * H * 2        # gi tile   (bf16, double-buffered)
                       + H * 3 * H * 2                # w_h       (bf16, single-buffered)
                       + 3 * H * 4                    # b_hn, ln_g, ln_b
                       + 2 * tt * Bb * H * 2          # h_out tile (bf16, double-buffered)
                       + Bb * H * 4)                  # h_scratch
    const_rec = lambda shape: pl.BlockSpec(shape, lambda b, t: (0, 0),
                                           pipeline_mode=pl.Buffered(1))

    rec_kernel = functools.partial(gru_recurrent_kernel, tt=tt, hidden=H)
    h_seq = pl.pallas_call(
        rec_kernel,
        out_shape=jax.ShapeDtypeStruct((T, B, H), jnp.bfloat16),
        grid_spec=pltpu.PrefetchScalarGridSpec(
            num_scalar_prefetch=0,
            grid=(nb, grid_t),
            in_specs=[
                pl.BlockSpec((tt, 3, Bb, H), lambda b, t: (t, 0, b, 0)),
                const_rec((H, 3 * H)),
                const_rec((1, H)),
                const_rec((1, H)),
                const_rec((1, H)),
            ],
            out_specs=pl.BlockSpec((tt, Bb, H), lambda b, t: (t, b, 0)),
            scratch_shapes=[pltpu.VMEM((Bb, H), jnp.float32)],
        ),
        compiler_params=pltpu.CompilerParams(
            # batch blocks are independent (shardable across TCs); time is a true recurrence.
            dimension_semantics=("parallel", "arbitrary"),
            vmem_limit_bytes=_vmem_limit(rec_block_bytes),
        ),
    )(gi, params["w_h_bf16"], params["b_hn"], params["ln_g"], params["ln_b"])

    # ---- MLP head over all T*B rows: row-parallel grid x vocab tiles ----
    rows = T * B
    row_blk = ROW_BLOCK if rows >= ROW_BLOCK else _round_up(rows, 8)
    rows_pad = _round_up(rows, row_blk)
    vblk = min(VOCAB_BLOCK, Vp)

    h_flat = h_seq.reshape(rows, H)
    if rows_pad != rows:
        h_flat = jnp.pad(h_flat, ((0, rows_pad - rows), (0, 0)))

    head_block_bytes = (2 * row_blk * H * 2               # h tile (bf16, double-buffered)
                        + H * H * 2 + 3 * H * 4           # fc1_w + fc1_b + ln2 (single-buffered)
                        + 2 * (H * vblk * 2 + vblk * 4)   # fc2_w / fc2_b vocab tiles
                        + 2 * row_blk * vblk * 4          # logits tile (f32, double-buffered)
                        + row_blk * H * 4)                # y_scratch
    const_head = lambda shape: pl.BlockSpec(shape, lambda r, v: (0, 0),
                                            pipeline_mode=pl.Buffered(1))

    logits_flat = pl.pallas_call(
        mlp_head_kernel,
        out_shape=jax.ShapeDtypeStruct((rows_pad, Vp), jnp.float32),
        grid_spec=pltpu.PrefetchScalarGridSpec(
            num_scalar_prefetch=0,
            grid=(rows_pad // row_blk, Vp // vblk),
            in_specs=[
                pl.BlockSpec((row_blk, H), lambda r, v: (r, 0)),
                const_head((H, H)),
                const_head((1, H)),
                const_head((1, H)),
                const_head((1, H)),
                pl.BlockSpec((H, vblk), lambda r, v: (0, v)),
                pl.BlockSpec((1, vblk), lambda r, v: (0, v)),
            ],
            out_specs=pl.BlockSpec((row_blk, vblk), lambda r, v: (r, v)),
            scratch_shapes=[pltpu.VMEM((row_blk, H), jnp.float32)],
        ),
        compiler_params=pltpu.CompilerParams(
            # vocab axis stays "arbitrary": fc1+LN is cached in scratch across its steps.
            dimension_semantics=("parallel", "arbitrary"),
            vmem_limit_bytes=_vmem_limit(head_block_bytes),
        ),
    )(h_flat, params["fc1_w_bf16"], params["fc1_b"], params["ln2_g"], params["ln2_b"],
      params["fc2_w_bf16"], params["fc2_b_pad"])

    logits = logits_flat[:rows, :V].reshape(T, B, V)
    return jnp.transpose(logits, (1, 0, 2))               # (B, T, V)


# --------------------------- pure-JAX reference (f32, mirrors PyTorch) ---------------------------
def reference_forward(tokens, params):
    B, T = tokens.shape
    H = params["w_hr"].shape[0]
    x = jnp.take(params["embd"], tokens, axis=0).astype(jnp.float32)       # (B, T, E)
    h = jnp.zeros((B, H), jnp.float32)
    outs = []
    for t in range(T):
        xt = x[:, t, :]
        gi_r = xt @ params["w_ir"] + params["b_ir"]
        gi_z = xt @ params["w_iz"] + params["b_iz"]
        gi_n = xt @ params["w_in"] + params["b_in"]
        gh_r = h @ params["w_hr"] + params["b_hr"]
        gh_z = h @ params["w_hz"] + params["b_hz"]
        gh_n = h @ params["w_hn"] + params["b_hn"]
        r = jax.nn.sigmoid(gi_r + gh_r)
        z = jax.nn.sigmoid(gi_z + gh_z)
        n = jnp.tanh(gi_n + r * gh_n)
        h_new = (1.0 - z) * n + z * h
        h = _layernorm(h_new, params["ln_g"], params["ln_b"])
        y = h @ params["fc1_w"] + params["fc1_b"]
        y = jnp.where(y >= 0.0, y, LEAKY_SLOPE * y)
        y = _layernorm(y, params["ln2_g"], params["ln2_b"])
        outs.append(y @ params["fc2_w"] + params["fc2_b"])
    return jnp.stack(outs, axis=1)   # (B, T, V)


def init_params(key, vocab, embd, hidden):
    ks = jax.random.split(key, 16)
    s_ih = 1.0 / np.sqrt(hidden)
    u = lambda k, shape, s: jax.random.uniform(k, shape, jnp.float32, -s, s)
    return {
        "embd": jax.random.normal(ks[0], (vocab, embd), jnp.float32),
        # GRU input->hidden weights, stored pre-transposed as (E, H)
        "w_ir": u(ks[1], (embd, hidden), s_ih),
        "w_iz": u(ks[2], (embd, hidden), s_ih),
        "w_in": u(ks[3], (embd, hidden), s_ih),
        # GRU hidden->hidden weights, (H, H)
        "w_hr": u(ks[4], (hidden, hidden), s_ih),
        "w_hz": u(ks[5], (hidden, hidden), s_ih),
        "w_hn": u(ks[6], (hidden, hidden), s_ih),
        "b_ir": u(ks[7], (1, hidden), s_ih),
        "b_iz": u(ks[8], (1, hidden), s_ih),
        "b_in": u(ks[9], (1, hidden), s_ih),
        "b_hr": u(ks[10], (1, hidden), s_ih),
        "b_hz": u(ks[11], (1, hidden), s_ih),
        "b_hn": u(ks[12], (1, hidden), s_ih),
        # LayerNorm after the GRU layer
        "ln_g": jnp.ones((1, hidden), jnp.float32),
        "ln_b": jnp.zeros((1, hidden), jnp.float32),
        # predClass head
        "fc1_w": u(ks[13], (hidden, hidden), s_ih),
        "fc1_b": u(ks[14], (1, hidden), s_ih),
        "ln2_g": jnp.ones((1, hidden), jnp.float32),
        "ln2_b": jnp.zeros((1, hidden), jnp.float32),
        "fc2_w": u(ks[15], (hidden, vocab), s_ih),
        "fc2_b": jnp.zeros((1, vocab), jnp.float32),
    }


if __name__ == "__main__":
    VOCAB, EMBD, HIDDEN = 16, 32, 32
    B, T = 8, 16

    key = jax.random.PRNGKey(0)
    k_tok, k_par = jax.random.split(key)
    tokens = jax.random.randint(k_tok, (B, T), 0, VOCAB, dtype=jnp.int32)
    params = prepare_params(init_params(k_par, VOCAB, EMBD, HIDDEN))

    logits = jax.block_until_ready(autoregerting_forward(tokens, params))
    ref = jax.block_until_ready(reference_forward(tokens, params))

    # bf16 gi stream / bf16 hidden-matmul operands / bf16 h_seq (with f32 accumulation
    # and f32 gating + LayerNorm) -> modestly relaxed tolerance vs the all-f32 reference.
    np.testing.assert_allclose(np.asarray(logits), np.asarray(ref), rtol=3e-2, atol=3e-2)

    print("KERNEL_OK")
</pallas_src>

<mosaic_0001>
module attributes {stable_mosaic.version = 11 : i64} {
  func.func @mlp_head_kernel(%arg0: i32, %arg1: i32, %arg2: memref<128x32xbf16, #tpu.memory_space<vmem>>, %arg3: memref<32x32xbf16, #tpu.memory_space<vmem>>, %arg4: memref<1x32xf32, #tpu.memory_space<vmem>>, %arg5: memref<1x32xf32, #tpu.memory_space<vmem>>, %arg6: memref<1x32xf32, #tpu.memory_space<vmem>>, %arg7: memref<32x128xbf16, #tpu.memory_space<vmem>>, %arg8: memref<1x128xf32, #tpu.memory_space<vmem>>, %arg9: memref<128x128xf32, #tpu.memory_space<vmem>>, %arg10: memref<128x32xf32, #tpu.memory_space<vmem>>) attributes {dimension_semantics = [#tpu.dimension_semantics<parallel>, #tpu.dimension_semantics<arbitrary>], iteration_bounds = array<i64: 1, 1>, scalar_prefetch = 0 : i64, scratch_operands = 1 : i64, tpu.core_type = #tpu.core_type<tc>, window_params = [{transform_indices = @transform_0, window_bounds = array<i64: 128, 32>}, {pipeline_mode = #tpu.pipeline_mode<synchronous>, transform_indices = @transform_1, window_bounds = array<i64: 32, 32>}, {pipeline_mode = #tpu.pipeline_mode<synchronous>, transform_indices = @transform_2, window_bounds = array<i64: 1, 32>}, {pipeline_mode = #tpu.pipeline_mode<synchronous>, transform_indices = @transform_3, window_bounds = array<i64: 1, 32>}, {pipeline_mode = #tpu.pipeline_mode<synchronous>, transform_indices = @transform_4, window_bounds = array<i64: 1, 32>}, {transform_indices = @transform_5, window_bounds = array<i64: 32, 128>}, {transform_indices = @transform_6, window_bounds = array<i64: 1, 128>}, {transform_indices = @transform_7, window_bounds = array<i64: 128, 128>}]} {
    %c0_i32 = arith.constant 0 : i32
    %0 = arith.cmpi eq, %arg1, %c0_i32 : i32
    %1 = arith.extui %0 : i1 to i32
    %c0_i32_0 = arith.constant 0 : i32
    %2 = arith.cmpi ne, %1, %c0_i32_0 : i32
    scf.if %2 {
      %c0_8 = arith.constant 0 : index
      %c0_9 = arith.constant 0 : index
      %11 = vector.load %arg2[%c0_8, %c0_9] : memref<128x32xbf16, #tpu.memory_space<vmem>>, vector<128x32xbf16>
      %c0_10 = arith.constant 0 : index
      %c0_11 = arith.constant 0 : index
      %12 = vector.load %arg3[%c0_10, %c0_11] : memref<32x32xbf16, #tpu.memory_space<vmem>>, vector<32x32xbf16>
      %cst_12 = arith.constant dense<0.000000e+00> : vector<128x32xf32>
      %13 = tpu.matmul %11, %12, %cst_12 {dimension_numbers = #tpu.dot_dimension_numbers<[1], [0], [0], [1], [0, 0, 1, 1], [], []>} : vector<128x32xbf16>, vector<32x32xbf16>, vector<128x32xf32> -> vector<128x32xf32>
      %c0_13 = arith.constant 0 : index
      %c0_14 = arith.constant 0 : index
      %14 = vector.load %arg4[%c0_13, %c0_14] : memref<1x32xf32, #tpu.memory_space<vmem>>, vector<1x32xf32>
      %15 = vector.broadcast %14 : vector<1x32xf32> to vector<128x32xf32>
      %16 = arith.addf %13, %15 : vector<128x32xf32>
      %cst_15 = arith.constant 0.000000e+00 : f32
      %17 = vector.broadcast %cst_15 : f32 to vector<128x32xf32>
      %18 = arith.cmpf oge, %16, %17 : vector<128x32xf32>
      %cst_16 = arith.constant 0.00999999977 : f32
      %19 = vector.broadcast %cst_16 : f32 to vector<128x32xf32>
      %20 = arith.mulf %19, %16 : vector<128x32xf32>
      %21 = arith.select %18, %16, %20 : vector<128x32xi1>, vector<128x32xf32>
      %c0_17 = arith.constant 0 : index
      %c0_18 = arith.constant 0 : index
      %22 = vector.load %arg5[%c0_17, %c0_18] : memref<1x32xf32, #tpu.memory_space<vmem>>, vector<1x32xf32>
      %c0_19 = arith.constant 0 : index
      %c0_20 = arith.constant 0 : index
      %23 = vector.load %arg6[%c0_19, %c0_20] : memref<1x32xf32, #tpu.memory_space<vmem>>, vector<1x32xf32>
      %cst_21 = arith.constant dense<0.000000e+00> : vector<128xf32>
      %24 = vector.multi_reduction <add>, %21, %cst_21 [1] : vector<128x32xf32> to vector<128xf32>
      %25 = vector.shape_cast %24 : vector<128xf32> to vector<128x1xf32>
      %cst_22 = arith.constant 3.200000e+01 : f32
      %26 = vector.broadcast %cst_22 : f32 to vector<128x1xf32>
      %27 = arith.divf %25, %26 : vector<128x1xf32>
      %28 = vector.broadcast %27 : vector<128x1xf32> to vector<128x32xf32>
      %29 = arith.subf %21, %28 : vector<128x32xf32>
      %30 = vector.broadcast %27 : vector<128x1xf32> to vector<128x32xf32>
      %31 = arith.subf %21, %30 : vector<128x32xf32>
      %32 = arith.mulf %29, %31 : vector<128x32xf32>
      %cst_23 = arith.constant dense<0.000000e+00> : vector<128xf32>
      %33 = vector.multi_reduction <add>, %32, %cst_23 [1] : vector<128x32xf32> to vector<128xf32>
      %34 = vector.shape_cast %33 : vector<128xf32> to vector<128x1xf32>
      %cst_24 = arith.constant 3.200000e+01 : f32
      %35 = vector.broadcast %cst_24 : f32 to vector<128x1xf32>
      %36 = arith.divf %34, %35 : vector<128x1xf32>
      %37 = vector.broadcast %27 : vector<128x1xf32> to vector<128x32xf32>
      %38 = arith.subf %21, %37 : vector<128x32xf32>
      %cst_25 = arith.constant 9.99999974E-6 : f32
      %39 = vector.broadcast %cst_25 : f32 to vector<128x1xf32>
      %40 = arith.addf %36, %39 : vector<128x1xf32>
      %41 = math.rsqrt %40 : vector<128x1xf32>
      %42 = vector.broadcast %41 : vector<128x1xf32> to vector<128x32xf32>
      %43 = arith.mulf %38, %42 : vector<128x32xf32>
      %44 = vector.broadcast %22 : vector<1x32xf32> to vector<128x32xf32>
      %45 = arith.mulf %43, %44 : vector<128x32xf32>
      %46 = vector.broadcast %23 : vector<1x32xf32> to vector<128x32xf32>
      %47 = arith.addf %45, %46 : vector<128x32xf32>
      %c0_26 = arith.constant 0 : index
      %c0_27 = arith.constant 0 : index
      %48 = vector.load %arg10[%c0_26, %c0_27] : memref<128x32xf32, #tpu.memory_space<vmem>>, vector<128x32xf32>
      tpu.vector_store %arg10[%c0_26, %c0_27], %47 {strides = array<i32>} : memref<128x32xf32, #tpu.memory_space<vmem>>, vector<128x32xf32>,
    } else {
    }
    %c0 = arith.constant 0 : index
    %c0_1 = arith.constant 0 : index
    %3 = vector.load %arg10[%c0, %c0_1] : memref<128x32xf32, #tpu.memory_space<vmem>>, vector<128x32xf32>
    %4 = arith.truncf %3 : vector<128x32xf32> to vector<128x32xbf16>
    %c0_2 = arith.constant 0 : index
    %c0_3 = arith.constant 0 : index
    %5 = vector.load %arg7[%c0_2, %c0_3] : memref<32x128xbf16, #tpu.memory_space<vmem>>, vector<32x128xbf16>
    %cst = arith.constant dense<0.000000e+00> : vector<128x128xf32>
    %6 = tpu.matmul %4, %5, %cst {dimension_numbers = #tpu.dot_dimension_numbers<[1], [0], [0], [1], [0, 0, 1, 1], [], []>} : vector<128x32xbf16>, vector<32x128xbf16>, vector<128x128xf32> -> vector<128x128xf32>
    %c0_4 = arith.constant 0 : index
    %c0_5 = arith.constant 0 : index
    %7 = vector.load %arg8[%c0_4, %c0_5] : memref<1x128xf32, #tpu.memory_space<vmem>>, vector<1x128xf32>
    %8 = vector.broadcast %7 : vector<1x128xf32> to vector<128x128xf32>
    %9 = arith.addf %6, %8 : vector<128x128xf32>
    %c0_6 = arith.constant 0 : index
    %c0_7 = arith.constant 0 : index
    %10 = vector.load %arg9[%c0_6, %c0_7] : memref<128x128xf32, #tpu.memory_space<vmem>>, vector<128x128xf32>
    tpu.vector_store %arg9[%c0_6, %c0_7], %9 {strides = array<i32>} : memref<128x128xf32, #tpu.memory_space<vmem>>, vector<128x128xf32>,
    return
  }
  func.func @transform_0(%arg0: i32, %arg1: i32) -> (i32, i32) {
    %c0_i32 = arith.constant 0 : i32
    %c0_i32_0 = arith.constant 0 : i32
    return %arg0, %c0_i32 : i32, i32
  }
  func.func @transform_1(%arg0: i32, %arg1: i32) -> (i32, i32) {
    %c0_i32 = arith.constant 0 : i32
    %c0_i32_0 = arith.constant 0 : i32
    %c0_i32_1 = arith.constant 0 : i32
    return %c0_i32, %c0_i32_0 : i32, i32
  }
  func.func @transform_2(%arg0: i32, %arg1: i32) -> (i32, i32) {
    %c0_i32 = arith.constant 0 : i32
    %c0_i32_0 = arith.constant 0 : i32
    %c0_i32_1 = arith.constant 0 : i32
    return %c0_i32, %c0_i32_0 : i32, i32
  }
  func.func @transform_3(%arg0: i32, %arg1: i32) -> (i32, i32) {
    %c0_i32 = arith.constant 0 : i32
    %c0_i32_0 = arith.constant 0 : i32
    %c0_i32_1 = arith.constant 0 : i32
    return %c0_i32, %c0_i32_0 : i32, i32
  }
  func.func @transform_4(%arg0: i32, %arg1: i32) -> (i32, i32) {
    %c0_i32 = arith.constant 0 : i32
    %c0_i32_0 = arith.constant 0 : i32
    %c0_i32_1 = arith.constant 0 : i32
    return %c0_i32, %c0_i32_0 : i32, i32
  }
  func.func @transform_5(%arg0: i32, %arg1: i32) -> (i32, i32) {
    %c0_i32 = arith.constant 0 : i32
    %c0_i32_0 = arith.constant 0 : i32
    return %c0_i32, %arg1 : i32, i32
  }
  func.func @transform_6(%arg0: i32, %arg1: i32) -> (i32, i32) {
    %c0_i32 = arith.constant 0 : i32
    %c0_i32_0 = arith.constant 0 : i32
    return %c0_i32, %arg1 : i32, i32
  }
  func.func @transform_7(%arg0: i32, %arg1: i32) -> (i32, i32) {
    %c0_i32 = arith.constant 0 : i32
    return %arg0, %arg1 : i32, i32
  }
}

module attributes {stable_mosaic.version = 11 : i64} {
  func.func @gru_recurrent_kernel(%arg0: i32, %arg1: i32, %arg2: memref<16x3x8x32xbf16, #tpu.memory_space<vmem>>, %arg3: memref<32x96xbf16, #tpu.memory_space<vmem>>, %arg4: memref<1x32xf32, #tpu.memory_space<vmem>>, %arg5: memref<1x32xf32, #tpu.memory_space<vmem>>, %arg6: memref<1x32xf32, #tpu.memory_space<vmem>>, %arg7: memref<16x8x32xbf16, #tpu.memory_space<vmem>>, %arg8: memref<8x32xf32, #tpu.memory_space<vmem>>) attributes {dimension_semantics = [#tpu.dimension_semantics<parallel>, #tpu.dimension_semantics<arbitrary>], iteration_bounds = array<i64: 1, 1>, scalar_prefetch = 0 : i64, scratch_operands = 1 : i64, tpu.core_type = #tpu.core_type<tc>, window_params = [{transform_indices = @transform_0, window_bounds = array<i64: 16, 3, 8, 32>}, {pipeline_mode = #tpu.pipeline_mode<synchronous>, transform_indices = @transform_1, window_bounds = array<i64: 32, 96>}, {pipeline_mode = #tpu.pipeline_mode<synchronous>, transform_indices = @transform_2, window_bounds = array<i64: 1, 32>}, {pipeline_mode = #tpu.pipeline_mode<synchronous>, transform_indices = @transform_3, window_bounds = array<i64: 1, 32>}, {pipeline_mode = #tpu.pipeline_mode<synchronous>, transform_indices = @transform_4, window_bounds = array<i64: 1, 32>}, {transform_indices = @transform_5, window_bounds = array<i64: 16, 8, 32>}]} {
    %c0_i32 = arith.constant 0 : i32
    %0 = arith.cmpi eq, %arg1, %c0_i32 : i32
    %1 = arith.extui %0 : i1 to i32
    %c0_i32_0 = arith.constant 0 : i32
    %2 = arith.cmpi ne, %1, %c0_i32_0 : i32
    scf.if %2 {
      %cst_220 = arith.constant 0.000000e+00 : f32
      %1033 = vector.broadcast %cst_220 : f32 to vector<8x32xf32>
      %c0_221 = arith.constant 0 : index
      %c0_222 = arith.constant 0 : index
      %1034 = vector.load %arg8[%c0_221, %c0_222] : memref<8x32xf32, #tpu.memory_space<vmem>>, vector<8x32xf32>
      tpu.vector_store %arg8[%c0_221, %c0_222], %1033 {strides = array<i32>} : memref<8x32xf32, #tpu.memory_space<vmem>>, vector<8x32xf32>,
    } else {
    }
    %c0 = arith.constant 0 : index
    %c0_1 = arith.constant 0 : index
    %3 = vector.load %arg3[%c0, %c0_1] : memref<32x96xbf16, #tpu.memory_space<vmem>>, vector<32x96xbf16>
    %c0_2 = arith.constant 0 : index
    %c0_3 = arith.constant 0 : index
    %4 = vector.load %arg4[%c0_2, %c0_3] : memref<1x32xf32, #tpu.memory_space<vmem>>, vector<1x32xf32>
    %c0_4 = arith.constant 0 : index
    %c0_5 = arith.constant 0 : index
    %5 = vector.load %arg5[%c0_4, %c0_5] : memref<1x32xf32, #tpu.memory_space<vmem>>, vector<1x32xf32>
    %c0_6 = arith.constant 0 : index
    %c0_7 = arith.constant 0 : index
    %6 = vector.load %arg6[%c0_6, %c0_7] : memref<1x32xf32, #tpu.memory_space<vmem>>, vector<1x32xf32>
    %c0_8 = arith.constant 0 : index
    %c0_9 = arith.constant 0 : index
    %7 = vector.load %arg8[%c0_8, %c0_9] : memref<8x32xf32, #tpu.memory_space<vmem>>, vector<8x32xf32>
    %c0_i32_10 = arith.constant 0 : i32
    %8 = arith.index_cast %c0_i32_10 : i32 to index
    %c0_11 = arith.constant 0 : index
    %c0_12 = arith.constant 0 : index
    %c0_13 = arith.constant 0 : index
    %9 = vector.load %arg2[%8, %c0_11, %c0_12, %c0_13] : memref<16x3x8x32xbf16, #tpu.memory_space<vmem>>, vector<1x3x8x32xbf16>
    %10 = vector.shape_cast %9 : vector<1x3x8x32xbf16> to vector<3x8x32xbf16>
    %11 = arith.extf %10 : vector<3x8x32xbf16> to vector<3x8x32xf32>
    %12 = arith.truncf %7 : vector<8x32xf32> to vector<8x32xbf16>
    %cst = arith.constant dense<0.000000e+00> : vector<8x96xf32>
    %13 = tpu.matmul %12, %3, %cst {dimension_numbers = #tpu.dot_dimension_numbers<[1], [0], [0], [1], [0, 0, 1, 1], [], []>} : vector<8x32xbf16>, vector<32x96xbf16>, vector<8x96xf32> -> vector<8x96xf32>
    %14 = vector.extract_strided_slice %11 {offsets = [0, 0, 0], sizes = [1, 8, 32], strides = [1, 1, 1]} : vector<3x8x32xf32> to vector<1x8x32xf32>
    %15 = vector.shape_cast %14 : vector<1x8x32xf32> to vector<8x32xf32>
    %16 = vector.extract_strided_slice %13 {offsets = [0, 0], sizes = [8, 32], strides = [1, 1]} : vector<8x96xf32> to vector<8x32xf32>
    %17 = arith.addf %15, %16 : vector<8x32xf32>
    %18 = arith.negf %17 : vector<8x32xf32>
    %19 = math.exp %18 : vector<8x32xf32>
    %cst_14 = arith.constant 1.000000e+00 : f32
    %20 = vector.broadcast %cst_14 : f32 to vector<8x32xf32>
    %21 = arith.addf %20, %19 : vector<8x32xf32>
    %22 = arith.divf %20, %21 : vector<8x32xf32>
    %23 = vector.extract_strided_slice %11 {offsets = [1, 0, 0], sizes = [1, 8, 32], strides = [1, 1, 1]} : vector<3x8x32xf32> to vector<1x8x32xf32>
    %24 = vector.shape_cast %23 : vector<1x8x32xf32> to vector<8x32xf32>
    %25 = vector.extract_strided_slice %13 {offsets = [0, 32], sizes = [8, 32], strides = [1, 1]} : vector<8x96xf32> to vector<8x32xf32>
    %26 = arith.addf %24, %25 : vector<8x32xf32>
    %27 = arith.negf %26 : vector<8x32xf32>
    %28 = math.exp %27 : vector<8x32xf32>
    %cst_15 = arith.constant 1.000000e+00 : f32
    %29 = vector.broadcast %cst_15 : f32 to vector<8x32xf32>
    %30 = arith.addf %29, %28 : vector<8x32xf32>
    %31 = arith.divf %29, %30 : vector<8x32xf32>
    %32 = vector.extract_strided_slice %11 {offsets = [2, 0, 0], sizes = [1, 8, 32], strides = [1, 1, 1]} : vector<3x8x32xf32> to vector<1x8x32xf32>
    %33 = vector.shape_cast %32 : vector<1x8x32xf32> to vector<8x32xf32>
    %34 = vector.extract_strided_slice %13 {offsets = [0, 64], sizes = [8, 32], strides = [1, 1]} : vector<8x96xf32> to vector<8x32xf32>
    %35 = vector.broadcast %4 : vector<1x32xf32> to vector<8x32xf32>
    %36 = arith.addf %34, %35 : vector<8x32xf32>
    %37 = arith.mulf %22, %36 : vector<8x32xf32>
    %38 = arith.addf %33, %37 : vector<8x32xf32>
    %39 = math.tanh %38 : vector<8x32xf32>
    %40 = arith.subf %7, %39 : vector<8x32xf32>
    %41 = arith.mulf %31, %40 : vector<8x32xf32>
    %42 = arith.addf %39, %41 : vector<8x32xf32>
    %cst_16 = arith.constant dense<0.000000e+00> : vector<8xf32>
    %43 = vector.multi_reduction <add>, %42, %cst_16 [1] : vector<8x32xf32> to vector<8xf32>
    %44 = vector.shape_cast %43 : vector<8xf32> to vector<8x1xf32>
    %cst_17 = arith.constant 3.200000e+01 : f32
    %45 = vector.broadcast %cst_17 : f32 to vector<8x1xf32>
    %46 = arith.divf %44, %45 : vector<8x1xf32>
    %47 = vector.broadcast %46 : vector<8x1xf32> to vector<8x32xf32>
    %48 = arith.subf %42, %47 : vector<8x32xf32>
    %49 = vector.broadcast %46 : vector<8x1xf32> to vector<8x32xf32>
    %50 = arith.subf %42, %49 : vector<8x32xf32>
    %51 = arith.mulf %48, %50 : vector<8x32xf32>
    %cst_18 = arith.constant dense<0.000000e+00> : vector<8xf32>
    %52 = vector.multi_reduction <add>, %51, %cst_18 [1] : vector<8x32xf32> to vector<8xf32>
    %53 = vector.shape_cast %52 : vector<8xf32> to vector<8x1xf32>
    %cst_19 = arith.constant 3.200000e+01 : f32
    %54 = vector.broadcast %cst_19 : f32 to vector<8x1xf32>
    %55 = arith.divf %53, %54 : vector<8x1xf32>
    %56 = vector.broadcast %46 : vector<8x1xf32> to vector<8x32xf32>
    %57 = arith.subf %42, %56 : vector<8x32xf32>
    %cst_20 = arith.constant 9.99999974E-6 : f32
    %58 = vector.broadcast %cst_20 : f32 to vector<8x1xf32>
    %59 = arith.addf %55, %58 : vector<8x1xf32>
    %60 = math.rsqrt %59 : vector<8x1xf32>
    %61 = vector.broadcast %60 : vector<8x1xf32> to vector<8x32xf32>
    %62 = arith.mulf %57, %61 : vector<8x32xf32>
    %63 = vector.broadcast %5 : vector<1x32xf32> to vector<8x32xf32>
    %64 = arith.mulf %62, %63 : vector<8x32xf32>
    %65 = vector.broadcast %6 : vector<1x32xf32> to vector<8x32xf32>
    %66 = arith.addf %64, %65 : vector<8x32xf32>
    %67 = arith.truncf %66 : vector<8x32xf32> to vector<8x32xbf16>
    %68 = arith.index_cast %c0_i32_10 : i32 to index
    %c0_21 = arith.constant 0 : index
    %c0_22 = arith.constant 0 : index
    %69 = vector.load %arg7[%68, %c0_21, %c0_22] : memref<16x8x32xbf16, #tpu.memory_space<vmem>>, vector<1x8x32xbf16>
    %70 = vector.shape_cast %69 : vector<1x8x32xbf16> to vector<8x32xbf16>
    %71 = vector.shape_cast %67 : vector<8x32xbf16> to vector<1x8x32xbf16>
    tpu.vector_store %arg7[%68, %c0_21, %c0_22], %71 {strides = array<i32>} : memref<16x8x32xbf16, #tpu.memory_space<vmem>>, vector<1x8x32xbf16>,
    %c1_i32 = arith.constant 1 : i32
    %72 = arith.index_cast %c1_i32 : i32 to index
    %c0_23 = arith.constant 0 : index
    %c0_24 = arith.constant 0 : index
    %c0_25 = arith.constant 0 : index
    %73 = vector.load %arg2[%72, %c0_23, %c0_24, %c0_25] : memref<16x3x8x32xbf16, #tpu.memory_space<vmem>>, vector<1x3x8x32xbf16>
    %74 = vector.shape_cast %73 : vector<1x3x8x32xbf16> to vector<3x8x32xbf16>
    %75 = arith.extf %74 : vector<3x8x32xbf16> to vector<3x8x32xf32>
    %76 = arith.truncf %66 : vector<8x32xf32> to vector<8x32xbf16>
    %cst_26 = arith.constant dense<0.000000e+00> : vector<8x96xf32>
    %77 = tpu.matmul %76, %3, %cst_26 {dimension_numbers = #tpu.dot_dimension_numbers<[1], [0], [0], [1], [0, 0, 1, 1], [], []>} : vector<8x32xbf16>, vector<32x96xbf16>, vector<8x96xf32> -> vector<8x96xf32>
    %78 = vector.extract_strided_slice %75 {offsets = [0, 0, 0], sizes = [1, 8, 32], strides = [1, 1, 1]} : vector<3x8x32xf32> to vector<1x8x32xf32>
    %79 = vector.shape_cast %78 : vector<1x8x32xf32> to vector<8x32xf32>
    %80 = vector.extract_strided_slice %77 {offsets = [0, 0], sizes = [8, 32], strides = [1, 1]} : vector<8x96xf32> to vector<8x32xf32>
    %81 = arith.addf %79, %80 : vector<8x32xf32>
    %82 = arith.negf %81 : vector<8x32xf32>
    %83 = math.exp %82 : vector<8x32xf32>
    %cst_27 = arith.constant 1.000000e+00 : f32
    %84 = vector.broadcast %cst_27 : f32 to vector<8x32xf32>
    %85 = arith.addf %84, %83 : vector<8x32xf32>
    %86 = arith.divf %84, %85 : vector<8x32xf32>
    %87 = vector.extract_strided_slice %75 {offsets = [1, 0, 0], sizes = [1, 8, 32], strides = [1, 1, 1]} : vector<3x8x32xf32> to vector<1x8x32xf32>
    %88 = vector.shape_cast %87 : vector<1x8x32xf32> to vector<8x32xf32>
    %89 = vector.extract_strided_slice %77 {offsets = [0, 32], sizes = [8, 32], strides = [1, 1]} : vector<8x96xf32> to vector<8x32xf32>
    %90 = arith.addf %88, %89 : vector<8x32xf32>
    %91 = arith.negf %90 : vector<8x32xf32>
    %92 = math.exp %91 : vector<8x32xf32>
    %cst_28 = arith.constant 1.000000e+00 : f32
    %93 = vector.broadcast %cst_28 : f32 to vector<8x32xf32>
    %94 = arith.addf %93, %92 : vector<8x32xf32>
    %95 = arith.divf %93, %94 : vector<8x32xf32>
    %96 = vector.extract_strided_slice %75 {offsets = [2, 0, 0], sizes = [1, 8, 32], strides = [1, 1, 1]} : vector<3x8x32xf32> to vector<1x8x32xf32>
    %97 = vector.shape_cast %96 : vector<1x8x32xf32> to vector<8x32xf32>
    %98 = vector.extract_strided_slice %77 {offsets = [0, 64], sizes = [8, 32], strides = [1, 1]} : vector<8x96xf32> to vector<8x32xf32>
    %99 = vector.broadcast %4 : vector<1x32xf32> to vector<8x32xf32>
    %100 = arith.addf %98, %99 : vector<8x32xf32>
    %101 = arith.mulf %86, %100 : vector<8x32xf32>
    %102 = arith.addf %97, %101 : vector<8x32xf32>
    %103 = math.tanh %102 : vector<8x32xf32>
    %104 = arith.subf %66, %103 : vector<8x32xf32>
    %105 = arith.mulf %95, %104 : vector<8x32xf32>
    %106 = arith.addf %103, %105 : vector<8x32xf32>
    %cst_29 = arith.constant dense<0.000000e+00> : vector<8xf32>
    %107 = vector.multi_reduction <add>, %106, %cst_29 [1] : vector<8x32xf32> to vector<8xf32>
    %108 = vector.shape_cast %107 : vector<8xf32> to vector<8x1xf32>
    %cst_30 = arith.constant 3.200000e+01 : f32
    %109 = vector.broadcast %cst_30 : f32 to vector<8x1xf32>
    %110 = arith.divf %108, %109 : vector<8x1xf32>
    %111 = vector.broadcast %110 : vector<8x1xf32> to vector<8x32xf32>
    %112 = arith.subf %106, %111 : vector<8x32xf32>
    %113 = vector.broadcast %110 : vector<8x1xf32> to vector<8x32xf32>
    %114 = arith.subf %106, %113 : vector<8x32xf32>
    %115 = arith.mulf %112, %114 : vector<8x32xf32>
    %cst_31 = arith.constant dense<0.000000e+00> : vector<8xf32>
    %116 = vector.multi_reduction <add>, %115, %cst_31 [1] : vector<8x32xf32> to vector<8xf32>
    %117 = vector.shape_cast %116 : vector<8xf32> to vector<8x1xf32>
    %cst_32 = arith.constant 3.200000e+01 : f32
    %118 = vector.broadcast %cst_32 : f32 to vector<8x1xf32>
    %119 = arith.divf %117, %118 : vector<8x1xf32>
    %120 = vector.broadcast %110 : vector<8x1xf32> to vector<8x32xf32>
    %121 = arith.subf %106, %120 : vector<8x32xf32>
    %cst_33 = arith.constant 9.99999974E-6 : f32
    %122 = vector.broadcast %cst_33 : f32 to vector<8x1xf32>
    %123 = arith.addf %119, %122 : vector<8x1xf32>
    %124 = math.rsqrt %123 : vector<8x1xf32>
    %125 = vector.broadcast %124 : vector<8x1xf32> to vector<8x32xf32>
    %126 = arith.mulf %121, %125 : vector<8x32xf32>
    %127 = vector.broadcast %5 : vector<1x32xf32> to vector<8x32xf32>
    %128 = arith.mulf %126, %127 : vector<8x32xf32>
    %129 = vector.broadcast %6 : vector<1x32xf32> to vector<8x32xf32>
    %130 = arith.addf %128, %129 : vector<8x32xf32>
    %131 = arith.truncf %130 : vector<8x32xf32> to vector<8x32xbf16>
    %132 = arith.index_cast %c1_i32 : i32 to index
    %c0_34 = arith.constant 0 : index
    %c0_35 = arith.constant 0 : index
    %133 = vector.load %arg7[%132, %c0_34, %c0_35] : memref<16x8x32xbf16, #tpu.memory_space<vmem>>, vector<1x8x32xbf16>
    %134 = vector.shape_cast %133 : vector<1x8x32xbf16> to vector<8x32xbf16>
    %135 = vector.shape_cast %131 : vector<8x32xbf16> to vector<1x8x32xbf16>
    tpu.vector_store %arg7[%132, %c0_34, %c0_35], %135 {strides = array<i32>} : memref<16x8x32xbf16, #tpu.memory_space<vmem>>, vector<1x8x32xbf16>,
    %c2_i32 = arith.constant 2 : i32
    %136 = arith.index_cast %c2_i32 : i32 to index
    %c0_36 = arith.constant 0 : index
    %c0_37 = arith.constant 0 : index
    %c0_38 = arith.constant 0 : index
    %137 = vector.load %arg2[%136, %c0_36, %c0_37, %c0_38] : memref<16x3x8x32xbf16, #tpu.memory_space<vmem>>, vector<1x3x8x32xbf16>
    %138 = vector.shape_cast %137 : vector<1x3x8x32xbf16> to vector<3x8x32xbf16>
    %139 = arith.extf %138 : vector<3x8x32xbf16> to vector<3x8x32xf32>
    %140 = arith.truncf %130 : vector<8x32xf32> to vector<8x32xbf16>
    %cst_39 = arith.constant dense<0.000000e+00> : vector<8x96xf32>
    %141 = tpu.matmul %140, %3, %cst_39 {dimension_numbers = #tpu.dot_dimension_numbers<[1], [0], [0], [1], [0, 0, 1, 1], [], []>} : vector<8x32xbf16>, vector<32x96xbf16>, vector<8x96xf32> -> vector<8x96xf32>
    %142 = vector.extract_strided_slice %139 {offsets = [0, 0, 0], sizes = [1, 8, 32], strides = [1, 1, 1]} : vector<3x8x32xf32> to vector<1x8x32xf32>
    %143 = vector.shape_cast %142 : vector<1x8x32xf32> to vector<8x32xf32>
    %144 = vector.extract_strided_slice %141 {offsets = [0, 0], sizes = [8, 32], strides = [1, 1]} : vector<8x96xf32> to vector<8x32xf32>
    %145 = arith.addf %143, %144 : vector<8x32xf32>
    %146 = arith.negf %145 : vector<8x32xf32>
    %147 = math.exp %146 : vector<8x32xf32>
    %cst_40 = arith.constant 1.000000e+00 : f32
    %148 = vector.broadcast %cst_40 : f32 to vector<8x32xf32>
    %149 = arith.addf %148, %147 : vector<8x32xf32>
    %150 = arith.divf %148, %149 : vector<8x32xf32>
    %151 = vector.extract_strided_slice %139 {offsets = [1, 0, 0], sizes = [1, 8, 32], strides = [1, 1, 1]} : vector<3x8x32xf32> to vector<1x8x32xf32>
    %152 = vector.shape_cast %151 : vector<1x8x32xf32> to vector<8x32xf32>
    %153 = vector.extract_strided_slice %141 {offsets = [0, 32], sizes = [8, 32], strides = [1, 1]} : vector<8x96xf32> to vector<8x32xf32>
    %154 = arith.addf %152, %153 : vector<8x32xf32>
    %155 = arith.negf %154 : vector<8x32xf32>
    %156 = math.exp %155 : vector<8x32xf32>
    %cst_41 = arith.constant 1.000000e+00 : f32
    %157 = vector.broadcast %cst_41 : f32 to vector<8x32xf32>
    %158 = arith.addf %157, %156 : vector<8x32xf32>
    %159 = arith.divf %157, %158 : vector<8x32xf32>
    %160 = vector.extract_strided_slice %139 {offsets = [2, 0, 0], sizes = [1, 8, 32], strides = [1, 1, 1]} : vector<3x8x32xf32> to vector<1x8x32xf32>
    %161 = vector.shape_cast %160 : vector<1x8x32xf32> to vector<8x32xf32>
    %162 = vector.extract_strided_slice %141 {offsets = [0, 64], sizes = [8, 32], strides = [1, 1]} : vector<8x96xf32> to vector<8x32xf32>
    %163 = vector.broadcast %4 : vector<1x32xf32> to vector<8x32xf32>
    %164 = arith.addf %162, %163 : vector<8x32xf32>
    %165 = arith.mulf %150, %164 : vector<8x32xf32>
    %166 = arith.addf %161, %165 : vector<8x32xf32>
    %167 = math.tanh %166 : vector<8x32xf32>
    %168 = arith.subf %130, %167 : vector<8x32xf32>
    %169 = arith.mulf %159, %168 : vector<8x32xf32>
    %170 = arith.addf %167, %169 : vector<8x32xf32>
    %cst_42 = arith.constant dense<0.000000e+00> : vector<8xf32>
    %171 = vector.multi_reduction <add>, %170, %cst_42 [1] : vector<8x32xf32> to vector<8xf32>
    %172 = vector.shape_cast %171 : vector<8xf32> to vector<8x1xf32>
    %cst_43 = arith.constant 3.200000e+01 : f32
    %173 = vector.broadcast %cst_43 : f32 to vector<8x1xf32>
    %174 = arith.divf %172, %173 : vector<8x1xf32>
    %175 = vector.broadcast %174 : vector<8x1xf32> to vector<8x32xf32>
    %176 = arith.subf %170, %175 : vector<8x32xf32>
    %177 = vector.broadcast %174 : vector<8x1xf32> to vector<8x32xf32>
    %178 = arith.subf %170, %177 : vector<8x32xf32>
    %179 = arith.mulf %176, %178 : vector<8x32xf32>
    %cst_44 = arith.constant dense<0.000000e+00> : vector<8xf32>
    %180 = vector.multi_reduction <add>, %179, %cst_44 [1] : vector<8x32xf32> to vector<8xf32>
    %181 = vector.shape_cast %180 : vector<8xf32> to vector<8x1xf32>
    %cst_45 = arith.constant 3.200000e+01 : f32
    %182 = vector.broadcast %cst_45 : f32 to vector<8x1xf32>
    %183 = arith.divf %181, %182 : vector<8x1xf32>
    %184 = vector.broadcast %174 : vector<8x1xf32> to vector<8x32xf32>
    %185 = arith.subf %170, %184 : vector<8x32xf32>
    %cst_46 = arith.constant 9.99999974E-6 : f32
    %186 = vector.broadcast %cst_46 : f32 to vector<8x1xf32>
    %187 = arith.addf %183, %186 : vector<8x1xf32>
    %188 = math.rsqrt %187 : vector<8x1xf32>
    %189 = vector.broadcast %188 : vector<8x1xf32> to vector<8x32xf32>
    %190 = arith.mulf %185, %189 : vector<8x32xf32>
    %191 = vector.broadcast %5 : vector<1x32xf32> to vector<8x32xf32>
    %192 = arith.mulf %190, %191 : vector<8x32xf32>
    %193 = vector.broadcast %6 : vector<1x32xf32> to vector<8x32xf32>
    %194 = arith.addf %192, %193 : vector<8x32xf32>
    %195 = arith.truncf %194 : vector<8x32xf32> to vector<8x32xbf16>
    %196 = arith.index_cast %c2_i32 : i32 to index
    %c0_47 = arith.constant 0 : index
    %c0_48 = arith.constant 0 : index
    %197 = vector.load %arg7[%196, %c0_47, %c0_48] : memref<16x8x32xbf16, #tpu.memory_space<vmem>>, vector<1x8x32xbf16>
    %198 = vector.shape_cast %197 : vector<1x8x32xbf16> to vector<8x32xbf16>
    %199 = vector.shape_cast %195 : vector<8x32xbf16> to vector<1x8x32xbf16>
    tpu.vector_store %arg7[%196, %c0_47, %c0_48], %199 {strides = array<i32>} : memref<16x8x32xbf16, #tpu.memory_space<vmem>>, vector<1x8x32xbf16>,
    %c3_i32 = arith.constant 3 : i32
    %200 = arith.index_cast %c3_i32 : i32 to index
    %c0_49 = arith.constant 0 : index
    %c0_50 = arith.constant 0 : index
    %c0_51 = arith.constant 0 : index
    %201 = vector.load %arg2[%200, %c0_49, %c0_50, %c0_51] : memref<16x3x8x32xbf16, #tpu.memory_space<vmem>>, vector<1x3x8x32xbf16>
    %202 = vector.shape_cast %201 : vector<1x3x8x32xbf16> to vector<3x8x32xbf16>
    %203 = arith.extf %202 : vector<3x8x32xbf16> to vector<3x8x32xf32>
    %204 = arith.truncf %194 : vector<8x32xf32> to vector<8x32xbf16>
    %cst_52 = arith.constant dense<0.000000e+00> : vector<8x96xf32>
    %205 = tpu.matmul %204, %3, %cst_52 {dimension_numbers = #tpu.dot_dimension_numbers<[1], [0], [0], [1], [0, 0, 1, 1], [], []>} : vector<8x32xbf16>, vector<32x96xbf16>, vector<8x96xf32> -> vector<8x96xf32>
    %206 = vector.extract_strided_slice %203 {offsets = [0, 0, 0], sizes = [1, 8, 32], strides = [1, 1, 1]} : vector<3x8x32xf32> to vector<1x8x32xf32>
    %207 = vector.shape_cast %206 : vector<1x8x32xf32> to vector<8x32xf32>
    %208 = vector.extract_strided_slice %205 {offsets = [0, 0], sizes = [8, 32], strides = [1, 1]} : vector<8x96xf32> to vector<8x32xf32>
    %209 = arith.addf %207, %208 : vector<8x32xf32>
    %210 = arith.negf %209 : vector<8x32xf32>
    %211 = math.exp %210 : vector<8x32xf32>
    %cst_53 = arith.constant 1.000000e+00 : f32
    %212 = vector.broadcast %cst_53 : f32 to vector<8x32xf32>
    %213 = arith.addf %212, %211 : vector<8x32xf32>
    %214 = arith.divf %212, %213 : vector<8x32xf32>
    %215 = vector.extract_strided_slice %203 {offsets = [1, 0, 0], sizes = [1, 8, 32], strides = [1, 1, 1]} : vector<3x8x32xf32> to vector<1x8x32xf32>
    %216 = vector.shape_cast %215 : vector<1x8x32xf32> to vector<8x32xf32>
    %217 = vector.extract_strided_slice %205 {offsets = [0, 32], sizes = [8, 32], strides = [1, 1]} : vector<8x96xf32> to vector<8x32xf32>
    %218 = arith.addf %216, %217 : vector<8x32xf32>
    %219 = arith.negf %218 : vector<8x32xf32>
    %220 = math.exp %219 : vector<8x32xf32>
    %cst_54 = arith.constant 1.000000e+00 : f32
    %221 = vector.broadcast %cst_54 : f32 to vector<8x32xf32>
    %222 = arith.addf %221, %220 : vector<8x32xf32>
    %223 = arith.divf %221, %222 : vector<8x32xf32>
    %224 = vector.extract_strided_slice %203 {offsets = [2, 0, 0], sizes = [1, 8, 32], strides = [1, 1, 1]} : vector<3x8x32xf32> to vector<1x8x32xf32>
    %225 = vector.shape_cast %224 : vector<1x8x32xf32> to vector<8x32xf32>
    %226 = vector.extract_strided_slice %205 {offsets = [0, 64], sizes = [8, 32], strides = [1, 1]} : vector<8x96xf32> to vector<8x32xf32>
    %227 = vector.broadcast %4 : vector<1x32xf32> to vector<8x32xf32>
    %228 = arith.addf %226, %227 : vector<8x32xf32>
    %229 = arith.mulf %214, %228 : vector<8x32xf32>
    %230 = arith.addf %225, %229 : vector<8x32xf32>
    %231 = math.tanh %230 : vector<8x32xf32>
    %232 = arith.subf %194, %231 : vector<8x32xf32>
    %233 = arith.mulf %223, %232 : vector<8x32xf32>
    %234 = arith.addf %231, %233 : vector<8x32xf32>
    %cst_55 = arith.constant dense<0.000000e+00> : vector<8xf32>
    %235 = vector.multi_reduction <add>, %234, %cst_55 [1] : vector<8x32xf32> to vector<8xf32>
    %236 = vector.shape_cast %235 : vector<8xf32> to vector<8x1xf32>
    %cst_56 = arith.constant 3.200000e+01 : f32
    %237 = vector.broadcast %cst_56 : f32 to vector<8x1xf32>
    %238 = arith.divf %236, %237 : vector<8x1xf32>
    %239 = vector.broadcast %238 : vector<8x1xf32> to vector<8x32xf32>
    %240 = arith.subf %234, %239 : vector<8x32xf32>
    %241 = vector.broadcast %238 : vector<8x1xf32> to vector<8x32xf32>
    %242 = arith.subf %234, %241 : vector<8x32xf32>
    %243 = arith.mulf %240, %242 : vector<8x32xf32>
    %cst_57 = arith.constant dense<0.000000e+00> : vector<8xf32>
    %244 = vector.multi_reduction <add>, %243, %cst_57 [1] : vector<8x32xf32> to vector<8xf32>
    %245 = vector.shape_cast %244 : vector<8xf32> to vector<8x1xf32>
    %cst_58 = arith.constant 3.200000e+01 : f32
    %246 = vector.broadcast %cst_58 : f32 to vector<8x1xf32>
    %247 = arith.divf %245, %246 : vector<8x1xf32>
    %248 = vector.broadcast %238 : vector<8x1xf32> to vector<8x32xf32>
    %249 = arith.subf %234, %248 : vector<8x32xf32>
    %cst_59 = arith.constant 9.99999974E-6 : f32
    %250 = vector.broadcast %cst_59 : f32 to vector<8x1xf32>
    %251 = arith.addf %247, %250 : vector<8x1xf32>
    %252 = math.rsqrt %251 : vector<8x1xf32>
    %253 = vector.broadcast %252 : vector<8x1xf32> to vector<8x32xf32>
    %254 = arith.mulf %249, %253 : vector<8x32xf32>
    %255 = vector.broadcast %5 : vector<1x32xf32> to vector<8x32xf32>
    %256 = arith.mulf %254, %255 : vector<8x32xf32>
    %257 = vector.broadcast %6 : vector<1x32xf32> to vector<8x32xf32>
    %258 = arith.addf %256, %257 : vector<8x32xf32>
    %259 = arith.truncf %258 : vector<8x32xf32> to vector<8x32xbf16>
    %260 = arith.index_cast %c3_i32 : i32 to index
    %c0_60 = arith.constant 0 : index
    %c0_61 = arith.constant 0 : index
    %261 = vector.load %arg7[%260, %c0_60, %c0_61] : memref<16x8x32xbf16, #tpu.memory_space<vmem>>, vector<1x8x32xbf16>
    %262 = vector.shape_cast %261 : vector<1x8x32xbf16> to vector<8x32xbf16>
    %263 = vector.shape_cast %259 : vector<8x32xbf16> to vector<1x8x32xbf16>
    tpu.vector_store %arg7[%260, %c0_60, %c0_61], %263 {strides = array<i32>} : memref<16x8x32xbf16, #tpu.memory_space<vmem>>, vector<1x8x32xbf16>,
    %c4_i32 = arith.constant 4 : i32
    %264 = arith.index_cast %c4_i32 : i32 to index
    %c0_62 = arith.constant 0 : index
    %c0_63 = arith.constant 0 : index
    %c0_64 = arith.constant 0 : index
    %265 = vector.load %arg2[%264, %c0_62, %c0_63, %c0_64] : memref<16x3x8x32xbf16, #tpu.memory_space<vmem>>, vector<1x3x8x32xbf16>
    %266 = vector.shape_cast %265 : vector<1x3x8x32xbf16> to vector<3x8x32xbf16>
    %267 = arith.extf %266 : vector<3x8x32xbf16> to vector<3x8x32xf32>
    %268 = arith.truncf %258 : vector<8x32xf32> to vector<8x32xbf16>
    %cst_65 = arith.constant dense<0.000000e+00> : vector<8x96xf32>
    %269 = tpu.matmul %268, %3, %cst_65 {dimension_numbers = #tpu.dot_dimension_numbers<[1], [0], [0], [1], [0, 0, 1, 1], [], []>} : vector<8x32xbf16>, vector<32x96xbf16>, vector<8x96xf32> -> vector<8x96xf32>
    %270 = vector.extract_strided_slice %267 {offsets = [0, 0, 0], sizes = [1, 8, 32], strides = [1, 1, 1]} : vector<3x8x32xf32> to vector<1x8x32xf32>
    %271 = vector.shape_cast %270 : vector<1x8x32xf32> to vector<8x32xf32>
    %272 = vector.extract_strided_slice %269 {offsets = [0, 0], sizes = [8, 32], strides = [1, 1]} : vector<8x96xf32> to vector<8x32xf32>
    %273 = arith.addf %271, %272 : vector<8x32xf32>
    %274 = arith.negf %273 : vector<8x32xf32>
    %275 = math.exp %274 : vector<8x32xf32>
    %cst_66 = arith.constant 1.000000e+00 : f32
    %276 = vector.broadcast %cst_66 : f32 to vector<8x32xf32>
    %277 = arith.addf %276, %275 : vector<8x32xf32>
    %278 = arith.divf %276, %277 : vector<8x32xf32>
    %279 = vector.extract_strided_slice %267 {offsets = [1, 0, 0], sizes = [1, 8, 32], strides = [1, 1, 1]} : vector<3x8x32xf32> to vector<1x8x32xf32>
    %280 = vector.shape_cast %279 : vector<1x8x32xf32> to vector<8x32xf32>
    %281 = vector.extract_strided_slice %269 {offsets = [0, 32], sizes = [8, 32], strides = [1, 1]} : vector<8x96xf32> to vector<8x32xf32>
    %282 = arith.addf %280, %281 : vector<8x32xf32>
    %283 = arith.negf %282 : vector<8x32xf32>
    %284 = math.exp %283 : vector<8x32xf32>
    %cst_67 = arith.constant 1.000000e+00 : f32
    %285 = vector.broadcast %cst_67 : f32 to vector<8x32xf32>
    %286 = arith.addf %285, %284 : vector<8x32xf32>
    %287 = arith.divf %285, %286 : vector<8x32xf32>
    %288 = vector.extract_strided_slice %267 {offsets = [2, 0, 0], sizes = [1, 8, 32], strides = [1, 1, 1]} : vector<3x8x32xf32> to vector<1x8x32xf32>
    %289 = vector.shape_cast %288 : vector<1x8x32xf32> to vector<8x32xf32>
    %290 = vector.extract_strided_slice %269 {offsets = [0, 64], sizes = [8, 32], strides = [1, 1]} : vector<8x96xf32> to vector<8x32xf32>
    %291 = vector.broadcast %4 : vector<1x32xf32> to vector<8x32xf32>
    %292 = arith.addf %290, %291 : vector<8x32xf32>
    %293 = arith.mulf %278, %292 : vector<8x32xf32>
    %294 = arith.addf %289, %293 : vector<8x32xf32>
    %295 = math.tanh %294 : vector<8x32xf32>
    %296 = arith.subf %258, %295 : vector<8x32xf32>
    %297 = arith.mulf %287, %296 : vector<8x32xf32>
    %298 = arith.addf %295, %297 : vector<8x32xf32>
    %cst_68 = arith.constant dense<0.000000e+00> : vector<8xf32>
    %299 = vector.multi_reduction <add>, %298, %cst_68 [1] : vector<8x32xf32> to vector<8xf32>
    %300 = vector.shape_cast %299 : vector<8xf32> to vector<8x1xf32>
    %cst_69 = arith.constant 3.200000e+01 : f32
    %301 = vector.broadcast %cst_69 : f32 to vector<8x1xf32>
    %302 = arith.divf %300, %301 : vector<8x1xf32>
    %303 = vector.broadcast %302 : vector<8x1xf32> to vector<8x32xf32>
    %304 = arith.subf %298, %303 : vector<8x32xf32>
    %305 = vector.broadcast %302 : vector<8x1xf32> to vector<8x32xf32>
    %306 = arith.subf %298, %305 : vector<8x32xf32>
    %307 = arith.mulf %304, %306 : vector<8x32xf32>
    %cst_70 = arith.constant dense<0.000000e+00> : vector<8xf32>
    %308 = vector.multi_reduction <add>, %307, %cst_70 [1] : vector<8x32xf32> to vector<8xf32>
    %309 = vector.shape_cast %308 : vector<8xf32> to vector<8x1xf32>
    %cst_71 = arith.constant 3.200000e+01 : f32
    %310 = vector.broadcast %cst_71 : f32 to vector<8x1xf32>
    %311 = arith.divf %309, %310 : vector<8x1xf32>
    %312 = vector.broadcast %302 : vector<8x1xf32> to vector<8x32xf32>
    %313 = arith.subf %298, %312 : vector<8x32xf32>
    %cst_72 = arith.constant 9.99999974E-6 : f32
    %314 = vector.broadcast %cst_72 : f32 to vector<8x1xf32>
    %315 = arith.addf %311, %314 : vector<8x1xf32>
    %316 = math.rsqrt %315 : vector<8x1xf32>
    %317 = vector.broadcast %316 : vector<8x1xf32> to vector<8x32xf32>
    %318 = arith.mulf %313, %317 : vector<8x32xf32>
    %319 = vector.broadcast %5 : vector<1x32xf32> to vector<8x32xf32>
    %320 = arith.mulf %318, %319 : vector<8x32xf32>
    %321 = vector.broadcast %6 : vector<1x32xf32> to vector<8x32xf32>
    %322 = arith.addf %320, %321 : vector<8x32xf32>
    %323 = arith.truncf %322 : vector<8x32xf32> to vector<8x32xbf16>
    %324 = arith.index_cast %c4_i32 : i32 to index
    %c0_73 = arith.constant 0 : index
    %c0_74 = arith.constant 0 : index
    %325 = vector.load %arg7[%324, %c0_73, %c0_74] : memref<16x8x32xbf16, #tpu.memory_space<vmem>>, vector<1x8x32xbf16>
    %326 = vector.shape_cast %325 : vector<1x8x32xbf16> to vector<8x32xbf16>
    %327 = vector.shape_cast %323 : vector<8x32xbf16> to vector<1x8x32xbf16>
    tpu.vector_store %arg7[%324, %c0_73, %c0_74], %327 {strides = array<i32>} : memref<16x8x32xbf16, #tpu.memory_space<vmem>>, vector<1x8x32xbf16>,
    %c5_i32 = arith.constant 5 : i32
    %328 = arith.index_cast %c5_i32 : i32 to index
    %c0_75 = arith.constant 0 : index
    %c0_76 = arith.constant 0 : index
    %c0_77 = arith.constant 0 : index
    %329 = vector.load %arg2[%328, %c0_75, %c0_76, %c0_77] : memref<16x3x8x32xbf16, #tpu.memory_space<vmem>>, vector<1x3x8x32xbf16>
    %330 = vector.shape_cast %329 : vector<1x3x8x32xbf16> to vector<3x8x32xbf16>
    %331 = arith.extf %330 : vector<3x8x32xbf16> to vector<3x8x32xf32>
    %332 = arith.truncf %322 : vector<8x32xf32> to vector<8x32xbf16>
    %cst_78 = arith.constant dense<0.000000e+00> : vector<8x96xf32>
    %333 = tpu.matmul %332, %3, %cst_78 {dimension_numbers = #tpu.dot_dimension_numbers<[1], [0], [0], [1], [0, 0, 1, 1], [], []>} : vector<8x32xbf16>, vector<32x96xbf16>, vector<8x96xf32> -> vector<8x96xf32>
    %334 = vector.extract_strided_slice %331 {offsets = [0, 0, 0], sizes = [1, 8, 32], strides = [1, 1, 1]} : vector<3x8x32xf32> to vector<1x8x32xf32>
    %335 = vector.shape_cast %334 : vector<1x8x32xf32> to vector<8x32xf32>
    %336 = vector.extract_strided_slice %333 {offsets = [0, 0], sizes = [8, 32], strides = [1, 1]} : vector<8x96xf32> to vector<8x32xf32>
    %337 = arith.addf %335, %336 : vector<8x32xf32>
    %338 = arith.negf %337 : vector<8x32xf32>
    %339 = math.exp %338 : vector<8x32xf32>
    %cst_79 = arith.constant 1.000000e+00 : f32
    %340 = vector.broadcast %cst_79 : f32 to vector<8x32xf32>
    %341 = arith.addf %340, %339 : vector<8x32xf32>
    %342 = arith.divf %340, %341 : vector<8x32xf32>
    %343 = vector.extract_strided_slice %331 {offsets = [1, 0, 0], sizes = [1, 8, 32], strides = [1, 1, 1]} : vector<3x8x32xf32> to vector<1x8x32xf32>
    %344 = vector.shape_cast %343 : vector<1x8x32xf32> to vector<8x32xf32>
    %345 = vector.extract_strided_slice %333 {offsets = [0, 32], sizes = [8, 32], strides = [1, 1]} : vector<8x96xf32> to vector<8x32xf32>
    %346 = arith.addf %344, %345 : vector<8x32xf32>
    %347 = arith.negf %346 : vector<8x32xf32>
    %348 = math.exp %347 : vector<8x32xf32>
    %cst_80 = arith.constant 1.000000e+00 : f32
    %349 = vector.broadcast %cst_80 : f32 to vector<8x32xf32>
    %350 = arith.addf %349, %348 : vector<8x32xf32>
    %351 = arith.divf %349, %350 : vector<8x32xf32>
    %352 = vector.extract_strided_slice %331 {offsets = [2, 0, 0], sizes = [1, 8, 32], strides = [1, 1, 1]} : vector<3x8x32xf32> to vector<1x8x32xf32>
    %353 = vector.shape_cast %352 : vector<1x8x32xf32> to vector<8x32xf32>
    %354 = vector.extract_strided_slice %333 {offsets = [0, 64], sizes = [8, 32], strides = [1, 1]} : vector<8x96xf32> to vector<8x32xf32>
    %355 = vector.broadcast %4 : vector<1x32xf32> to vector<8x32xf32>
    %356 = arith.addf %354, %355 : vector<8x32xf32>
    %357 = arith.mulf %342, %356 : vector<8x32xf32>
    %358 = arith.addf %353, %357 : vector<8x32xf32>
    %359 = math.tanh %358 : vector<8x32xf32>
    %360 = arith.subf %322, %359 : vector<8x32xf32>
    %361 = arith.mulf %351, %360 : vector<8x32xf32>
    %362 = arith.addf %359, %361 : vector<8x32xf32>
    %cst_81 = arith.constant dense<0.000000e+00> : vector<8xf32>
    %363 = vector.multi_reduction <add>, %362, %cst_81 [1] : vector<8x32xf32> to vector<8xf32>
    %364 = vector.shape_cast %363 : vector<8xf32> to vector<8x1xf32>
    %cst_82 = arith.constant 3.200000e+01 : f32
    %365 = vector.broadcast %cst_82 : f32 to vector<8x1xf32>
    %366 = arith.divf %364, %365 : vector<8x1xf32>
    %367 = vector.broadcast %366 : vector<8x1xf32> to vector<8x32xf32>
    %368 = arith.subf %362, %367 : vector<8x32xf32>
    %369 = vector.broadcast %366 : vector<8x1xf32> to vector<8x32xf32>
    %370 = arith.subf %362, %369 : vector<8x32xf32>
    %371 = arith.mulf %368, %370 : vector<8x32xf32>
    %cst_83 = arith.constant dense<0.000000e+00> : vector<8xf32>
    %372 = vector.multi_reduction <add>, %371, %cst_83 [1] : vector<8x32xf32> to vector<8xf32>
    %373 = vector.shape_cast %372 : vector<8xf32> to vector<8x1xf32>
    %cst_84 = arith.constant 3.200000e+01 : f32
    %374 = vector.broadcast %cst_84 : f32 to vector<8x1xf32>
    %375 = arith.divf %373, %374 : vector<8x1xf32>
    %376 = vector.broadcast %366 : vector<8x1xf32> to vector<8x32xf32>
    %377 = arith.subf %362, %376 : vector<8x32xf32>
    %cst_85 = arith.constant 9.99999974E-6 : f32
    %378 = vector.broadcast %cst_85 : f32 to vector<8x1xf32>
    %379 = arith.addf %375, %378 : vector<8x1xf32>
    %380 = math.rsqrt %379 : vector<8x1xf32>
    %381 = vector.broadcast %380 : vector<8x1xf32> to vector<8x32xf32>
    %382 = arith.mulf %377, %381 : vector<8x32xf32>
    %383 = vector.broadcast %5 : vector<1x32xf32> to vector<8x32xf32>
    %384 = arith.mulf %382, %383 : vector<8x32xf32>
    %385 = vector.broadcast %6 : vector<1x32xf32> to vector<8x32xf32>
    %386 = arith.addf %384, %385 : vector<8x32xf32>
    %387 = arith.truncf %386 : vector<8x32xf32> to vector<8x32xbf16>
    %388 = arith.index_cast %c5_i32 : i32 to index
    %c0_86 = arith.constant 0 : index
    %c0_87 = arith.constant 0 : index
    %389 = vector.load %arg7[%388, %c0_86, %c0_87] : memref<16x8x32xbf16, #tpu.memory_space<vmem>>, vector<1x8x32xbf16>
    %390 = vector.shape_cast %389 : vector<1x8x32xbf16> to vector<8x32xbf16>
    %391 = vector.shape_cast %387 : vector<8x32xbf16> to vector<1x8x32xbf16>
    tpu.vector_store %arg7[%388, %c0_86, %c0_87], %391 {strides = array<i32>} : memref<16x8x32xbf16, #tpu.memory_space<vmem>>, vector<1x8x32xbf16>,
    %c6_i32 = arith.constant 6 : i32
    %392 = arith.index_cast %c6_i32 : i32 to index
    %c0_88 = arith.constant 0 : index
    %c0_89 = arith.constant 0 : index
    %c0_90 = arith.constant 0 : index
    %393 = vector.load %arg2[%392, %c0_88, %c0_89, %c0_90] : memref<16x3x8x32xbf16, #tpu.memory_space<vmem>>, vector<1x3x8x32xbf16>
    %394 = vector.shape_cast %393 : vector<1x3x8x32xbf16> to vector<3x8x32xbf16>
    %395 = arith.extf %394 : vector<3x8x32xbf16> to vector<3x8x32xf32>
    %396 = arith.truncf %386 : vector<8x32xf32> to vector<8x32xbf16>
    %cst_91 = arith.constant dense<0.000000e+00> : vector<8x96xf32>
    %397 = tpu.matmul %396, %3, %cst_91 {dimension_numbers = #tpu.dot_dimension_numbers<[1], [0], [0], [1], [0, 0, 1, 1], [], []>} : vector<8x32xbf16>, vector<32x96xbf16>, vector<8x96xf32> -> vector<8x96xf32>
    %398 = vector.extract_strided_slice %395 {offsets = [0, 0, 0], sizes = [1, 8, 32], strides = [1, 1, 1]} : vector<3x8x32xf32> to vector<1x8x32xf32>
    %399 = vector.shape_cast %398 : vector<1x8x32xf32> to vector<8x32xf32>
    %400 = vector.extract_strided_slice %397 {offsets = [0, 0], sizes = [8, 32], strides = [1, 1]} : vector<8x96xf32> to vector<8x32xf32>
    %401 = arith.addf %399, %400 : vector<8x32xf32>
    %402 = arith.negf %401 : vector<8x32xf32>
    %403 = math.exp %402 : vector<8x32xf32>
    %cst_92 = arith.constant 1.000000e+00 : f32
    %404 = vector.broadcast %cst_92 : f32 to vector<8x32xf32>
    %405 = arith.addf %404, %403 : vector<8x32xf32>
    %406 = arith.divf %404, %405 : vector<8x32xf32>
    %407 = vector.extract_strided_slice %395 {offsets = [1, 0, 0], sizes = [1, 8, 32], strides = [1, 1, 1]} : vector<3x8x32xf32> to vector<1x8x32xf32>
    %408 = vector.shape_cast %407 : vector<1x8x32xf32> to vector<8x32xf32>
    %409 = vector.extract_strided_slice %397 {offsets = [0, 32], sizes = [8, 32], strides = [1, 1]} : vector<8x96xf32> to vector<8x32xf32>
    %410 = arith.addf %408, %409 : vector<8x32xf32>
    %411 = arith.negf %410 : vector<8x32xf32>
    %412 = math.exp %411 : vector<8x32xf32>
    %cst_93 = arith.constant 1.000000e+00 : f32
    %413 = vector.broadcast %cst_93 : f32 to vector<8x32xf32>
    %414 = arith.addf %413, %412 : vector<8x32xf32>
    %415 = arith.divf %413, %414 : vector<8x32xf32>
    %416 = vector.extract_strided_slice %395 {offsets = [2, 0, 0], sizes = [1, 8, 32], strides = [1, 1, 1]} : vector<3x8x32xf32> to vector<1x8x32xf32>
    %417 = vector.shape_cast %416 : vector<1x8x32xf32> to vector<8x32xf32>
    %418 = vector.extract_strided_slice %397 {offsets = [0, 64], sizes = [8, 32], strides = [1, 1]} : vector<8x96xf32> to vector<8x32xf32>
    %419 = vector.broadcast %4 : vector<1x32xf32> to vector<8x32xf32>
    %420 = arith.addf %418, %419 : vector<8x32xf32>
    %421 = arith.mulf %406, %420 : vector<8x32xf32>
    %422 = arith.addf %417, %421 : vector<8x32xf32>
    %423 = math.tanh %422 : vector<8x32xf32>
    %424 = arith.subf %386, %423 : vector<8x32xf32>
    %425 = arith.mulf %415, %424 : vector<8x32xf32>
    %426 = arith.addf %423, %425 : vector<8x32xf32>
    %cst_94 = arith.constant dense<0.000000e+00> : vector<8xf32>
    %427 = vector.multi_reduction <add>, %426, %cst_94 [1] : vector<8x32xf32> to vector<8xf32>
    %428 = vector.shape_cast %427 : vector<8xf32> to vector<8x1xf32>
    %cst_95 = arith.constant 3.200000e+01 : f32
    %429 = vector.broadcast %cst_95 : f32 to vector<8x1xf32>
    %430 = arith.divf %428, %429 : vector<8x1xf32>
    %431 = vector.broadcast %430 : vector<8x1xf32> to vector<8x32xf32>
    %432 = arith.subf %426, %431 : vector<8x32xf32>
    %433 = vector.broadcast %430 : vector<8x1xf32> to vector<8x32xf32>
    %434 = arith.subf %426, %433 : vector<8x32xf32>
    %435 = arith.mulf %432, %434 : vector<8x32xf32>
    %cst_96 = arith.constant dense<0.000000e+00> : vector<8xf32>
    %436 = vector.multi_reduction <add>, %435, %cst_96 [1] : vector<8x32xf32> to vector<8xf32>
    %437 = vector.shape_cast %436 : vector<8xf32> to vector<8x1xf32>
    %cst_97 = arith.constant 3.200000e+01 : f32
    %438 = vector.broadcast %cst_97 : f32 to vector<8x1xf32>
    %439 = arith.divf %437, %438 : vector<8x1xf32>
    %440 = vector.broadcast %430 : vector<8x1xf32> to vector<8x32xf32>
    %441 = arith.subf %426, %440 : vector<8x32xf32>
    %cst_98 = arith.constant 9.99999974E-6 : f32
    %442 = vector.broadcast %cst_98 : f32 to vector<8x1xf32>
    %443 = arith.addf %439, %442 : vector<8x1xf32>
    %444 = math.rsqrt %443 : vector<8x1xf32>
    %445 = vector.broadcast %444 : vector<8x1xf32> to vector<8x32xf32>
    %446 = arith.mulf %441, %445 : vector<8x32xf32>
    %447 = vector.broadcast %5 : vector<1x32xf32> to vector<8x32xf32>
    %448 = arith.mulf %446, %447 : vector<8x32xf32>
    %449 = vector.broadcast %6 : vector<1x32xf32> to vector<8x32xf32>
    %450 = arith.addf %448, %449 : vector<8x32xf32>
    %451 = arith.truncf %450 : vector<8x32xf32> to vector<8x32xbf16>
    %452 = arith.index_cast %c6_i32 : i32 to index
    %c0_99 = arith.constant 0 : index
    %c0_100 = arith.constant 0 : index
    %453 = vector.load %arg7[%452, %c0_99, %c0_100] : memref<16x8x32xbf16, #tpu.memory_space<vmem>>, vector<1x8x32xbf16>
    %454 = vector.shape_cast %453 : vector<1x8x32xbf16> to vector<8x32xbf16>
    %455 = vector.shape_cast %451 : vector<8x32xbf16> to vector<1x8x32xbf16>
    tpu.vector_store %arg7[%452, %c0_99, %c0_100], %455 {strides = array<i32>} : memref<16x8x32xbf16, #tpu.memory_space<vmem>>, vector<1x8x32xbf16>,
    %c7_i32 = arith.constant 7 : i32
    %456 = arith.index_cast %c7_i32 : i32 to index
    %c0_101 = arith.constant 0 : index
    %c0_102 = arith.constant 0 : index
    %c0_103 = arith.constant 0 : index
    %457 = vector.load %arg2[%456, %c0_101, %c0_102, %c0_103] : memref<16x3x8x32xbf16, #tpu.memory_space<vmem>>, vector<1x3x8x32xbf16>
    %458 = vector.shape_cast %457 : vector<1x3x8x32xbf16> to vector<3x8x32xbf16>
    %459 = arith.extf %458 : vector<3x8x32xbf16> to vector<3x8x32xf32>
    %460 = arith.truncf %450 : vector<8x32xf32> to vector<8x32xbf16>
    %cst_104 = arith.constant dense<0.000000e+00> : vector<8x96xf32>
    %461 = tpu.matmul %460, %3, %cst_104 {dimension_numbers = #tpu.dot_dimension_numbers<[1], [0], [0], [1], [0, 0, 1, 1], [], []>} : vector<8x32xbf16>, vector<32x96xbf16>, vector<8x96xf32> -> vector<8x96xf32>
    %462 = vector.extract_strided_slice %459 {offsets = [0, 0, 0], sizes = [1, 8, 32], strides = [1, 1, 1]} : vector<3x8x32xf32> to vector<1x8x32xf32>
    %463 = vector.shape_cast %462 : vector<1x8x32xf32> to vector<8x32xf32>
    %464 = vector.extract_strided_slice %461 {offsets = [0, 0], sizes = [8, 32], strides = [1, 1]} : vector<8x96xf32> to vector<8x32xf32>
    %465 = arith.addf %463, %464 : vector<8x32xf32>
    %466 = arith.negf %465 : vector<8x32xf32>
    %467 = math.exp %466 : vector<8x32xf32>
    %cst_105 = arith.constant 1.000000e+00 : f32
    %468 = vector.broadcast %cst_105 : f32 to vector<8x32xf32>
    %469 = arith.addf %468, %467 : vector<8x32xf32>
    %470 = arith.divf %468, %469 : vector<8x32xf32>
    %471 = vector.extract_strided_slice %459 {offsets = [1, 0, 0], sizes = [1, 8, 32], strides = [1, 1, 1]} : vector<3x8x32xf32> to vector<1x8x32xf32>
    %472 = vector.shape_cast %471 : vector<1x8x32xf32> to vector<8x32xf32>
    %473 = vector.extract_strided_slice %461 {offsets = [0, 32], sizes = [8, 32], strides = [1, 1]} : vector<8x96xf32> to vector<8x32xf32>
    %474 = arith.addf %472, %473 : vector<8x32xf32>
    %475 = arith.negf %474 : vector<8x32xf32>
    %476 = math.exp %475 : vector<8x32xf32>
    %cst_106 = arith.constant 1.000000e+00 : f32
    %477 = vector.broadcast %cst_106 : f32 to vector<8x32xf32>
    %478 = arith.addf %477, %476 : vector<8x32xf32>
    %479 = arith.divf %477, %478 : vector<8x32xf32>
    %480 = vector.extract_strided_slice %459 {offsets = [2, 0, 0], sizes = [1, 8, 32], strides = [1, 1, 1]} : vector<3x8x32xf32> to vector<1x8x32xf32>
    %481 = vector.shape_cast %480 : vector<1x8x32xf32> to vector<8x32xf32>
    %482 = vector.extract_strided_slice %461 {offsets = [0, 64], sizes = [8, 32], strides = [1, 1]} : vector<8x96xf32> to vector<8x32xf32>
    %483 = vector.broadcast %4 : vector<1x32xf32> to vector<8x32xf32>
    %484 = arith.addf %482, %483 : vector<8x32xf32>
    %485 = arith.mulf %470, %484 : vector<8x32xf32>
    %486 = arith.addf %481, %485 : vector<8x32xf32>
    %487 = math.tanh %486 : vector<8x32xf32>
    %488 = arith.subf %450, %487 : vector<8x32xf32>
    %489 = arith.mulf %479, %488 : vector<8x32xf32>
    %490 = arith.addf %487, %489 : vector<8x32xf32>
    %cst_107 = arith.constant dense<0.000000e+00> : vector<8xf32>
    %491 = vector.multi_reduction <add>, %490, %cst_107 [1] : vector<8x32xf32> to vector<8xf32>
    %492 = vector.shape_cast %491 : vector<8xf32> to vector<8x1xf32>
    %cst_108 = arith.constant 3.200000e+01 : f32
    %493 = vector.broadcast %cst_108 : f32 to vector<8x1xf32>
    %494 = arith.divf %492, %493 : vector<8x1xf32>
    %495 = vector.broadcast %494 : vector<8x1xf32> to vector<8x32xf32>
    %496 = arith.subf %490, %495 : vector<8x32xf32>
    %497 = vector.broadcast %494 : vector<8x1xf32> to vector<8x32xf32>
    %498 = arith.subf %490, %497 : vector<8x32xf32>
    %499 = arith.mulf %496, %498 : vector<8x32xf32>
    %cst_109 = arith.constant dense<0.000000e+00> : vector<8xf32>
    %500 = vector.multi_reduction <add>, %499, %cst_109 [1] : vector<8x32xf32> to vector<8xf32>
    %501 = vector.shape_cast %500 : vector<8xf32> to vector<8x1xf32>
    %cst_110 = arith.constant 3.200000e+01 : f32
    %502 = vector.broadcast %cst_110 : f32 to vector<8x1xf32>
    %503 = arith.divf %501, %502 : vector<8x1xf32>
    %504 = vector.broadcast %494 : vector<8x1xf32> to vector<8x32xf32>
    %505 = arith.subf %490, %504 : vector<8x32xf32>
    %cst_111 = arith.constant 9.99999974E-6 : f32
    %506 = vector.broadcast %cst_111 : f32 to vector<8x1xf32>
    %507 = arith.addf %503, %506 : vector<8x1xf32>
    %508 = math.rsqrt %507 : vector<8x1xf32>
    %509 = vector.broadcast %508 : vector<8x1xf32> to vector<8x32xf32>
    %510 = arith.mulf %505, %509 : vector<8x32xf32>
    %511 = vector.broadcast %5 : vector<1x32xf32> to vector<8x32xf32>
    %512 = arith.mulf %510, %511 : vector<8x32xf32>
    %513 = vector.broadcast %6 : vector<1x32xf32> to vector<8x32xf32>
    %514 = arith.addf %512, %513 : vector<8x32xf32>
    %515 = arith.truncf %514 : vector<8x32xf32> to vector<8x32xbf16>
    %516 = arith.index_cast %c7_i32 : i32 to index
    %c0_112 = arith.constant 0 : index
    %c0_113 = arith.constant 0 : index
    %517 = vector.load %arg7[%516, %c0_112, %c0_113] : memref<16x8x32xbf16, #tpu.memory_space<vmem>>, vector<1x8x32xbf16>
    %518 = vector.shape_cast %517 : vector<1x8x32xbf16> to vector<8x32xbf16>
    %519 = vector.shape_cast %515 : vector<8x32xbf16> to vector<1x8x32xbf16>
    tpu.vector_store %arg7[%516, %c0_112, %c0_113], %519 {strides = array<i32>} : memref<16x8x32xbf16, #tpu.memory_space<vmem>>, vector<1x8x32xbf16>,
    %c8_i32 = arith.constant 8 : i32
    %520 = arith.index_cast %c8_i32 : i32 to index
    %c0_114 = arith.constant 0 : index
    %c0_115 = arith.constant 0 : index
    %c0_116 = arith.constant 0 : index
    %521 = vector.load %arg2[%520, %c0_114, %c0_115, %c0_116] : memref<16x3x8x32xbf16, #tpu.memory_space<vmem>>, vector<1x3x8x32xbf16>
    %522 = vector.shape_cast %521 : vector<1x3x8x32xbf16> to vector<3x8x32xbf16>
    %523 = arith.extf %522 : vector<3x8x32xbf16> to vector<3x8x32xf32>
    %524 = arith.truncf %514 : vector<8x32xf32> to vector<8x32xbf16>
    %cst_117 = arith.constant dense<0.000000e+00> : vector<8x96xf32>
    %525 = tpu.matmul %524, %3, %cst_117 {dimension_numbers = #tpu.dot_dimension_numbers<[1], [0], [0], [1], [0, 0, 1, 1], [], []>} : vector<8x32xbf16>, vector<32x96xbf16>, vector<8x96xf32> -> vector<8x96xf32>
    %526 = vector.extract_strided_slice %523 {offsets = [0, 0, 0], sizes = [1, 8, 32], strides = [1, 1, 1]} : vector<3x8x32xf32> to vector<1x8x32xf32>
    %527 = vector.shape_cast %526 : vector<1x8x32xf32> to vector<8x32xf32>
    %528 = vector.extract_strided_slice %525 {offsets = [0, 0], sizes = [8, 32], strides = [1, 1]} : vector<8x96xf32> to vector<8x32xf32>
    %529 = arith.addf %527, %528 : vector<8x32xf32>
    %530 = arith.negf %529 : vector<8x32xf32>
    %531 = math.exp %530 : vector<8x32xf32>
    %cst_118 = arith.constant 1.000000e+00 : f32
    %532 = vector.broadcast %cst_118 : f32 to vector<8x32xf32>
    %533 = arith.addf %532, %531 : vector<8x32xf32>
    %534 = arith.divf %532, %533 : vector<8x32xf32>
    %535 = vector.extract_strided_slice %523 {offsets = [1, 0, 0], sizes = [1, 8, 32], strides = [1, 1, 1]} : vector<3x8x32xf32> to vector<1x8x32xf32>
    %536 = vector.shape_cast %535 : vector<1x8x32xf32> to vector<8x32xf32>
    %537 = vector.extract_strided_slice %525 {offsets = [0, 32], sizes = [8, 32], strides = [1, 1]} : vector<8x96xf32> to vector<8x32xf32>
    %538 = arith.addf %536, %537 : vector<8x32xf32>
    %539 = arith.negf %538 : vector<8x32xf32>
    %540 = math.exp %539 : vector<8x32xf32>
    %cst_119 = arith.constant 1.000000e+00 : f32
    %541 = vector.broadcast %cst_119 : f32 to vector<8x32xf32>
    %542 = arith.addf %541, %540 : vector<8x32xf32>
    %543 = arith.divf %541, %542 : vector<8x32xf32>
    %544 = vector.extract_strided_slice %523 {offsets = [2, 0, 0], sizes = [1, 8, 32], strides = [1, 1, 1]} : vector<3x8x32xf32> to vector<1x8x32xf32>
    %545 = vector.shape_cast %544 : vector<1x8x32xf32> to vector<8x32xf32>
    %546 = vector.extract_strided_slice %525 {offsets = [0, 64], sizes = [8, 32], strides = [1, 1]} : vector<8x96xf32> to vector<8x32xf32>
    %547 = vector.broadcast %4 : vector<1x32xf32> to vector<8x32xf32>
    %548 = arith.addf %546, %547 : vector<8x32xf32>
    %549 = arith.mulf %534, %548 : vector<8x32xf32>
    %550 = arith.addf %545, %549 : vector<8x32xf32>
    %551 = math.tanh %550 : vector<8x32xf32>
    %552 = arith.subf %514, %551 : vector<8x32xf32>
    %553 = arith.mulf %543, %552 : vector<8x32xf32>
    %554 = arith.addf %551, %553 : vector<8x32xf32>
    %cst_120 = arith.constant dense<0.000000e+00> : vector<8xf32>
    %555 = vector.multi_reduction <add>, %554, %cst_120 [1] : vector<8x32xf32> to vector<8xf32>
    %556 = vector.shape_cast %555 : vector<8xf32> to vector<8x1xf32>
    %cst_121 = arith.constant 3.200000e+01 : f32
    %557 = vector.broadcast %cst_121 : f32 to vector<8x1xf32>
    %558 = arith.divf %556, %557 : vector<8x1xf32>
    %559 = vector.broadcast %558 : vector<8x1xf32> to vector<8x32xf32>
    %560 = arith.subf %554, %559 : vector<8x32xf32>
    %561 = vector.broadcast %558 : vector<8x1xf32> to vector<8x32xf32>
    %562 = arith.subf %554, %561 : vector<8x32xf32>
    %563 = arith.mulf %560, %562 : vector<8x32xf32>
    %cst_122 = arith.constant dense<0.000000e+00> : vector<8xf32>
    %564 = vector.multi_reduction <add>, %563, %cst_122 [1] : vector<8x32xf32> to vector<8xf32>
    %565 = vector.shape_cast %564 : vector<8xf32> to vector<8x1xf32>
    %cst_123 = arith.constant 3.200000e+01 : f32
    %566 = vector.broadcast %cst_123 : f32 to vector<8x1xf32>
    %567 = arith.divf %565, %566 : vector<8x1xf32>
    %568 = vector.broadcast %558 : vector<8x1xf32> to vector<8x32xf32>
    %569 = arith.subf %554, %568 : vector<8x32xf32>
    %cst_124 = arith.constant 9.99999974E-6 : f32
    %570 = vector.broadcast %cst_124 : f32 to vector<8x1xf32>
    %571 = arith.addf %567, %570 : vector<8x1xf32>
    %572 = math.rsqrt %571 : vector<8x1xf32>
    %573 = vector.broadcast %572 : vector<8x1xf32> to vector<8x32xf32>
    %574 = arith.mulf %569, %573 : vector<8x32xf32>
    %575 = vector.broadcast %5 : vector<1x32xf32> to vector<8x32xf32>
    %576 = arith.mulf %574, %575 : vector<8x32xf32>
    %577 = vector.broadcast %6 : vector<1x32xf32> to vector<8x32xf32>
    %578 = arith.addf %576, %577 : vector<8x32xf32>
    %579 = arith.truncf %578 : vector<8x32xf32> to vector<8x32xbf16>
    %580 = arith.index_cast %c8_i32 : i32 to index
    %c0_125 = arith.constant 0 : index
    %c0_126 = arith.constant 0 : index
    %581 = vector.load %arg7[%580, %c0_125, %c0_126] : memref<16x8x32xbf16, #tpu.memory_space<vmem>>, vector<1x8x32xbf16>
    %582 = vector.shape_cast %581 : vector<1x8x32xbf16> to vector<8x32xbf16>
    %583 = vector.shape_cast %579 : vector<8x32xbf16> to vector<1x8x32xbf16>
    tpu.vector_store %arg7[%580, %c0_125, %c0_126], %583 {strides = array<i32>} : memref<16x8x32xbf16, #tpu.memory_space<vmem>>, vector<1x8x32xbf16>,
    %c9_i32 = arith.constant 9 : i32
    %584 = arith.index_cast %c9_i32 : i32 to index
    %c0_127 = arith.constant 0 : index
    %c0_128 = arith.constant 0 : index
    %c0_129 = arith.constant 0 : index
    %585 = vector.load %arg2[%584, %c0_127, %c0_128, %c0_129] : memref<16x3x8x32xbf16, #tpu.memory_space<vmem>>, vector<1x3x8x32xbf16>
    %586 = vector.shape_cast %585 : vector<1x3x8x32xbf16> to vector<3x8x32xbf16>
    %587 = arith.extf %586 : vector<3x8x32xbf16> to vector<3x8x32xf32>
    %588 = arith.truncf %578 : vector<8x32xf32> to vector<8x32xbf16>
    %cst_130 = arith.constant dense<0.000000e+00> : vector<8x96xf32>
    %589 = tpu.matmul %588, %3, %cst_130 {dimension_numbers = #tpu.dot_dimension_numbers<[1], [0], [0], [1], [0, 0, 1, 1], [], []>} : vector<8x32xbf16>, vector<32x96xbf16>, vector<8x96xf32> -> vector<8x96xf32>
    %590 = vector.extract_strided_slice %587 {offsets = [0, 0, 0], sizes = [1, 8, 32], strides = [1, 1, 1]} : vector<3x8x32xf32> to vector<1x8x32xf32>
    %591 = vector.shape_cast %590 : vector<1x8x32xf32> to vector<8x32xf32>
    %592 = vector.extract_strided_slice %589 {offsets = [0, 0], sizes = [8, 32], strides = [1, 1]} : vector<8x96xf32> to vector<8x32xf32>
    %593 = arith.addf %591, %592 : vector<8x32xf32>
    %594 = arith.negf %593 : vector<8x32xf32>
    %595 = math.exp %594 : vector<8x32xf32>
    %cst_131 = arith.constant 1.000000e+00 : f32
    %596 = vector.broadcast %cst_131 : f32 to vector<8x32xf32>
    %597 = arith.addf %596, %595 : vector<8x32xf32>
    %598 = arith.divf %596, %597 : vector<8x32xf32>
    %599 = vector.extract_strided_slice %587 {offsets = [1, 0, 0], sizes = [1, 8, 32], strides = [1, 1, 1]} : vector<3x8x32xf32> to vector<1x8x32xf32>
    %600 = vector.shape_cast %599 : vector<1x8x32xf32> to vector<8x32xf32>
    %601 = vector.extract_strided_slice %589 {offsets = [0, 32], sizes = [8, 32], strides = [1, 1]} : vector<8x96xf32> to vector<8x32xf32>
    %602 = arith.addf %600, %601 : vector<8x32xf32>
    %603 = arith.negf %602 : vector<8x32xf32>
    %604 = math.exp %603 : vector<8x32xf32>
    %cst_132 = arith.constant 1.000000e+00 : f32
    %605 = vector.broadcast %cst_132 : f32 to vector<8x32xf32>
    %606 = arith.addf %605, %604 : vector<8x32xf32>
    %607 = arith.divf %605, %606 : vector<8x32xf32>
    %608 = vector.extract_strided_slice %587 {offsets = [2, 0, 0], sizes = [1, 8, 32], strides = [1, 1, 1]} : vector<3x8x32xf32> to vector<1x8x32xf32>
    %609 = vector.shape_cast %608 : vector<1x8x32xf32> to vector<8x32xf32>
    %610 = vector.extract_strided_slice %589 {offsets = [0, 64], sizes = [8, 32], strides = [1, 1]} : vector<8x96xf32> to vector<8x32xf32>
    %611 = vector.broadcast %4 : vector<1x32xf32> to vector<8x32xf32>
    %612 = arith.addf %610, %611 : vector<8x32xf32>
    %613 = arith.mulf %598, %612 : vector<8x32xf32>
    %614 = arith.addf %609, %613 : vector<8x32xf32>
    %615 = math.tanh %614 : vector<8x32xf32>
    %616 = arith.subf %578, %615 : vector<8x32xf32>
    %617 = arith.mulf %607, %616 : vector<8x32xf32>
    %618 = arith.addf %615, %617 : vector<8x32xf32>
    %cst_133 = arith.constant dense<0.000000e+00> : vector<8xf32>
    %619 = vector.multi_reduction <add>, %618, %cst_133 [1] : vector<8x32xf32> to vector<8xf32>
    %620 = vector.shape_cast %619 : vector<8xf32> to vector<8x1xf32>
    %cst_134 = arith.constant 3.200000e+01 : f32
    %621 = vector.broadcast %cst_134 : f32 to vector<8x1xf32>
    %622 = arith.divf %620, %621 : vector<8x1xf32>
    %623 = vector.broadcast %622 : vector<8x1xf32> to vector<8x32xf32>
    %624 = arith.subf %618, %623 : vector<8x32xf32>
    %625 = vector.broadcast %622 : vector<8x1xf32> to vector<8x32xf32>
    %626 = arith.subf %618, %625 : vector<8x32xf32>
    %627 = arith.mulf %624, %626 : vector<8x32xf32>
    %cst_135 = arith.constant dense<0.000000e+00> : vector<8xf32>
    %628 = vector.multi_reduction <add>, %627, %cst_135 [1] : vector<8x32xf32> to vector<8xf32>
    %629 = vector.shape_cast %628 : vector<8xf32> to vector<8x1xf32>
    %cst_136 = arith.constant 3.200000e+01 : f32
    %630 = vector.broadcast %cst_136 : f32 to vector<8x1xf32>
    %631 = arith.divf %629, %630 : vector<8x1xf32>
    %632 = vector.broadcast %622 : vector<8x1xf32> to vector<8x32xf32>
    %633 = arith.subf %618, %632 : vector<8x32xf32>
    %cst_137 = arith.constant 9.99999974E-6 : f32
    %634 = vector.broadcast %cst_137 : f32 to vector<8x1xf32>
    %635 = arith.addf %631, %634 : vector<8x1xf32>
    %636 = math.rsqrt %635 : vector<8x1xf32>
    %637 = vector.broadcast %636 : vector<8x1xf32> to vector<8x32xf32>
    %638 = arith.mulf %633, %637 : vector<8x32xf32>
    %639 = vector.broadcast %5 : vector<1x32xf32> to vector<8x32xf32>
    %640 = arith.mulf %638, %639 : vector<8x32xf32>
    %641 = vector.broadcast %6 : vector<1x32xf32> to vector<8x32xf32>
    %642 = arith.addf %640, %641 : vector<8x32xf32>
    %643 = arith.truncf %642 : vector<8x32xf32> to vector<8x32xbf16>
    %644 = arith.index_cast %c9_i32 : i32 to index
    %c0_138 = arith.constant 0 : index
    %c0_139 = arith.constant 0 : index
    %645 = vector.load %arg7[%644, %c0_138, %c0_139] : memref<16x8x32xbf16, #tpu.memory_space<vmem>>, vector<1x8x32xbf16>
    %646 = vector.shape_cast %645 : vector<1x8x32xbf16> to vector<8x32xbf16>
    %647 = vector.shape_cast %643 : vector<8x32xbf16> to vector<1x8x32xbf16>
    tpu.vector_store %arg7[%644, %c0_138, %c0_139], %647 {strides = array<i32>} : memref<16x8x32xbf16, #tpu.memory_space<vmem>>, vector<1x8x32xbf16>,
    %c10_i32 = arith.constant 10 : i32
    %648 = arith.index_cast %c10_i32 : i32 to index
    %c0_140 = arith.constant 0 : index
    %c0_141 = arith.constant 0 : index
    %c0_142 = arith.constant 0 : index
    %649 = vector.load %arg2[%648, %c0_140, %c0_141, %c0_142] : memref<16x3x8x32xbf16, #tpu.memory_space<vmem>>, vector<1x3x8x32xbf16>
    %650 = vector.shape_cast %649 : vector<1x3x8x32xbf16> to vector<3x8x32xbf16>
    %651 = arith.extf %650 : vector<3x8x32xbf16> to vector<3x8x32xf32>
    %652 = arith.truncf %642 : vector<8x32xf32> to vector<8x32xbf16>
    %cst_143 = arith.constant dense<0.000000e+00> : vector<8x96xf32>
    %653 = tpu.matmul %652, %3, %cst_143 {dimension_numbers = #tpu.dot_dimension_numbers<[1], [0], [0], [1], [0, 0, 1, 1], [], []>} : vector<8x32xbf16>, vector<32x96xbf16>, vector<8x96xf32> -> vector<8x96xf32>
    %654 = vector.extract_strided_slice %651 {offsets = [0, 0, 0], sizes = [1, 8, 32], strides = [1, 1, 1]} : vector<3x8x32xf32> to vector<1x8x32xf32>
    %655 = vector.shape_cast %654 : vector<1x8x32xf32> to vector<8x32xf32>
    %656 = vector.extract_strided_slice %653 {offsets = [0, 0], sizes = [8, 32], strides = [1, 1]} : vector<8x96xf32> to vector<8x32xf32>
    %657 = arith.addf %655, %656 : vector<8x32xf32>
    %658 = arith.negf %657 : vector<8x32xf32>
    %659 = math.exp %658 : vector<8x32xf32>
    %cst_144 = arith.constant 1.000000e+00 : f32
    %660 = vector.broadcast %cst_144 : f32 to vector<8x32xf32>
    %661 = arith.addf %660, %659 : vector<8x32xf32>
    %662 = arith.divf %660, %661 : vector<8x32xf32>
    %663 = vector.extract_strided_slice %651 {offsets = [1, 0, 0], sizes = [1, 8, 32], strides = [1, 1, 1]} : vector<3x8x32xf32> to vector<1x8x32xf32>
    %664 = vector.shape_cast %663 : vector<1x8x32xf32> to vector<8x32xf32>
    %665 = vector.extract_strided_slice %653 {offsets = [0, 32], sizes = [8, 32], strides = [1, 1]} : vector<8x96xf32> to vector<8x32xf32>
    %666 = arith.addf %664, %665 : vector<8x32xf32>
    %667 = arith.negf %666 : vector<8x32xf32>
    %668 = math.exp %667 : vector<8x32xf32>
    %cst_145 = arith.constant 1.000000e+00 : f32
    %669 = vector.broadcast %cst_145 : f32 to vector<8x32xf32>
    %670 = arith.addf %669, %668 : vector<8x32xf32>
    %671 = arith.divf %669, %670 : vector<8x32xf32>
    %672 = vector.extract_strided_slice %651 {offsets = [2, 0, 0], sizes = [1, 8, 32], strides = [1, 1, 1]} : vector<3x8x32xf32> to vector<1x8x32xf32>
    %673 = vector.shape_cast %672 : vector<1x8x32xf32> to vector<8x32xf32>
    %674 = vector.extract_strided_slice %653 {offsets = [0, 64], sizes = [8, 32], strides = [1, 1]} : vector<8x96xf32> to vector<8x32xf32>
    %675 = vector.broadcast %4 : vector<1x32xf32> to vector<8x32xf32>
    %676 = arith.addf %674, %675 : vector<8x32xf32>
    %677 = arith.mulf %662, %676 : vector<8x32xf32>
    %678 = arith.addf %673, %677 : vector<8x32xf32>
    %679 = math.tanh %678 : vector<8x32xf32>
    %680 = arith.subf %642, %679 : vector<8x32xf32>
    %681 = arith.mulf %671, %680 : vector<8x32xf32>
    %682 = arith.addf %679, %681 : vector<8x32xf32>
    %cst_146 = arith.constant dense<0.000000e+00> : vector<8xf32>
    %683 = vector.multi_reduction <add>, %682, %cst_146 [1] : vector<8x32xf32> to vector<8xf32>
    %684 = vector.shape_cast %683 : vector<8xf32> to vector<8x1xf32>
    %cst_147 = arith.constant 3.200000e+01 : f32
    %685 = vector.broadcast %cst_147 : f32 to vector<8x1xf32>
    %686 = arith.divf %684, %685 : vector<8x1xf32>
    %687 = vector.broadcast %686 : vector<8x1xf32> to vector<8x32xf32>
    %688 = arith.subf %682, %687 : vector<8x32xf32>
    %689 = vector.broadcast %686 : vector<8x1xf32> to vector<8x32xf32>
    %690 = arith.subf %682, %689 : vector<8x32xf32>
    %691 = arith.mulf %688, %690 : vector<8x32xf32>
    %cst_148 = arith.constant dense<0.000000e+00> : vector<8xf32>
    %692 = vector.multi_reduction <add>, %691, %cst_148 [1] : vector<8x32xf32> to vector<8xf32>
    %693 = vector.shape_cast %692 : vector<8xf32> to vector<8x1xf32>
    %cst_149 = arith.constant 3.200000e+01 : f32
    %694 = vector.broadcast %cst_149 : f32 to vector<8x1xf32>
    %695 = arith.divf %693, %694 : vector<8x1xf32>
    %696 = vector.broadcast %686 : vector<8x1xf32> to vector<8x32xf32>
    %697 = arith.subf %682, %696 : vector<8x32xf32>
    %cst_150 = arith.constant 9.99999974E-6 : f32
    %698 = vector.broadcast %cst_150 : f32 to vector<8x1xf32>
    %699 = arith.addf %695, %698 : vector<8x1xf32>
    %700 = math.rsqrt %699 : vector<8x1xf32>
    %701 = vector.broadcast %700 : vector<8x1xf32> to vector<8x32xf32>
    %702 = arith.mulf %697, %701 : vector<8x32xf32>
    %703 = vector.broadcast %5 : vector<1x32xf32> to vector<8x32xf32>
    %704 = arith.mulf %702, %703 : vector<8x32xf32>
    %705 = vector.broadcast %6 : vector<1x32xf32> to vector<8x32xf32>
    %706 = arith.addf %704, %705 : vector<8x32xf32>
    %707 = arith.truncf %706 : vector<8x32xf32> to vector<8x32xbf16>
    %708 = arith.index_cast %c10_i32 : i32 to index
    %c0_151 = arith.constant 0 : index
    %c0_152 = arith.constant 0 : index
    %709 = vector.load %arg7[%708, %c0_151, %c0_152] : memref<16x8x32xbf16, #tpu.memory_space<vmem>>, vector<1x8x32xbf16>
    %710 = vector.shape_cast %709 : vector<1x8x32xbf16> to vector<8x32xbf16>
    %711 = vector.shape_cast %707 : vector<8x32xbf16> to vector<1x8x32xbf16>
    tpu.vector_store %arg7[%708, %c0_151, %c0_152], %711 {strides = array<i32>} : memref<16x8x32xbf16, #tpu.memory_space<vmem>>, vector<1x8x32xbf16>,
    %c11_i32 = arith.constant 11 : i32
    %712 = arith.index_cast %c11_i32 : i32 to index
    %c0_153 = arith.constant 0 : index
    %c0_154 = arith.constant 0 : index
    %c0_155 = arith.constant 0 : index
    %713 = vector.load %arg2[%712, %c0_153, %c0_154, %c0_155] : memref<16x3x8x32xbf16, #tpu.memory_space<vmem>>, vector<1x3x8x32xbf16>
    %714 = vector.shape_cast %713 : vector<1x3x8x32xbf16> to vector<3x8x32xbf16>
    %715 = arith.extf %714 : vector<3x8x32xbf16> to vector<3x8x32xf32>
    %716 = arith.truncf %706 : vector<8x32xf32> to vector<8x32xbf16>
    %cst_156 = arith.constant dense<0.000000e+00> : vector<8x96xf32>
    %717 = tpu.matmul %716, %3, %cst_156 {dimension_numbers = #tpu.dot_dimension_numbers<[1], [0], [0], [1], [0, 0, 1, 1], [], []>} : vector<8x32xbf16>, vector<32x96xbf16>, vector<8x96xf32> -> vector<8x96xf32>
    %718 = vector.extract_strided_slice %715 {offsets = [0, 0, 0], sizes = [1, 8, 32], strides = [1, 1, 1]} : vector<3x8x32xf32> to vector<1x8x32xf32>
    %719 = vector.shape_cast %718 : vector<1x8x32xf32> to vector<8x32xf32>
    %720 = vector.extract_strided_slice %717 {offsets = [0, 0], sizes = [8, 32], strides = [1, 1]} : vector<8x96xf32> to vector<8x32xf32>
    %721 = arith.addf %719, %720 : vector<8x32xf32>
    %722 = arith.negf %721 : vector<8x32xf32>
    %723 = math.exp %722 : vector<8x32xf32>
    %cst_157 = arith.constant 1.000000e+00 : f32
    %724 = vector.broadcast %cst_157 : f32 to vector<8x32xf32>
    %725 = arith.addf %724, %723 : vector<8x32xf32>
    %726 = arith.divf %724, %725 : vector<8x32xf32>
    %727 = vector.extract_strided_slice %715 {offsets = [1, 0, 0], sizes = [1, 8, 32], strides = [1, 1, 1]} : vector<3x8x32xf32> to vector<1x8x32xf32>
    %728 = vector.shape_cast %727 : vector<1x8x32xf32> to vector<8x32xf32>
    %729 = vector.extract_strided_slice %717 {offsets = [0, 32], sizes = [8, 32], strides = [1, 1]} : vector<8x96xf32> to vector<8x32xf32>
    %730 = arith.addf %728, %729 : vector<8x32xf32>
    %731 = arith.negf %730 : vector<8x32xf32>
    %732 = math.exp %731 : vector<8x32xf32>
    %cst_158 = arith.constant 1.000000e+00 : f32
    %733 = vector.broadcast %cst_158 : f32 to vector<8x32xf32>
    %734 = arith.addf %733, %732 : vector<8x32xf32>
    %735 = arith.divf %733, %734 : vector<8x32xf32>
    %736 = vector.extract_strided_slice %715 {offsets = [2, 0, 0], sizes = [1, 8, 32], strides = [1, 1, 1]} : vector<3x8x32xf32> to vector<1x8x32xf32>
    %737 = vector.shape_cast %736 : vector<1x8x32xf32> to vector<8x32xf32>
    %738 = vector.extract_strided_slice %717 {offsets = [0, 64], sizes = [8, 32], strides = [1, 1]} : vector<8x96xf32> to vector<8x32xf32>
    %739 = vector.broadcast %4 : vector<1x32xf32> to vector<8x32xf32>
    %740 = arith.addf %738, %739 : vector<8x32xf32>
    %741 = arith.mulf %726, %740 : vector<8x32xf32>
    %742 = arith.addf %737, %741 : vector<8x32xf32>
    %743 = math.tanh %742 : vector<8x32xf32>
    %744 = arith.subf %706, %743 : vector<8x32xf32>
    %745 = arith.mulf %735, %744 : vector<8x32xf32>
    %746 = arith.addf %743, %745 : vector<8x32xf32>
    %cst_159 = arith.constant dense<0.000000e+00> : vector<8xf32>
    %747 = vector.multi_reduction <add>, %746, %cst_159 [1] : vector<8x32xf32> to vector<8xf32>
    %748 = vector.shape_cast %747 : vector<8xf32> to vector<8x1xf32>
    %cst_160 = arith.constant 3.200000e+01 : f32
    %749 = vector.broadcast %cst_160 : f32 to vector<8x1xf32>
    %750 = arith.divf %748, %749 : vector<8x1xf32>
    %751 = vector.broadcast %750 : vector<8x1xf32> to vector<8x32xf32>
    %752 = arith.subf %746, %751 : vector<8x32xf32>
    %753 = vector.broadcast %750 : vector<8x1xf32> to vector<8x32xf32>
    %754 = arith.subf %746, %753 : vector<8x32xf32>
    %755 = arith.mulf %752, %754 : vector<8x32xf32>
    %cst_161 = arith.constant dense<0.000000e+00> : vector<8xf32>
    %756 = vector.multi_reduction <add>, %755, %cst_161 [1] : vector<8x32xf32> to vector<8xf32>
    %757 = vector.shape_cast %756 : vector<8xf32> to vector<8x1xf32>
    %cst_162 = arith.constant 3.200000e+01 : f32
    %758 = vector.broadcast %cst_162 : f32 to vector<8x1xf32>
    %759 = arith.divf %757, %758 : vector<8x1xf32>
    %760 = vector.broadcast %750 : vector<8x1xf32> to vector<8x32xf32>
    %761 = arith.subf %746, %760 : vector<8x32xf32>
    %cst_163 = arith.constant 9.99999974E-6 : f32
    %762 = vector.broadcast %cst_163 : f32 to vector<8x1xf32>
    %763 = arith.addf %759, %762 : vector<8x1xf32>
    %764 = math.rsqrt %763 : vector<8x1xf32>
    %765 = vector.broadcast %764 : vector<8x1xf32> to vector<8x32xf32>
    %766 = arith.mulf %761, %765 : vector<8x32xf32>
    %767 = vector.broadcast %5 : vector<1x32xf32> to vector<8x32xf32>
    %768 = arith.mulf %766, %767 : vector<8x32xf32>
    %769 = vector.broadcast %6 : vector<1x32xf32> to vector<8x32xf32>
    %770 = arith.addf %768, %769 : vector<8x32xf32>
    %771 = arith.truncf %770 : vector<8x32xf32> to vector<8x32xbf16>
    %772 = arith.index_cast %c11_i32 : i32 to index
    %c0_164 = arith.constant 0 : index
    %c0_165 = arith.constant 0 : index
    %773 = vector.load %arg7[%772, %c0_164, %c0_165] : memref<16x8x32xbf16, #tpu.memory_space<vmem>>, vector<1x8x32xbf16>
    %774 = vector.shape_cast %773 : vector<1x8x32xbf16> to vector<8x32xbf16>
    %775 = vector.shape_cast %771 : vector<8x32xbf16> to vector<1x8x32xbf16>
    tpu.vector_store %arg7[%772, %c0_164, %c0_165], %775 {strides = array<i32>} : memref<16x8x32xbf16, #tpu.memory_space<vmem>>, vector<1x8x32xbf16>,
    %c12_i32 = arith.constant 12 : i32
    %776 = arith.index_cast %c12_i32 : i32 to index
    %c0_166 = arith.constant 0 : index
    %c0_167 = arith.constant 0 : index
    %c0_168 = arith.constant 0 : index
    %777 = vector.load %arg2[%776, %c0_166, %c0_167, %c0_168] : memref<16x3x8x32xbf16, #tpu.memory_space<vmem>>, vector<1x3x8x32xbf16>
    %778 = vector.shape_cast %777 : vector<1x3x8x32xbf16> to vector<3x8x32xbf16>
    %779 = arith.extf %778 : vector<3x8x32xbf16> to vector<3x8x32xf32>
    %780 = arith.truncf %770 : vector<8x32xf32> to vector<8x32xbf16>
    %cst_169 = arith.constant dense<0.000000e+00> : vector<8x96xf32>
    %781 = tpu.matmul %780, %3, %cst_169 {dimension_numbers = #tpu.dot_dimension_numbers<[1], [0], [0], [1], [0, 0, 1, 1], [], []>} : vector<8x32xbf16>, vector<32x96xbf16>, vector<8x96xf32> -> vector<8x96xf32>
    %782 = vector.extract_strided_slice %779 {offsets = [0, 0, 0], sizes = [1, 8, 32], strides = [1, 1, 1]} : vector<3x8x32xf32> to vector<1x8x32xf32>
    %783 = vector.shape_cast %782 : vector<1x8x32xf32> to vector<8x32xf32>
    %784 = vector.extract_strided_slice %781 {offsets = [0, 0], sizes = [8, 32], strides = [1, 1]} : vector<8x96xf32> to vector<8x32xf32>
    %785 = arith.addf %783, %784 : vector<8x32xf32>
    %786 = arith.negf %785 : vector<8x32xf32>
    %787 = math.exp %786 : vector<8x32xf32>
    %cst_170 = arith.constant 1.000000e+00 : f32
    %788 = vector.broadcast %cst_170 : f32 to vector<8x32xf32>
    %789 = arith.addf %788, %787 : vector<8x32xf32>
    %790 = arith.divf %788, %789 : vector<8x32xf32>
    %791 = vector.extract_strided_slice %779 {offsets = [1, 0, 0], sizes = [1, 8, 32], strides = [1, 1, 1]} : vector<3x8x32xf32> to vector<1x8x32xf32>
    %792 = vector.shape_cast %791 : vector<1x8x32xf32> to vector<8x32xf32>
    %793 = vector.extract_strided_slice %781 {offsets = [0, 32], sizes = [8, 32], strides = [1, 1]} : vector<8x96xf32> to vector<8x32xf32>
    %794 = arith.addf %792, %793 : vector<8x32xf32>
    %795 = arith.negf %794 : vector<8x32xf32>
    %796 = math.exp %795 : vector<8x32xf32>
    %cst_171 = arith.constant 1.000000e+00 : f32
    %797 = vector.broadcast %cst_171 : f32 to vector<8x32xf32>
    %798 = arith.addf %797, %796 : vector<8x32xf32>
    %799 = arith.divf %797, %798 : vector<8x32xf32>
    %800 = vector.extract_strided_slice %779 {offsets = [2, 0, 0], sizes = [1, 8, 32], strides = [1, 1, 1]} : vector<3x8x32xf32> to vector<1x8x32xf32>
    %801 = vector.shape_cast %800 : vector<1x8x32xf32> to vector<8x32xf32>
    %802 = vector.extract_strided_slice %781 {offsets = [0, 64], sizes = [8, 32], strides = [1, 1]} : vector<8x96xf32> to vector<8x32xf32>
    %803 = vector.broadcast %4 : vector<1x32xf32> to vector<8x32xf32>
    %804 = arith.addf %802, %803 : vector<8x32xf32>
    %805 = arith.mulf %790, %804 : vector<8x32xf32>
    %806 = arith.addf %801, %805 : vector<8x32xf32>
    %807 = math.tanh %806 : vector<8x32xf32>
    %808 = arith.subf %770, %807 : vector<8x32xf32>
    %809 = arith.mulf %799, %808 : vector<8x32xf32>
    %810 = arith.addf %807, %809 : vector<8x32xf32>
    %cst_172 = arith.constant dense<0.000000e+00> : vector<8xf32>
    %811 = vector.multi_reduction <add>, %810, %cst_172 [1] : vector<8x32xf32> to vector<8xf32>
    %812 = vector.shape_cast %811 : vector<8xf32> to vector<8x1xf32>
    %cst_173 = arith.constant 3.200000e+01 : f32
    %813 = vector.broadcast %cst_173 : f32 to vector<8x1xf32>
    %814 = arith.divf %812, %813 : vector<8x1xf32>
    %815 = vector.broadcast %814 : vector<8x1xf32> to vector<8x32xf32>
    %816 = arith.subf %810, %815 : vector<8x32xf32>
    %817 = vector.broadcast %814 : vector<8x1xf32> to vector<8x32xf32>
    %818 = arith.subf %810, %817 : vector<8x32xf32>
    %819 = arith.mulf %816, %818 : vector<8x32xf32>
    %cst_174 = arith.constant dense<0.000000e+00> : vector<8xf32>
    %820 = vector.multi_reduction <add>, %819, %cst_174 [1] : vector<8x32xf32> to vector<8xf32>
    %821 = vector.shape_cast %820 : vector<8xf32> to vector<8x1xf32>
    %cst_175 = arith.constant 3.200000e+01 : f32
    %822 = vector.broadcast %cst_175 : f32 to vector<8x1xf32>
    %823 = arith.divf %821, %822 : vector<8x1xf32>
    %824 = vector.broadcast %814 : vector<8x1xf32> to vector<8x32xf32>
    %825 = arith.subf %810, %824 : vector<8x32xf32>
    %cst_176 = arith.constant 9.99999974E-6 : f32
    %826 = vector.broadcast %cst_176 : f32 to vector<8x1xf32>
    %827 = arith.addf %823, %826 : vector<8x1xf32>
    %828 = math.rsqrt %827 : vector<8x1xf32>
    %829 = vector.broadcast %828 : vector<8x1xf32> to vector<8x32xf32>
    %830 = arith.mulf %825, %829 : vector<8x32xf32>
    %831 = vector.broadcast %5 : vector<1x32xf32> to vector<8x32xf32>
    %832 = arith.mulf %830, %831 : vector<8x32xf32>
    %833 = vector.broadcast %6 : vector<1x32xf32> to vector<8x32xf32>
    %834 = arith.addf %832, %833 : vector<8x32xf32>
    %835 = arith.truncf %834 : vector<8x32xf32> to vector<8x32xbf16>
    %836 = arith.index_cast %c12_i32 : i32 to index
    %c0_177 = arith.constant 0 : index
    %c0_178 = arith.constant 0 : index
    %837 = vector.load %arg7[%836, %c0_177, %c0_178] : memref<16x8x32xbf16, #tpu.memory_space<vmem>>, vector<1x8x32xbf16>
    %838 = vector.shape_cast %837 : vector<1x8x32xbf16> to vector<8x32xbf16>
    %839 = vector.shape_cast %835 : vector<8x32xbf16> to vector<1x8x32xbf16>
    tpu.vector_store %arg7[%836, %c0_177, %c0_178], %839 {strides = array<i32>} : memref<16x8x32xbf16, #tpu.memory_space<vmem>>, vector<1x8x32xbf16>,
    %c13_i32 = arith.constant 13 : i32
    %840 = arith.index_cast %c13_i32 : i32 to index
    %c0_179 = arith.constant 0 : index
    %c0_180 = arith.constant 0 : index
    %c0_181 = arith.constant 0 : index
    %841 = vector.load %arg2[%840, %c0_179, %c0_180, %c0_181] : memref<16x3x8x32xbf16, #tpu.memory_space<vmem>>, vector<1x3x8x32xbf16>
    %842 = vector.shape_cast %841 : vector<1x3x8x32xbf16> to vector<3x8x32xbf16>
    %843 = arith.extf %842 : vector<3x8x32xbf16> to vector<3x8x32xf32>
    %844 = arith.truncf %834 : vector<8x32xf32> to vector<8x32xbf16>
    %cst_182 = arith.constant dense<0.000000e+00> : vector<8x96xf32>
    %845 = tpu.matmul %844, %3, %cst_182 {dimension_numbers = #tpu.dot_dimension_numbers<[1], [0], [0], [1], [0, 0, 1, 1], [], []>} : vector<8x32xbf16>, vector<32x96xbf16>, vector<8x96xf32> -> vector<8x96xf32>
    %846 = vector.extract_strided_slice %843 {offsets = [0, 0, 0], sizes = [1, 8, 32], strides = [1, 1, 1]} : vector<3x8x32xf32> to vector<1x8x32xf32>
    %847 = vector.shape_cast %846 : vector<1x8x32xf32> to vector<8x32xf32>
    %848 = vector.extract_strided_slice %845 {offsets = [0, 0], sizes = [8, 32], strides = [1, 1]} : vector<8x96xf32> to vector<8x32xf32>
    %849 = arith.addf %847, %848 : vector<8x32xf32>
    %850 = arith.negf %849 : vector<8x32xf32>
    %851 = math.exp %850 : vector<8x32xf32>
    %cst_183 = arith.constant 1.000000e+00 : f32
    %852 = vector.broadcast %cst_183 : f32 to vector<8x32xf32>
    %853 = arith.addf %852, %851 : vector<8x32xf32>
    %854 = arith.divf %852, %853 : vector<8x32xf32>
    %855 = vector.extract_strided_slice %843 {offsets = [1, 0, 0], sizes = [1, 8, 32], strides = [1, 1, 1]} : vector<3x8x32xf32> to vector<1x8x32xf32>
    %856 = vector.shape_cast %855 : vector<1x8x32xf32> to vector<8x32xf32>
    %857 = vector.extract_strided_slice %845 {offsets = [0, 32], sizes = [8, 32], strides = [1, 1]} : vector<8x96xf32> to vector<8x32xf32>
    %858 = arith.addf %856, %857 : vector<8x32xf32>
    %859 = arith.negf %858 : vector<8x32xf32>
    %860 = math.exp %859 : vector<8x32xf32>
    %cst_184 = arith.constant 1.000000e+00 : f32
    %861 = vector.broadcast %cst_184 : f32 to vector<8x32xf32>
    %862 = arith.addf %861, %860 : vector<8x32xf32>
    %863 = arith.divf %861, %862 : vector<8x32xf32>
    %864 = vector.extract_strided_slice %843 {offsets = [2, 0, 0], sizes = [1, 8, 32], strides = [1, 1, 1]} : vector<3x8x32xf32> to vector<1x8x32xf32>
    %865 = vector.shape_cast %864 : vector<1x8x32xf32> to vector<8x32xf32>
    %866 = vector.extract_strided_slice %845 {offsets = [0, 64], sizes = [8, 32], strides = [1, 1]} : vector<8x96xf32> to vector<8x32xf32>
    %867 = vector.broadcast %4 : vector<1x32xf32> to vector<8x32xf32>
    %868 = arith.addf %866, %867 : vector<8x32xf32>
    %869 = arith.mulf %854, %868 : vector<8x32xf32>
    %870 = arith.addf %865, %869 : vector<8x32xf32>
    %871 = math.tanh %870 : vector<8x32xf32>
    %872 = arith.subf %834, %871 : vector<8x32xf32>
    %873 = arith.mulf %863, %872 : vector<8x32xf32>
    %874 = arith.addf %871, %873 : vector<8x32xf32>
    %cst_185 = arith.constant dense<0.000000e+00> : vector<8xf32>
    %875 = vector.multi_reduction <add>, %874, %cst_185 [1] : vector<8x32xf32> to vector<8xf32>
    %876 = vector.shape_cast %875 : vector<8xf32> to vector<8x1xf32>
    %cst_186 = arith.constant 3.200000e+01 : f32
    %877 = vector.broadcast %cst_186 : f32 to vector<8x1xf32>
    %878 = arith.divf %876, %877 : vector<8x1xf32>
    %879 = vector.broadcast %878 : vector<8x1xf32> to vector<8x32xf32>
    %880 = arith.subf %874, %879 : vector<8x32xf32>
    %881 = vector.broadcast %878 : vector<8x1xf32> to vector<8x32xf32>
    %882 = arith.subf %874, %881 : vector<8x32xf32>
    %883 = arith.mulf %880, %882 : vector<8x32xf32>
    %cst_187 = arith.constant dense<0.000000e+00> : vector<8xf32>
    %884 = vector.multi_reduction <add>, %883, %cst_187 [1] : vector<8x32xf32> to vector<8xf32>
    %885 = vector.shape_cast %884 : vector<8xf32> to vector<8x1xf32>
    %cst_188 = arith.constant 3.200000e+01 : f32
    %886 = vector.broadcast %cst_188 : f32 to vector<8x1xf32>
    %887 = arith.divf %885, %886 : vector<8x1xf32>
    %888 = vector.broadcast %878 : vector<8x1xf32> to vector<8x32xf32>
    %889 = arith.subf %874, %888 : vector<8x32xf32>
    %cst_189 = arith.constant 9.99999974E-6 : f32
    %890 = vector.broadcast %cst_189 : f32 to vector<8x1xf32>
    %891 = arith.addf %887, %890 : vector<8x1xf32>
    %892 = math.rsqrt %891 : vector<8x1xf32>
    %893 = vector.broadcast %892 : vector<8x1xf32> to vector<8x32xf32>
    %894 = arith.mulf %889, %893 : vector<8x32xf32>
    %895 = vector.broadcast %5 : vector<1x32xf32> to vector<8x32xf32>
    %896 = arith.mulf %894, %895 : vector<8x32xf32>
    %897 = vector.broadcast %6 : vector<1x32xf32> to vector<8x32xf32>
    %898 = arith.addf %896, %897 : vector<8x32xf32>
    %899 = arith.truncf %898 : vector<8x32xf32> to vector<8x32xbf16>
    %900 = arith.index_cast %c13_i32 : i32 to index
    %c0_190 = arith.constant 0 : index
    %c0_191 = arith.constant 0 : index
    %901 = vector.load %arg7[%900, %c0_190, %c0_191] : memref<16x8x32xbf16, #tpu.memory_space<vmem>>, vector<1x8x32xbf16>
    %902 = vector.shape_cast %901 : vector<1x8x32xbf16> to vector<8x32xbf16>
    %903 = vector.shape_cast %899 : vector<8x32xbf16> to vector<1x8x32xbf16>
    tpu.vector_store %arg7[%900, %c0_190, %c0_191], %903 {strides = array<i32>} : memref<16x8x32xbf16, #tpu.memory_space<vmem>>, vector<1x8x32xbf16>,
    %c14_i32 = arith.constant 14 : i32
    %904 = arith.index_cast %c14_i32 : i32 to index
    %c0_192 = arith.constant 0 : index
    %c0_193 = arith.constant 0 : index
    %c0_194 = arith.constant 0 : index
    %905 = vector.load %arg2[%904, %c0_192, %c0_193, %c0_194] : memref<16x3x8x32xbf16, #tpu.memory_space<vmem>>, vector<1x3x8x32xbf16>
    %906 = vector.shape_cast %905 : vector<1x3x8x32xbf16> to vector<3x8x32xbf16>
    %907 = arith.extf %906 : vector<3x8x32xbf16> to vector<3x8x32xf32>
    %908 = arith.truncf %898 : vector<8x32xf32> to vector<8x32xbf16>
    %cst_195 = arith.constant dense<0.000000e+00> : vector<8x96xf32>
    %909 = tpu.matmul %908, %3, %cst_195 {dimension_numbers = #tpu.dot_dimension_numbers<[1], [0], [0], [1], [0, 0, 1, 1], [], []>} : vector<8x32xbf16>, vector<32x96xbf16>, vector<8x96xf32> -> vector<8x96xf32>
    %910 = vector.extract_strided_slice %907 {offsets = [0, 0, 0], sizes = [1, 8, 32], strides = [1, 1, 1]} : vector<3x8x32xf32> to vector<1x8x32xf32>
    %911 = vector.shape_cast %910 : vector<1x8x32xf32> to vector<8x32xf32>
    %912 = vector.extract_strided_slice %909 {offsets = [0, 0], sizes = [8, 32], strides = [1, 1]} : vector<8x96xf32> to vector<8x32xf32>
    %913 = arith.addf %911, %912 : vector<8x32xf32>
    %914 = arith.negf %913 : vector<8x32xf32>
    %915 = math.exp %914 : vector<8x32xf32>
    %cst_196 = arith.constant 1.000000e+00 : f32
    %916 = vector.broadcast %cst_196 : f32 to vector<8x32xf32>
    %917 = arith.addf %916, %915 : vector<8x32xf32>
    %918 = arith.divf %916, %917 : vector<8x32xf32>
    %919 = vector.extract_strided_slice %907 {offsets = [1, 0, 0], sizes = [1, 8, 32], strides = [1, 1, 1]} : vector<3x8x32xf32> to vector<1x8x32xf32>
    %920 = vector.shape_cast %919 : vector<1x8x32xf32> to vector<8x32xf32>
    %921 = vector.extract_strided_slice %909 {offsets = [0, 32], sizes = [8, 32], strides = [1, 1]} : vector<8x96xf32> to vector<8x32xf32>
    %922 = arith.addf %920, %921 : vector<8x32xf32>
    %923 = arith.negf %922 : vector<8x32xf32>
    %924 = math.exp %923 : vector<8x32xf32>
    %cst_197 = arith.constant 1.000000e+00 : f32
    %925 = vector.broadcast %cst_197 : f32 to vector<8x32xf32>
    %926 = arith.addf %925, %924 : vector<8x32xf32>
    %927 = arith.divf %925, %926 : vector<8x32xf32>
    %928 = vector.extract_strided_slice %907 {offsets = [2, 0, 0], sizes = [1, 8, 32], strides = [1, 1, 1]} : vector<3x8x32xf32> to vector<1x8x32xf32>
    %929 = vector.shape_cast %928 : vector<1x8x32xf32> to vector<8x32xf32>
    %930 = vector.extract_strided_slice %909 {offsets = [0, 64], sizes = [8, 32], strides = [1, 1]} : vector<8x96xf32> to vector<8x32xf32>
    %931 = vector.broadcast %4 : vector<1x32xf32> to vector<8x32xf32>
    %932 = arith.addf %930, %931 : vector<8x32xf32>
    %933 = arith.mulf %918, %932 : vector<8x32xf32>
    %934 = arith.addf %929, %933 : vector<8x32xf32>
    %935 = math.tanh %934 : vector<8x32xf32>
    %936 = arith.subf %898, %935 : vector<8x32xf32>
    %937 = arith.mulf %927, %936 : vector<8x32xf32>
    %938 = arith.addf %935, %937 : vector<8x32xf32>
    %cst_198 = arith.constant dense<0.000000e+00> : vector<8xf32>
    %939 = vector.multi_reduction <add>, %938, %cst_198 [1] : vector<8x32xf32> to vector<8xf32>
    %940 = vector.shape_cast %939 : vector<8xf32> to vector<8x1xf32>
    %cst_199 = arith.constant 3.200000e+01 : f32
    %941 = vector.broadcast %cst_199 : f32 to vector<8x1xf32>
    %942 = arith.divf %940, %941 : vector<8x1xf32>
    %943 = vector.broadcast %942 : vector<8x1xf32> to vector<8x32xf32>
    %944 = arith.subf %938, %943 : vector<8x32xf32>
    %945 = vector.broadcast %942 : vector<8x1xf32> to vector<8x32xf32>
    %946 = arith.subf %938, %945 : vector<8x32xf32>
    %947 = arith.mulf %944, %946 : vector<8x32xf32>
    %cst_200 = arith.constant dense<0.000000e+00> : vector<8xf32>
    %948 = vector.multi_reduction <add>, %947, %cst_200 [1] : vector<8x32xf32> to vector<8xf32>
    %949 = vector.shape_cast %948 : vector<8xf32> to vector<8x1xf32>
    %cst_201 = arith.constant 3.200000e+01 : f32
    %950 = vector.broadcast %cst_201 : f32 to vector<8x1xf32>
    %951 = arith.divf %949, %950 : vector<8x1xf32>
    %952 = vector.broadcast %942 : vector<8x1xf32> to vector<8x32xf32>
    %953 = arith.subf %938, %952 : vector<8x32xf32>
    %cst_202 = arith.constant 9.99999974E-6 : f32
    %954 = vector.broadcast %cst_202 : f32 to vector<8x1xf32>
    %955 = arith.addf %951, %954 : vector<8x1xf32>
    %956 = math.rsqrt %955 : vector<8x1xf32>
    %957 = vector.broadcast %956 : vector<8x1xf32> to vector<8x32xf32>
    %958 = arith.mulf %953, %957 : vector<8x32xf32>
    %959 = vector.broadcast %5 : vector<1x32xf32> to vector<8x32xf32>
    %960 = arith.mulf %958, %959 : vector<8x32xf32>
    %961 = vector.broadcast %6 : vector<1x32xf32> to vector<8x32xf32>
    %962 = arith.addf %960, %961 : vector<8x32xf32>
    %963 = arith.truncf %962 : vector<8x32xf32> to vector<8x32xbf16>
    %964 = arith.index_cast %c14_i32 : i32 to index
    %c0_203 = arith.constant 0 : index
    %c0_204 = arith.constant 0 : index
    %965 = vector.load %arg7[%964, %c0_203, %c0_204] : memref<16x8x32xbf16, #tpu.memory_space<vmem>>, vector<1x8x32xbf16>
    %966 = vector.shape_cast %965 : vector<1x8x32xbf16> to vector<8x32xbf16>
    %967 = vector.shape_cast %963 : vector<8x32xbf16> to vector<1x8x32xbf16>
    tpu.vector_store %arg7[%964, %c0_203, %c0_204], %967 {strides = array<i32>} : memref<16x8x32xbf16, #tpu.memory_space<vmem>>, vector<1x8x32xbf16>,
    %c15_i32 = arith.constant 15 : i32
    %968 = arith.index_cast %c15_i32 : i32 to index
    %c0_205 = arith.constant 0 : index
    %c0_206 = arith.constant 0 : index
    %c0_207 = arith.constant 0 : index
    %969 = vector.load %arg2[%968, %c0_205, %c0_206, %c0_207] : memref<16x3x8x32xbf16, #tpu.memory_space<vmem>>, vector<1x3x8x32xbf16>
    %970 = vector.shape_cast %969 : vector<1x3x8x32xbf16> to vector<3x8x32xbf16>
    %971 = arith.extf %970 : vector<3x8x32xbf16> to vector<3x8x32xf32>
    %972 = arith.truncf %962 : vector<8x32xf32> to vector<8x32xbf16>
    %cst_208 = arith.constant dense<0.000000e+00> : vector<8x96xf32>
    %973 = tpu.matmul %972, %3, %cst_208 {dimension_numbers = #tpu.dot_dimension_numbers<[1], [0], [0], [1], [0, 0, 1, 1], [], []>} : vector<8x32xbf16>, vector<32x96xbf16>, vector<8x96xf32> -> vector<8x96xf32>
    %974 = vector.extract_strided_slice %971 {offsets = [0, 0, 0], sizes = [1, 8, 32], strides = [1, 1, 1]} : vector<3x8x32xf32> to vector<1x8x32xf32>
    %975 = vector.shape_cast %974 : vector<1x8x32xf32> to vector<8x32xf32>
    %976 = vector.extract_strided_slice %973 {offsets = [0, 0], sizes = [8, 32], strides = [1, 1]} : vector<8x96xf32> to vector<8x32xf32>
    %977 = arith.addf %975, %976 : vector<8x32xf32>
    %978 = arith.negf %977 : vector<8x32xf32>
    %979 = math.exp %978 : vector<8x32xf32>
    %cst_209 = arith.constant 1.000000e+00 : f32
    %980 = vector.broadcast %cst_209 : f32 to vector<8x32xf32>
    %981 = arith.addf %980, %979 : vector<8x32xf32>
    %982 = arith.divf %980, %981 : vector<8x32xf32>
    %983 = vector.extract_strided_slice %971 {offsets = [1, 0, 0], sizes = [1, 8, 32], strides = [1, 1, 1]} : vector<3x8x32xf32> to vector<1x8x32xf32>
    %984 = vector.shape_cast %983 : vector<1x8x32xf32> to vector<8x32xf32>
    %985 = vector.extract_strided_slice %973 {offsets = [0, 32], sizes = [8, 32], strides = [1, 1]} : vector<8x96xf32> to vector<8x32xf32>
    %986 = arith.addf %984, %985 : vector<8x32xf32>
    %987 = arith.negf %986 : vector<8x32xf32>
    %988 = math.exp %987 : vector<8x32xf32>
    %cst_210 = arith.constant 1.000000e+00 : f32
    %989 = vector.broadcast %cst_210 : f32 to vector<8x32xf32>
    %990 = arith.addf %989, %988 : vector<8x32xf32>
    %991 = arith.divf %989, %990 : vector<8x32xf32>
    %992 = vector.extract_strided_slice %971 {offsets = [2, 0, 0], sizes = [1, 8, 32], strides = [1, 1, 1]} : vector<3x8x32xf32> to vector<1x8x32xf32>
    %993 = vector.shape_cast %992 : vector<1x8x32xf32> to vector<8x32xf32>
    %994 = vector.extract_strided_slice %973 {offsets = [0, 64], sizes = [8, 32], strides = [1, 1]} : vector<8x96xf32> to vector<8x32xf32>
    %995 = vector.broadcast %4 : vector<1x32xf32> to vector<8x32xf32>
    %996 = arith.addf %994, %995 : vector<8x32xf32>
    %997 = arith.mulf %982, %996 : vector<8x32xf32>
    %998 = arith.addf %993, %997 : vector<8x32xf32>
    %999 = math.tanh %998 : vector<8x32xf32>
    %1000 = arith.subf %962, %999 : vector<8x32xf32>
    %1001 = arith.mulf %991, %1000 : vector<8x32xf32>
    %1002 = arith.addf %999, %1001 : vector<8x32xf32>
    %cst_211 = arith.constant dense<0.000000e+00> : vector<8xf32>
    %1003 = vector.multi_reduction <add>, %1002, %cst_211 [1] : vector<8x32xf32> to vector<8xf32>
    %1004 = vector.shape_cast %1003 : vector<8xf32> to vector<8x1xf32>
    %cst_212 = arith.constant 3.200000e+01 : f32
    %1005 = vector.broadcast %cst_212 : f32 to vector<8x1xf32>
    %1006 = arith.divf %1004, %1005 : vector<8x1xf32>
    %1007 = vector.broadcast %1006 : vector<8x1xf32> to vector<8x32xf32>
    %1008 = arith.subf %1002, %1007 : vector<8x32xf32>
    %1009 = vector.broadcast %1006 : vector<8x1xf32> to vector<8x32xf32>
    %1010 = arith.subf %1002, %1009 : vector<8x32xf32>
    %1011 = arith.mulf %1008, %1010 : vector<8x32xf32>
    %cst_213 = arith.constant dense<0.000000e+00> : vector<8xf32>
    %1012 = vector.multi_reduction <add>, %1011, %cst_213 [1] : vector<8x32xf32> to vector<8xf32>
    %1013 = vector.shape_cast %1012 : vector<8xf32> to vector<8x1xf32>
    %cst_214 = arith.constant 3.200000e+01 : f32
    %1014 = vector.broadcast %cst_214 : f32 to vector<8x1xf32>
    %1015 = arith.divf %1013, %1014 : vector<8x1xf32>
    %1016 = vector.broadcast %1006 : vector<8x1xf32> to vector<8x32xf32>
    %1017 = arith.subf %1002, %1016 : vector<8x32xf32>
    %cst_215 = arith.constant 9.99999974E-6 : f32
    %1018 = vector.broadcast %cst_215 : f32 to vector<8x1xf32>
    %1019 = arith.addf %1015, %1018 : vector<8x1xf32>
    %1020 = math.rsqrt %1019 : vector<8x1xf32>
    %1021 = vector.broadcast %1020 : vector<8x1xf32> to vector<8x32xf32>
    %1022 = arith.mulf %1017, %1021 : vector<8x32xf32>
    %1023 = vector.broadcast %5 : vector<1x32xf32> to vector<8x32xf32>
    %1024 = arith.mulf %1022, %1023 : vector<8x32xf32>
    %1025 = vector.broadcast %6 : vector<1x32xf32> to vector<8x32xf32>
    %1026 = arith.addf %1024, %1025 : vector<8x32xf32>
    %1027 = arith.truncf %1026 : vector<8x32xf32> to vector<8x32xbf16>
    %1028 = arith.index_cast %c15_i32 : i32 to index
    %c0_216 = arith.constant 0 : index
    %c0_217 = arith.constant 0 : index
    %1029 = vector.load %arg7[%1028, %c0_216, %c0_217] : memref<16x8x32xbf16, #tpu.memory_space<vmem>>, vector<1x8x32xbf16>
    %1030 = vector.shape_cast %1029 : vector<1x8x32xbf16> to vector<8x32xbf16>
    %1031 = vector.shape_cast %1027 : vector<8x32xbf16> to vector<1x8x32xbf16>
    tpu.vector_store %arg7[%1028, %c0_216, %c0_217], %1031 {strides = array<i32>} : memref<16x8x32xbf16, #tpu.memory_space<vmem>>, vector<1x8x32xbf16>,
    %c16_i32 = arith.constant 16 : i32
    %c0_218 = arith.constant 0 : index
    %c0_219 = arith.constant 0 : index
    %1032 = vector.load %arg8[%c0_218, %c0_219] : memref<8x32xf32, #tpu.memory_space<vmem>>, vector<8x32xf32>
    tpu.vector_store %arg8[%c0_218, %c0_219], %1026 {strides = array<i32>} : memref<8x32xf32, #tpu.memory_space<vmem>>, vector<8x32xf32>,
    return
  }
  func.func @transform_0(%arg0: i32, %arg1: i32) -> (i32, i32, i32, i32) {
    %c0_i32 = arith.constant 0 : i32
    %c0_i32_0 = arith.constant 0 : i32
    %c0_i32_1 = arith.constant 0 : i32
    return %arg1, %c0_i32, %arg0, %c0_i32_0 : i32, i32, i32, i32
  }
  func.func @transform_1(%arg0: i32, %arg1: i32) -> (i32, i32) {
    %c0_i32 = arith.constant 0 : i32
    %c0_i32_0 = arith.constant 0 : i32
    %c0_i32_1 = arith.constant 0 : i32
    return %c0_i32, %c0_i32_0 : i32, i32
  }
  func.func @transform_2(%arg0: i32, %arg1: i32) -> (i32, i32) {
    %c0_i32 = arith.constant 0 : i32
    %c0_i32_0 = arith.constant 0 : i32
    %c0_i32_1 = arith.constant 0 : i32
    return %c0_i32, %c0_i32_0 : i32, i32
  }
  func.func @transform_3(%arg0: i32, %arg1: i32) -> (i32, i32) {
    %c0_i32 = arith.constant 0 : i32
    %c0_i32_0 = arith.constant 0 : i32
    %c0_i32_1 = arith.constant 0 : i32
    return %c0_i32, %c0_i32_0 : i32, i32
  }
  func.func @transform_4(%arg0: i32, %arg1: i32) -> (i32, i32) {
    %c0_i32 = arith.constant 0 : i32
    %c0_i32_0 = arith.constant 0 : i32
    %c0_i32_1 = arith.constant 0 : i32
    return %c0_i32, %c0_i32_0 : i32, i32
  }
  func.func @transform_5(%arg0: i32, %arg1: i32) -> (i32, i32, i32) {
    %c0_i32 = arith.constant 0 : i32
    %c0_i32_0 = arith.constant 0 : i32
    return %arg1, %arg0, %c0_i32 : i32, i32, i32
  }
}

</mosaic_0001>

<bundles_post_ra>
// kernel: autoregerting_forward.3
= control target key start
LH: loop header
LB: loop body
LE: loop exit
PB: predicated region body
PF: predicated region fallthrough
CT: control target
= control target key end

     0   :  { %vm110_vm0 = vcmask 261120   ;;  %s1274_s1 = inlined_call_operand.vmem [shape: bf16[32,32], index: 1, kind: input, shape index: {}]   ;;  %s1275_s0 = inlined_call_operand.vmem [shape: bf16[128,32], index: 0, kind: input, shape index: {}]   ;;  %s1276_s2 = inlined_call_operand.vmem [shape: f32[1,32], index: 2, kind: input, shape index: {}]   ;;  %s1277_s5 = inlined_call_operand.vmem [shape: bf16[32,128], index: 5, kind: input, shape index: {}]   ;;  %s1278_s3 = inlined_call_operand.vmem [shape: f32[1,32], index: 3, kind: input, shape index: {}]   ;;  %s1279_s4 = inlined_call_operand.vmem [shape: f32[1,32], index: 4, kind: input, shape index: {}]   ;;  %s1280_s6 = inlined_call_operand.vmem [shape: f32[1,128], index: 6, kind: input, shape index: {}]   ;;  %s1281_s7 = inlined_call_operand.vmem [shape: f32[128,128], index: 7, kind: output, shape index: {}]  }
   0x1   :  { %v832_v0 = vld [vmem:[%s1274_s1] sm:$0xff]   ;;  %v833_v1 = vld [vmem:[%s1274_s1 + $0x8] sm:$0xff]   ;;  %v836_v4 = vld [vmem:[%s1275_s0 + $0x10] sm:$0xff]  }
   0x2   :  { %792 = vmatprep.subr.bf16.mxu0 %v832_v0  ;;  %v834_v2 = vld [vmem:[%s1275_s0] sm:$0xff]   ;;  %v835_v3 = vld [vmem:[%s1275_s0 + $0x8] sm:$0xff]   ;;  %v837_v5 = vld [vmem:[%s1275_s0 + $0x18] sm:$0xff]  }
   0x3   :  { %793 = vmatpush3.bf16.msra.mxu0 %v832_v0  ;;  %796 = vmatprep.mubr.msk.bf16.mxu0 %vm110_vm0, %v834_v2  ;;  %v838_v6 = vld [vmem:[%s1275_s0 + $0x20] sm:$0xff]   ;;  %v839_v7 = vld [vmem:[%s1275_s0 + $0x28] sm:$0xff]   ;;  %v840_v8 = vld [vmem:[%s1275_s0 + $0x30] sm:$0xff]  }
   0x4   :  { %794 = vmatprep.subr.bf16.mxu0 %v833_v1  ;;  %v841_v9 = vld [vmem:[%s1275_s0 + $0x38] sm:$0xff]   ;;  %v957_v10 = vld [vmem:[%s1276_s2] ss:$0 sm:$0xff] }
   0x7   :  { %795 = vmatpush3.bf16.msra.mxu0 %v833_v1 }
   0xa   :  { %797 = vmatmul.mubr.msk.bf16.vlgmr.msra.gmra.mrb[0].mxu0 %vm110_vm0, %v835_v3 }
   0xb   :  { %800 = vmatprep.mubr.msk.bf16.mxu0 %vm110_vm0, %v836_v4 }
  0x12   :  { %801 = vmatmul.mubr.msk.bf16.gmra.mrb[4].mxu0 %vm110_vm0, %v837_v5 }
  0x13   :  { %804 = vmatprep.mubr.msk.bf16.mxu0 %vm110_vm0, %v838_v6 }
  0x1a   :  { %805 = vmatmul.mubr.msk.bf16.gmra.mrb[8].mxu0 %vm110_vm0, %v839_v7 }
  0x1b   :  { %808 = vmatprep.mubr.msk.bf16.mxu0 %vm110_vm0, %v840_v8 }
  0x22   :  { %809 = vmatmul.mubr.msk.bf16.gmra.mrb[12].mxu0 %vm110_vm0, %v841_v9 }
  0xdd   :  { %v798_v11 = vpop.f32.mrb[0].mxu0 }
  0xde   :  { %v178_v12 = vadd.f32 %v798_v11, %v957_v10  ;;  %v169_v13 = vpop.f32.mrb[1].mxu0 }
  0xdf   :  { %v170_v14 = vadd.f32 %v957_v10, %v169_v13  ;;  %v799_v15 = vpop.f32.mrb[2].mxu0 }
  0xe0   :  { %v250_v16 = vmul.f32 0.01, %v178_v12  ;;  %v181_v17 = vadd.f32 %v799_v15, %v957_v10  ;;  %v172_v18 = vpop.f32.mrb[3].mxu0  ;;  %vm234_vm1 = vcmp.ge.f32.partialorder %v178_v12, 0.0 }
  0xe1   :  { %v248_v19 = vmul.f32 0.01, %v170_v14  ;;  %v173_v20 = vadd.f32 %v957_v10, %v172_v18  ;;  %vm232_vm2 = vcmp.ge.f32.partialorder %v170_v14, 0.0 }
  0xe2   :  { %v251_v21 = vmul.f32 0.01, %v181_v17  ;;  %v963_v22 = vsel %vm234_vm1, %v178_v12, %v250_v16  ;;  %vm235_vm3 = vcmp.ge.f32.partialorder %v181_v17, 0.0 }
  0xe3   :  { %v249_v23 = vmul.f32 0.01, %v173_v20  ;;  %v288_v24 = vsel %vm110_vm0, %v963_v22, 0.0  ;;  %v967_v25 = vsel %vm232_vm2, %v170_v14, %v248_v19  ;;  %vm233_vm4 = vcmp.ge.f32.partialorder %v173_v20, 0.0 }
  0xe4   :  { %289 = vadd.xlane.f32.xlu1 %v288_v24  ;;  %v282_v26 = vsel %vm110_vm0, %v967_v25, 0.0  ;;  %v971_v27 = vsel %vm235_vm3, %v181_v17, %v251_v21 }
  0xe5   :  { %v802_v28 = vpop.f32.mrb[4].mxu0  ;;  %283 = vadd.xlane.f32.xlu0 %v282_v26  ;;  %v973_v29 = vsel %vm233_vm4, %v173_v20, %v249_v23  ;;  %v291_v34 = vsel %vm110_vm0, %v971_v27, 0.0 }
  0xe6   :  { %v194_v30 = vadd.f32 %v802_v28, %v957_v10  ;;  %v185_v31 = vpop.f32.mrb[5].mxu0  ;;  %v285_v37 = vsel %vm110_vm0, %v973_v29, 0.0 }
  0xe7   :  { %v186_v32 = vadd.f32 %v957_v10, %v185_v31  ;;  %v803_v33 = vpop.f32.mrb[6].mxu0 }
  0xe8   :  { %v197_v35 = vadd.f32 %v803_v33, %v957_v10  ;;  %292 = vadd.xlane.f32.xlu1 %v291_v34  ;;  %v188_v36 = vpop.f32.mrb[7].mxu0  ;;  %v254_v38 = vmul.f32 0.01, %v194_v30  ;;  %vm238_vm6 = vcmp.ge.f32.partialorder %v194_v30, 0.0 }
  0xe9   :  { %v252_v39 = vmul.f32 0.01, %v186_v32  ;;  %v189_v40 = vadd.f32 %v957_v10, %v188_v36  ;;  %286 = vadd.xlane.f32.xlu0 %v285_v37  ;;  %vm236_vm5 = vcmp.ge.f32.partialorder %v186_v32, 0.0 }
  0xea   :  { %v255_v41 = vmul.f32 0.01, %v197_v35  ;;  %vm239_vm8 = vcmp.ge.f32.partialorder %v197_v35, 0.0  ;;  %v989_v47 = vsel %vm238_vm6, %v194_v30, %v254_v38 }
  0xeb   :  { %v253_v42 = vmul.f32 0.01, %v189_v40  ;;  %v983_v43 = vsel %vm236_vm5, %v186_v32, %v252_v39  ;;  %vm237_vm7 = vcmp.ge.f32.partialorder %v189_v40, 0.0  ;;  %v300_v56 = vsel %vm110_vm0, %v989_v47, 0.0 }
  0xec   :  { %v294_v44 = vsel %vm110_vm0, %v983_v43, 0.0  ;;  %v995_v53 = vsel %vm239_vm8, %v197_v35, %v255_v41 }
  0xed   :  { %v806_v45 = vpop.f32.mrb[8].mxu0  ;;  %295 = vadd.xlane.f32.xlu0 %v294_v44  ;;  %v987_v46 = vsel %vm237_vm7, %v189_v40, %v253_v42  ;;  %v303_v60 = vsel %vm110_vm0, %v995_v53, 0.0 }
  0xee   :  { %v210_v48 = vadd.f32 %v806_v45, %v957_v10  ;;  %v201_v49 = vpop.f32.mrb[9].mxu0  ;;  %v297_v50 = vsel %vm110_vm0, %v987_v46, 0.0 }
  0xef   :  { %v202_v51 = vadd.f32 %v957_v10, %v201_v49  ;;  %v807_v52 = vpop.f32.mrb[10].mxu0  ;;  %298 = vadd.xlane.f32.xlu1 %v297_v50 }
  0xf0   :  { %v213_v54 = vadd.f32 %v807_v52, %v957_v10  ;;  %v204_v55 = vpop.f32.mrb[11].mxu0  ;;  %v258_v57 = vmul.f32 0.01, %v210_v48  ;;  %vm242_vm10 = vcmp.ge.f32.partialorder %v210_v48, 0.0 }
  0xf1   :  { %v256_v58 = vmul.f32 0.01, %v202_v51  ;;  %v205_v59 = vadd.f32 %v957_v10, %v204_v55  ;;  %301 = vadd.xlane.f32.xlu0 %v300_v56  ;;  %vm240_vm9 = vcmp.ge.f32.partialorder %v202_v51, 0.0 }
  0xf2   :  { %v259_v61 = vmul.f32 0.01, %v213_v54  ;;  %vm243_vm12 = vcmp.ge.f32.partialorder %v213_v54, 0.0  ;;  %v1009_v3 = vsel %vm242_vm10, %v210_v48, %v258_v57 }
  0xf3   :  { %v257_v62 = vmul.f32 0.01, %v205_v59  ;;  %304 = vadd.xlane.f32.xlu1 %v303_v60  ;;  %v1003_v63 = vsel %vm240_vm9, %v202_v51, %v256_v58  ;;  %vm241_vm11 = vcmp.ge.f32.partialorder %v205_v59, 0.0  ;;  %v312_v13 = vsel %vm110_vm0, %v1009_v3, 0.0 }
  0xf4   :  { %v306_v0 = vsel %vm110_vm0, %v1003_v63, 0.0  ;;  %v1015_v9 = vsel %vm243_vm12, %v213_v54, %v259_v61 }
  0xf5   :  { %v810_v1 = vpop.f32.mrb[12].mxu0  ;;  %307 = vadd.xlane.f32.xlu0 %v306_v0  ;;  %v1007_v2 = vsel %vm241_vm11, %v205_v59, %v257_v62  ;;  %v315_v17 = vsel %vm110_vm0, %v1015_v9, 0.0 }
  0xf6   :  { %v226_v4 = vadd.f32 %v810_v1, %v957_v10  ;;  %v217_v5 = vpop.f32.mrb[13].mxu0  ;;  %v309_v6 = vsel %vm110_vm0, %v1007_v2, 0.0 }
  0xf7   :  { %v218_v7 = vadd.f32 %v957_v10, %v217_v5  ;;  %v811_v8 = vpop.f32.mrb[14].mxu0  ;;  %310 = vadd.xlane.f32.xlu1 %v309_v6 }
  0xf8   :  { %v229_v11 = vadd.f32 %v811_v8, %v957_v10  ;;  %v220_v12 = vpop.f32.mrb[15].mxu0  ;;  %v262_v14 = vmul.f32 0.01, %v226_v4  ;;  %vm246_vm14 = vcmp.ge.f32.partialorder %v226_v4, 0.0 }
  0xf9   :  { %v260_v15 = vmul.f32 0.01, %v218_v7  ;;  %v221_v16 = vadd.f32 %v957_v10, %v220_v12  ;;  %313 = vadd.xlane.f32.xlu0 %v312_v13  ;;  %vm244_vm13 = vcmp.ge.f32.partialorder %v218_v7, 0.0 }
  0xfa   :  { %v263_v18 = vmul.f32 0.01, %v229_v11  ;;  %vm247_vm1 = vcmp.ge.f32.partialorder %v229_v11, 0.0  ;;  %v1029_v10 = vsel %vm246_vm14, %v226_v4, %v262_v14 }
  0xfb   :  { %v261_v19 = vmul.f32 0.01, %v221_v16  ;;  %316 = vadd.xlane.f32.xlu1 %v315_v17  ;;  %v1023_v20 = vsel %vm244_vm13, %v218_v7, %v260_v15  ;;  %vm245_vm15 = vcmp.ge.f32.partialorder %v221_v16, 0.0  ;;  %v324_v28 = vsel %vm110_vm0, %v1029_v10, 0.0 }
  0xfc   :  { %v318_v21 = vsel %vm110_vm0, %v1023_v20, 0.0  ;;  %v1033_v26 = vsel %vm247_vm1, %v229_v11, %v263_v18 }
  0xfd   :  { %319 = vadd.xlane.f32.xlu0 %v318_v21  ;;  %v1027_v23 = vsel %vm245_vm15, %v221_v16, %v261_v19  ;;  %v327_v30 = vsel %vm110_vm0, %v1033_v26, 0.0 }
  0xfe   :  { %v321_v24 = vsel %vm110_vm0, %v1027_v23, 0.0 }
  0xff   :  { %322 = vadd.xlane.f32.xlu1 %v321_v24 }
 0x101   :  { %325 = vadd.xlane.f32.xlu0 %v324_v28 }
 0x103   :  { %328 = vadd.xlane.f32.xlu1 %v327_v30 }
 0x171   :  { %v290_v31 = vpop.xlane.xlu1 %289 }
 0x172   :  { %v333_v32 = vmul.f32 0.03125, %v290_v31  ;;  %v284_v33 = vpop.xlane.xlu0 %283 }
 0x173   :  { %v331_v34 = vmul.f32 0.03125, %v284_v33 }
 0x174   :  { %v1040_v35 = vsub.f32 %v963_v22, %v333_v32 }
 0x175   :  { %v1043_v36 = vsub.f32 %v967_v25, %v331_v34  ;;  %v293_v37 = vpop.xlane.xlu1 %292 }
 0x176   :  { %v334_v38 = vmul.f32 0.03125, %v293_v37  ;;  %v287_v39 = vpop.xlane.xlu0 %286  ;;  %v365_v22 = vmul.f32 %v1040_v35, %v1040_v35 }
 0x177   :  { %v332_v40 = vmul.f32 0.03125, %v287_v39  ;;  %v363_v41 = vmul.f32 %v1043_v36, %v1043_v36 }
 0x178   :  { %v1048_v42 = vsub.f32 %v971_v27, %v334_v38  ;;  %v385_v52 = vsel %vm110_vm0, %v365_v22, 0.0 }
 0x179   :  { %v1051_v44 = vsub.f32 %v973_v29, %v332_v40  ;;  %v379_v45 = vsel %vm110_vm0, %v363_v41, 0.0 }
 0x17a   :  { %380 = vadd.xlane.f32.xlu0 %v379_v45  ;;  %v296_v25 = vpop.xlane.xlu0 %295  ;;  %v366_v51 = vmul.f32 %v1048_v42, %v1048_v42 }
 0x17b   :  { %v335_v48 = vmul.f32 0.03125, %v296_v25  ;;  %v364_v49 = vmul.f32 %v1051_v44, %v1051_v44 }
 0x17c   :  { %v299_v50 = vpop.xlane.xlu1 %298  ;;  %v388_v60 = vsel %vm110_vm0, %v366_v51, 0.0 }
 0x17d   :  { %v1061_v27 = vsub.f32 %v983_v43, %v335_v48  ;;  %v336_v29 = vmul.f32 0.03125, %v299_v50  ;;  %v382_v54 = vsel %vm110_vm0, %v364_v49, 0.0 }
 0x17e   :  { %386 = vadd.xlane.f32.xlu0 %v385_v52  ;;  %383 = vadd.xlane.f32.xlu1 %v382_v54  ;;  %v302_v55 = vpop.xlane.xlu0 %301  ;;  %v843_v52 = vld [vmem:[%s1277_s5 + $0x8] sm:$0xff]  }
 0x17f   :  { %v1066_v56 = vsub.f32 %v987_v46, %v336_v29  ;;  %v337_v57 = vmul.f32 0.03125, %v302_v55  ;;  %v367_v58 = vmul.f32 %v1061_v27, %v1061_v27 }
 0x180   :  { %v305_v59 = vpop.xlane.xlu1 %304 }
 0x181   :  { %v1072_v43 = vsub.f32 %v989_v47, %v337_v57  ;;  %v338_v61 = vmul.f32 0.03125, %v305_v59  ;;  %v391_v62 = vsel %vm110_vm0, %v367_v58, 0.0  ;;  %v368_v0 = vmul.f32 %v1066_v56, %v1066_v56 }
 0x182   :  { %389 = vadd.xlane.f32.xlu1 %v388_v60  ;;  %392 = vadd.xlane.f32.xlu0 %v391_v62  ;;  %v308_v46 = vpop.xlane.xlu0 %307 }
 0x183   :  { %v1078_v1 = vsub.f32 %v995_v53, %v338_v61  ;;  %v339_v4 = vmul.f32 0.03125, %v308_v46  ;;  %v369_v5 = vmul.f32 %v1072_v43, %v1072_v43  ;;  %v394_v47 = vsel %vm110_vm0, %v368_v0, 0.0 }
 0x184   :  { %v311_v6 = vpop.xlane.xlu1 %310 }
 0x185   :  { %v1084_v7 = vsub.f32 %v1003_v63, %v339_v4  ;;  %v340_v8 = vmul.f32 0.03125, %v311_v6  ;;  %v397_v11 = vsel %vm110_vm0, %v369_v5, 0.0  ;;  %v370_v12 = vmul.f32 %v1078_v1, %v1078_v1 }
 0x186   :  { %395 = vadd.xlane.f32.xlu1 %v394_v47  ;;  %398 = vadd.xlane.f32.xlu0 %v397_v11  ;;  %v314_v53 = vpop.xlane.xlu0 %313 }
 0x187   :  { %v1090_v13 = vsub.f32 %v1007_v2, %v340_v8  ;;  %v341_v14 = vmul.f32 0.03125, %v314_v53  ;;  %v371_v15 = vmul.f32 %v1084_v7, %v1084_v7  ;;  %v400_v63 = vsel %vm110_vm0, %v370_v12, 0.0 }
 0x188   :  { %v317_v16 = vpop.xlane.xlu1 %316 }
 0x189   :  { %v1096_v17 = vsub.f32 %v1009_v3, %v341_v14  ;;  %v342_v18 = vmul.f32 0.03125, %v317_v16  ;;  %v403_v19 = vsel %vm110_vm0, %v371_v15, 0.0  ;;  %v372_v21 = vmul.f32 %v1090_v13, %v1090_v13  ;;  %v1144_v16 = vld [vmem:[%s1278_s3] ss:$0 sm:$0xff] }
 0x18a   :  { %401 = vadd.xlane.f32.xlu1 %v400_v63  ;;  %404 = vadd.xlane.f32.xlu0 %v403_v19  ;;  %v320_v2 = vpop.xlane.xlu0 %319 }
 0x18b   :  { %v1102_v24 = vsub.f32 %v1015_v9, %v342_v18  ;;  %v343_v28 = vmul.f32 0.03125, %v320_v2  ;;  %v373_v30 = vmul.f32 %v1096_v17, %v1096_v17  ;;  %v406_v3 = vsel %vm110_vm0, %v372_v21, 0.0 }
 0x18c   :  { %v323_v31 = vpop.xlane.xlu1 %322 }
 0x18d   :  { %v1108_v32 = vsub.f32 %v1023_v20, %v343_v28  ;;  %v344_v33 = vmul.f32 0.03125, %v323_v31  ;;  %v409_v34 = vsel %vm110_vm0, %v373_v30, 0.0  ;;  %v374_v37 = vmul.f32 %v1102_v24, %v1102_v24  ;;  %v1150_v28 = vld [vmem:[%s1279_s4] ss:$0 sm:$0xff] }
 0x18e   :  { %407 = vadd.xlane.f32.xlu1 %v406_v3  ;;  %410 = vadd.xlane.f32.xlu0 %v409_v34  ;;  %v326_v9 = vpop.xlane.xlu0 %325 }
 0x18f   :  { %v1114_v38 = vsub.f32 %v1027_v23, %v344_v33  ;;  %v345_v39 = vmul.f32 0.03125, %v326_v9  ;;  %v375_v40 = vmul.f32 %v1108_v32, %v1108_v32  ;;  %v412_v20 = vsel %vm110_vm0, %v374_v37, 0.0 }
 0x190   :  { %v329_v41 = vpop.xlane.xlu1 %328 }
 0x191   :  { %v1120_v45 = vsub.f32 %v1029_v10, %v345_v39  ;;  %v346_v22 = vmul.f32 0.03125, %v329_v41  ;;  %v415_v25 = vsel %vm110_vm0, %v375_v40, 0.0  ;;  %v376_v48 = vmul.f32 %v1114_v38, %v1114_v38 }
 0x192   :  { %413 = vadd.xlane.f32.xlu1 %v412_v20  ;;  %416 = vadd.xlane.f32.xlu0 %v415_v25 }
 0x193   :  { %v1126_v23 = vsub.f32 %v1033_v26, %v346_v22  ;;  %v377_v49 = vmul.f32 %v1120_v45, %v1120_v45  ;;  %v418_v50 = vsel %vm110_vm0, %v376_v48, 0.0  ;;  %v842_v26 = vld [vmem:[%s1277_s5] sm:$0xff]  }
 0x194   :  { %812 = vmatprep.subr.bf16.mxu1 %v842_v26 }
 0x195   :  { %v421_v51 = vsel %vm110_vm0, %v377_v49, 0.0  ;;  %v378_v10 = vmul.f32 %v1126_v23, %v1126_v23  ;;  %813 = vmatpush3.bf16.msra.mxu1 %v842_v26 }
 0x196   :  { %419 = vadd.xlane.f32.xlu1 %v418_v50  ;;  %422 = vadd.xlane.f32.xlu0 %v421_v51 }
 0x197   :  { %v424_v29 = vsel %vm110_vm0, %v378_v10, 0.0  ;;  %814 = vmatprep.subr.bf16.mxu1 %v843_v52 }
 0x199   :  { %815 = vmatpush3.bf16.msra.mxu1 %v843_v52 }
 0x19a   :  { %425 = vadd.xlane.f32.xlu1 %v424_v29 }
 0x207   :  { %v381_v54 = vpop.xlane.xlu0 %380 }
 0x208   :  { %v427_v55 = vmul.f32 0.03125, %v381_v54 }
 0x20a   :  { %v443_v57 = vadd.f32 1e-05, %v427_v55 }
 0x20b   :  { %v384_v58 = vpop.xlane.xlu1 %383  ;;  %v387_v59 = vpop.xlane.xlu0 %386 }
 0x20c   :  { %844 = vrsqrt.f32 %v443_v57  ;;  %v428_v60 = vmul.f32 0.03125, %v384_v58  ;;  %v429_v61 = vmul.f32 0.03125, %v387_v59 }
 0x20e   :  { %v444_v62 = vadd.f32 1e-05, %v428_v60  ;;  %v445_v0 = vadd.f32 1e-05, %v429_v61 }
 0x20f   :  { %v390_v46 = vpop.xlane.xlu1 %389  ;;  %v393_v4 = vpop.xlane.xlu0 %392 }
 0x210   :  { %846 = vrsqrt.f32 %v444_v62  ;;  %v430_v5 = vmul.f32 0.03125, %v390_v46  ;;  %v431_v6 = vmul.f32 0.03125, %v393_v4 }
 0x211   :  { %848 = vrsqrt.f32 %v445_v0 }
 0x212   :  { %v446_v47 = vadd.f32 1e-05, %v430_v5  ;;  %v447_v8 = vadd.f32 1e-05, %v431_v6 }
 0x213   :  { %v396_v11 = vpop.xlane.xlu1 %395  ;;  %v399_v12 = vpop.xlane.xlu0 %398 }
 0x214   :  { %850 = vrsqrt.f32 %v446_v47  ;;  %v432_v53 = vmul.f32 0.03125, %v396_v11  ;;  %v433_v14 = vmul.f32 0.03125, %v399_v12 }
 0x215   :  { %852 = vrsqrt.f32 %v447_v8 }
 0x216   :  { %v845_v15 = vpop.eup %844  ;;  %v448_v63 = vadd.f32 1e-05, %v432_v53  ;;  %v449_v18 = vadd.f32 1e-05, %v433_v14 }
 0x217   :  { %v475_v19 = vmul.f32 %v845_v15, %v1043_v36  ;;  %v402_v21 = vpop.xlane.xlu1 %401  ;;  %v405_v2 = vpop.xlane.xlu0 %404 }
 0x218   :  { %854 = vrsqrt.f32 %v448_v63  ;;  %v434_v30 = vmul.f32 0.03125, %v402_v21  ;;  %v435_v31 = vmul.f32 0.03125, %v405_v2 }
 0x219   :  { %v497_v3 = vmul.f32 %v1144_v16, %v475_v19  ;;  %856 = vrsqrt.f32 %v449_v18 }
 0x21a   :  { %v847_v33 = vpop.eup %846  ;;  %v450_v34 = vadd.f32 1e-05, %v434_v30  ;;  %v451_v37 = vadd.f32 1e-05, %v435_v31 }
 0x21b   :  { %v849_v9 = vpop.eup %848  ;;  %v519_v39 = vadd.f32 %v1150_v28, %v497_v3  ;;  %v476_v36 = vmul.f32 %v847_v33, %v1051_v44  ;;  %v408_v40 = vpop.xlane.xlu1 %407 }
 0x21c   :  { %v411_v41 = vpop.xlane.xlu0 %410  ;;  %v477_v20 = vmul.f32 %v849_v9, %v1040_v35  ;;  %858 = vrsqrt.f32 %v450_v34  ;;  %v436_v22 = vmul.f32 0.03125, %v408_v40 }
 0x21d   :  { %v437_v25 = vmul.f32 0.03125, %v411_v41  ;;  %535 = vst.msk [vmem:[#allocation2] sm:$0xff] %vm110_vm0, %v519_v39  ;;  %v498_v48 = vmul.f32 %v1144_v16, %v476_v36  ;;  %860 = vrsqrt.f32 %v451_v37 }
 0x21e   :  { %v851_v49 = vpop.eup %850  ;;  %v499_v50 = vmul.f32 %v1144_v16, %v477_v20  ;;  %v452_v51 = vadd.f32 1e-05, %v436_v22 }
 0x21f   :  { %v453_v10 = vadd.f32 1e-05, %v437_v25  ;;  %v853_v29 = vpop.eup %852  ;;  %v520_v44 = vadd.f32 %v1150_v28, %v498_v48  ;;  %v478_v26 = vmul.f32 %v851_v49, %v1048_v42  ;;  %v414_v52 = vpop.xlane.xlu1 %413 }
 0x220   :  { %v417_v35 = vpop.xlane.xlu0 %416  ;;  %v521_v54 = vadd.f32 %v1150_v28, %v499_v50  ;;  %v479_v55 = vmul.f32 %v853_v29, %v1061_v27  ;;  %862 = vrsqrt.f32 %v452_v51  ;;  %v438_v57 = vmul.f32 0.03125, %v414_v52 }
 0x221   :  { %536 = vst.msk [vmem:[#allocation2 + $0x8] sm:$0xff] %vm110_vm0, %v520_v44  ;;  %v500_v58 = vmul.f32 %v1144_v16, %v478_v26  ;;  %864 = vrsqrt.f32 %v453_v10  ;;  %v439_v59 = vmul.f32 0.03125, %v417_v35 }
 0x222   :  { %v855_v60 = vpop.eup %854  ;;  %537 = vst.msk [vmem:[#allocation2 + $0x10] sm:$0xff] %vm110_vm0, %v521_v54  ;;  %v501_v61 = vmul.f32 %v1144_v16, %v479_v55  ;;  %v454_v42 = vadd.f32 1e-05, %v438_v57 }
 0x223   :  { %v857_v62 = vpop.eup %856  ;;  %v522_v0 = vadd.f32 %v1150_v28, %v500_v58  ;;  %v480_v46 = vmul.f32 %v855_v60, %v1066_v56  ;;  %v455_v27 = vadd.f32 1e-05, %v439_v59  ;;  %v420_v4 = vpop.xlane.xlu1 %419 }
 0x224   :  { %v423_v5 = vpop.xlane.xlu0 %422  ;;  %v523_v6 = vadd.f32 %v1150_v28, %v501_v61  ;;  %v481_v47 = vmul.f32 %v857_v62, %v1072_v43  ;;  %866 = vrsqrt.f32 %v454_v42  ;;  %v440_v8 = vmul.f32 0.03125, %v420_v4  ;;  %v551_v31 = vld [vmem:[#allocation2] sm:$0xff] }
 0x225   :  { %538 = vst.msk [vmem:[#allocation2 + $0x18] sm:$0xff] %vm110_vm0, %v522_v0  ;;  %v502_v11 = vmul.f32 %v1144_v16, %v480_v46  ;;  %868 = vrsqrt.f32 %v455_v27  ;;  %v441_v12 = vmul.f32 0.03125, %v423_v5 }
 0x226   :  { %v859_v53 = vpop.eup %858  ;;  %539 = vst.msk [vmem:[#allocation2 + $0x20] sm:$0xff] %vm110_vm0, %v523_v6  ;;  %v503_v56 = vmul.f32 %v1144_v16, %v481_v47  ;;  %v456_v14 = vadd.f32 1e-05, %v440_v8 }
 0x227   :  { %v861_v15 = vpop.eup %860  ;;  %v524_v63 = vadd.f32 %v1150_v28, %v502_v11  ;;  %v482_v18 = vmul.f32 %v859_v53, %v1078_v1  ;;  %v457_v43 = vadd.f32 1e-05, %v441_v12  ;;  %v426_v19 = vpop.xlane.xlu1 %425 }
 0x228   :  { %v525_v21 = vadd.f32 %v1150_v28, %v503_v56  ;;  %v483_v2 = vmul.f32 %v861_v15, %v1084_v7  ;;  %870 = vrsqrt.f32 %v456_v14  ;;  %v442_v30 = vmul.f32 0.03125, %v426_v19  ;;  %v552_v3 = vld [vmem:[#allocation2 + $0x8] sm:$0xff] }
 0x229   :  { %540 = vst.msk [vmem:[#allocation2 + $0x28] sm:$0xff] %vm110_vm0, %v524_v63  ;;  %v504_v33 = vmul.f32 %v1144_v16, %v482_v18  ;;  %872 = vrsqrt.f32 %v457_v43  ;;  %v567_v34 = vpack.c.bf16 %v552_v3, %v551_v31  ;;  %v553_v20 = vld [vmem:[#allocation2 + $0x10] sm:$0xff] }
 0x22a   :  { %v863_v37 = vpop.eup %862  ;;  %541 = vst.msk [vmem:[#allocation2 + $0x30] sm:$0xff] %vm110_vm0, %v525_v21  ;;  %v505_v1 = vmul.f32 %v1144_v16, %v483_v2  ;;  %v458_v9 = vadd.f32 1e-05, %v442_v30 }
 0x22b   :  { %v865_v39 = vpop.eup %864  ;;  %v526_v36 = vadd.f32 %v1150_v28, %v504_v33  ;;  %v484_v7 = vmul.f32 %v863_v37, %v1090_v13  ;;  %816 = vmatprep.mubr.msk.bf16.mxu1 %vm110_vm0, %v567_v34 }
 0x22c   :  { %v527_v40 = vadd.f32 %v1150_v28, %v505_v1  ;;  %v485_v41 = vmul.f32 %v865_v39, %v1096_v17  ;;  %874 = vrsqrt.f32 %v458_v9  ;;  %v554_v22 = vld [vmem:[#allocation2 + $0x18] sm:$0xff] }
 0x22d   :  { %542 = vst.msk [vmem:[#allocation2 + $0x38] sm:$0xff] %vm110_vm0, %v526_v36  ;;  %v506_v25 = vmul.f32 %v1144_v16, %v484_v7  ;;  %v568_v48 = vpack.c.bf16 %v554_v22, %v553_v20  ;;  %v555_v44 = vld [vmem:[#allocation2 + $0x20] sm:$0xff] }
 0x22e   :  { %v867_v49 = vpop.eup %866  ;;  %543 = vst.msk [vmem:[#allocation2 + $0x40] sm:$0xff] %vm110_vm0, %v527_v40  ;;  %v507_v50 = vmul.f32 %v1144_v16, %v485_v41 }
 0x22f   :  { %v869_v13 = vpop.eup %868  ;;  %v528_v51 = vadd.f32 %v1150_v28, %v506_v25  ;;  %v486_v10 = vmul.f32 %v867_v49, %v1102_v24  ;;  %817 = vmatmul.mubr.msk.bf16.vlgmr.msra.gmra.mrb[0].mxu1 %vm110_vm0, %v568_v48 }
 0x230   :  { %v529_v17 = vadd.f32 %v1150_v28, %v507_v50  ;;  %v487_v29 = vmul.f32 %v869_v13, %v1108_v32  ;;  %v556_v26 = vld [vmem:[#allocation2 + $0x28] sm:$0xff] }
 0x231   :  { %544 = vst.msk [vmem:[#allocation2 + $0x48] sm:$0xff] %vm110_vm0, %v528_v51  ;;  %v508_v52 = vmul.f32 %v1144_v16, %v486_v10  ;;  %v569_v35 = vpack.c.bf16 %v556_v26, %v555_v44  ;;  %v557_v60 = vld [vmem:[#allocation2 + $0x30] sm:$0xff] }
 0x232   :  { %v871_v54 = vpop.eup %870  ;;  %545 = vst.msk [vmem:[#allocation2 + $0x50] sm:$0xff] %vm110_vm0, %v529_v17  ;;  %v509_v55 = vmul.f32 %v1144_v16, %v487_v29 }
 0x233   :  { %v873_v57 = vpop.eup %872  ;;  %v530_v24 = vadd.f32 %v1150_v28, %v508_v52  ;;  %v488_v58 = vmul.f32 %v871_v54, %v1114_v38  ;;  %820 = vmatprep.mubr.msk.bf16.mxu1 %vm110_vm0, %v569_v35 }
 0x234   :  { %v531_v32 = vadd.f32 %v1150_v28, %v509_v55  ;;  %v489_v59 = vmul.f32 %v873_v57, %v1120_v45  ;;  %v558_v61 = vld [vmem:[#allocation2 + $0x38] sm:$0xff] }
 0x235   :  { %546 = vst.msk [vmem:[#allocation2 + $0x58] sm:$0xff] %vm110_vm0, %v530_v24  ;;  %v510_v42 = vmul.f32 %v1144_v16, %v488_v58  ;;  %v570_v62 = vpack.c.bf16 %v558_v61, %v557_v60  ;;  %v559_v4 = vld [vmem:[#allocation2 + $0x40] sm:$0xff] }
 0x236   :  { %v875_v0 = vpop.eup %874  ;;  %547 = vst.msk [vmem:[#allocation2 + $0x60] sm:$0xff] %vm110_vm0, %v531_v32  ;;  %v511_v46 = vmul.f32 %v1144_v16, %v489_v59 }
 0x237   :  { %v532_v38 = vadd.f32 %v1150_v28, %v510_v42  ;;  %v490_v27 = vmul.f32 %v875_v0, %v1126_v23  ;;  %821 = vmatmul.mubr.msk.bf16.gmra.mrb[4].mxu1 %vm110_vm0, %v570_v62 }
 0x238   :  { %v533_v45 = vadd.f32 %v1150_v28, %v511_v46  ;;  %v560_v5 = vld [vmem:[#allocation2 + $0x48] sm:$0xff] }
 0x239   :  { %548 = vst.msk [vmem:[#allocation2 + $0x68] sm:$0xff] %vm110_vm0, %v532_v38  ;;  %v512_v6 = vmul.f32 %v1144_v16, %v490_v27  ;;  %v571_v47 = vpack.c.bf16 %v560_v5, %v559_v4  ;;  %v561_v11 = vld [vmem:[#allocation2 + $0x50] sm:$0xff] }
 0x23a   :  { %549 = vst.msk [vmem:[#allocation2 + $0x70] sm:$0xff] %vm110_vm0, %v533_v45 }
 0x23b   :  { %v534_v8 = vadd.f32 %v1150_v28, %v512_v6  ;;  %824 = vmatprep.mubr.msk.bf16.mxu1 %vm110_vm0, %v571_v47  ;;  %v761_v28 = vld [vmem:[%s1280_s6] ss:$0 sm:$0xff] }
 0x23c   :  { %v562_v12 = vld [vmem:[#allocation2 + $0x58] sm:$0xff] }
 0x23d   :  { %550 = vst.msk [vmem:[#allocation2 + $0x78] sm:$0xff] %vm110_vm0, %v534_v8  ;;  %v572_v23 = vpack.c.bf16 %v562_v12, %v561_v11  ;;  %v563_v53 = vld [vmem:[#allocation2 + $0x60] sm:$0xff] }
 0x23f   :  { %825 = vmatmul.mubr.msk.bf16.gmra.mrb[8].mxu1 %vm110_vm0, %v572_v23 }
 0x240   :  { %v564_v56 = vld [vmem:[#allocation2 + $0x68] sm:$0xff] }
 0x241   :  { %v573_v14 = vpack.c.bf16 %v564_v56, %v563_v53  ;;  %v565_v16 = vld [vmem:[#allocation2 + $0x70] sm:$0xff] }
 0x243   :  { %828 = vmatprep.mubr.msk.bf16.mxu1 %vm110_vm0, %v573_v14 }
 0x244   :  { %v566_v15 = vld [vmem:[#allocation2 + $0x78] sm:$0xff] }
 0x245   :  { %v574_v63 = vpack.c.bf16 %v566_v15, %v565_v16 }
 0x247   :  { %829 = vmatmul.mubr.msk.bf16.gmra.mrb[12].mxu1 %vm110_vm0, %v574_v63 }
 0x302   :  { %v818_v18 = vpop.f32.mrb[0].mxu1 }
 0x303   :  { %v666_v43 = vadd.f32 %v818_v18, %v761_v28  ;;  %v657_v19 = vpop.f32.mrb[1].mxu1 }
 0x304   :  { %v658_v21 = vadd.f32 %v761_v28, %v657_v19  ;;  %v819_v2 = vpop.f32.mrb[2].mxu1 }
 0x305   :  { %722 = vst [vmem:[%s1281_s7 + $0x10] sm:$0xff] %v666_v43  ;;  %v669_v30 = vadd.f32 %v819_v2, %v761_v28  ;;  %v660_v31 = vpop.f32.mrb[3].mxu1 }
 0x306   :  { %720 = vst [vmem:[%s1281_s7] sm:$0xff] %v658_v21  ;;  %v661_v3 = vadd.f32 %v761_v28, %v660_v31 }
 0x307   :  { %723 = vst [vmem:[%s1281_s7 + $0x18] sm:$0xff] %v669_v30 }
 0x308   :  { %721 = vst [vmem:[%s1281_s7 + $0x8] sm:$0xff] %v661_v3 }
 0x30a   :  { %v822_v33 = vpop.f32.mrb[4].mxu1 }
 0x30b   :  { %v682_v34 = vadd.f32 %v822_v33, %v761_v28  ;;  %v673_v37 = vpop.f32.mrb[5].mxu1 }
 0x30c   :  { %v674_v1 = vadd.f32 %v761_v28, %v673_v37  ;;  %v823_v9 = vpop.f32.mrb[6].mxu1 }
 0x30d   :  { %726 = vst [vmem:[%s1281_s7 + $0x30] sm:$0xff] %v682_v34  ;;  %v685_v39 = vadd.f32 %v823_v9, %v761_v28  ;;  %v676_v36 = vpop.f32.mrb[7].mxu1 }
 0x30e   :  { %724 = vst [vmem:[%s1281_s7 + $0x20] sm:$0xff] %v674_v1  ;;  %v677_v7 = vadd.f32 %v761_v28, %v676_v36 }
 0x30f   :  { %727 = vst [vmem:[%s1281_s7 + $0x38] sm:$0xff] %v685_v39 }
 0x310   :  { %725 = vst [vmem:[%s1281_s7 + $0x28] sm:$0xff] %v677_v7 }
 0x312   :  { %v826_v40 = vpop.f32.mrb[8].mxu1 }
 0x313   :  { %v698_v41 = vadd.f32 %v826_v40, %v761_v28  ;;  %v689_v20 = vpop.f32.mrb[9].mxu1 }
 0x314   :  { %v690_v22 = vadd.f32 %v761_v28, %v689_v20  ;;  %v827_v25 = vpop.f32.mrb[10].mxu1 }
 0x315   :  { %730 = vst [vmem:[%s1281_s7 + $0x50] sm:$0xff] %v698_v41  ;;  %v701_v48 = vadd.f32 %v827_v25, %v761_v28  ;;  %v692_v49 = vpop.f32.mrb[11].mxu1 }
 0x316   :  { %728 = vst [vmem:[%s1281_s7 + $0x40] sm:$0xff] %v690_v22  ;;  %v693_v50 = vadd.f32 %v761_v28, %v692_v49 }
 0x317   :  { %731 = vst [vmem:[%s1281_s7 + $0x58] sm:$0xff] %v701_v48 }
 0x318   :  { %729 = vst [vmem:[%s1281_s7 + $0x48] sm:$0xff] %v693_v50 }
 0x31a   :  { %v830_v13 = vpop.f32.mrb[12].mxu1 }
 0x31b   :  { %v714_v51 = vadd.f32 %v830_v13, %v761_v28  ;;  %v705_v10 = vpop.f32.mrb[13].mxu1 }
 0x31c   :  { %v706_v17 = vadd.f32 %v761_v28, %v705_v10  ;;  %v831_v29 = vpop.f32.mrb[14].mxu1 }
 0x31d   :  { %734 = vst [vmem:[%s1281_s7 + $0x70] sm:$0xff] %v714_v51  ;;  %v717_v44 = vadd.f32 %v831_v29, %v761_v28  ;;  %v708_v26 = vpop.f32.mrb[15].mxu1 }
 0x31e   :  { %732 = vst [vmem:[%s1281_s7 + $0x60] sm:$0xff] %v706_v17  ;;  %v709_v52 = vadd.f32 %v761_v28, %v708_v26 }
 0x31f   :  { %735 = vst [vmem:[%s1281_s7 + $0x78] sm:$0xff] %v717_v44 }
 0x320   :  { %733 = vst [vmem:[%s1281_s7 + $0x68] sm:$0xff] %v709_v52 }

// kernel: autoregerting_forward.2
= control target key start
LH: loop header
LB: loop body
LE: loop exit
PB: predicated region body
PF: predicated region fallthrough
CT: control target
= control target key end

     0   :  { %vm25_vm0 = vcmask 261120   ;;  %v2196_v0 = vmov 0.0   ;;  %vm2197_vm1 = vmmov 0   ;;  %s2198_s24 = smov 64   ;;  %vm164_vm2 = vcmask 257024   ;;  %s2642_s1 = inlined_call_operand.vmem [shape: bf16[32,96], index: 1, kind: input, shape index: {}]   ;;  %s2643_s2 = inlined_call_operand.vmem [shape: f32[1,32], index: 2, kind: input, shape index: {}]   ;;  %s2644_s0 = inlined_call_operand.vmem [shape: bf16[16,3,8,32], index: 0, kind: input, shape index: {}]   ;;  %s2645_s3 = inlined_call_operand.vmem [shape: f32[1,32], index: 3, kind: input, shape index: {}]   ;;  %s2646_s4 = inlined_call_operand.vmem [shape: f32[1,32], index: 4, kind: input, shape index: {}]   ;;  %s2647_s5 = inlined_call_operand.vmem [shape: bf16[16,8,32], index: 5, kind: output, shape index: {}]  }
   0x1   :  { %1866 = vmatprep.subr.bf16.mxu0 %v2196_v0  ;;  %v2234_v1 = vld [vmem:[%s2642_s1] sm:$0xff]   ;;  %1870 = vmatprep.mubr.msk.bf16.mxu0 %vm2197_vm1, %v2196_v0  ;;  %26 = vst.msk [vmem:[#allocation2] sm:$0xff] %vm25_vm0, %v2196_v0  ;;  %v2247_v2 = vld [vmem:[%s2642_s1 + $0x8] sm:$0xff]   ;;  %v1803_v62 = vld [vmem:[%s2644_s0 + $0x10] sm:$0xff]  }
   0x2   :  { %1874 = vmatprep.subr.bf16.mxu1 %v2196_v0  ;;  %1878 = vmatprep.mubr.msk.bf16.mxu1 %vm2197_vm1, %v2196_v0  ;;  %v1631_v3 = vld [vmem:[%s2643_s2] ss:$0 sm:$0xff]  ;;  %s2199_s2 = smov 96   ;;  %v37_v23 = vld [vmem:[%s2644_s0 + $0x8] sm:$0xf]  ;;  %v1745_v63 = vunpack.c.l.bf16 %v1803_v62 }
   0x3   :  { %1867 = vmatpush3.bf16.msra.mxu0 %v2234_v1  ;;  %1875 = vmatpush3.bf16.msra.mxu1 %v2234_v1  ;;  %v1740_v12 = vld [vmem:[%s2644_s0] sm:$0xff]   ;;  %v40_v25 = vunpack.c.l.bf16 %v37_v23  ;;  %v1634_v56 = vld [vmem:[%s2644_s0 + $0xc] sm:$0xf] }
   0x4   :  { %1868 = vmatprep.subr.bf16.mxu0 %v2196_v0  ;;  %121 = vrot.lane.b32.xlu0 %v1631_v3, %s2198_s24  ;;  %v1741_v13 = vunpack.c.l.bf16 %v1740_v12  ;;  %v1742_v18 = vunpack.c.h.bf16 %v1740_v12  ;;  %v2283_v45 = vld [vmem:[%s2645_s3] ss:$0 sm:$0xff]  ;;  %v170_v57 = vunpack.c.l.bf16 %v1634_v56 }
   0x5   :  { %1876 = vmatprep.subr.bf16.mxu1 %v2196_v0  ;;  %v2288_v47 = vld [vmem:[%s2646_s4] ss:$0 sm:$0xff] }
   0x7   :  { %1869 = vmatpush3.bf16.msra.mxu0 %v2247_v2  ;;  %1877 = vmatpush3.bf16.msra.mxu1 %v2247_v2 }
   0x8   :  { %v34_v4 = vld [vmem:[#allocation2] sm:$0xff]  ;;  %1882 = vmatprep.subr.bf16.mxu0 %v2196_v0  ;;  %1890 = vmatprep.subr.bf16.mxu1 %v2196_v0 }
   0x9   :  { %v41_v5 = vpack.c.bf16 %v34_v4, %v34_v4 }
   0xb   :  { %1871 = vmatmul.mubr.msk.bf16.vlgmr.msra.gmra.mrb[0].mxu0 %vm25_vm0, %v41_v5 }
   0xc   :  { %1883 = vmatpush3.bf16.msra.mxu0 %v2234_v1  ;;  %1886 = vmatprep.mubr.msk.bf16.mxu0 %vm2197_vm1, %v2196_v0 }
   0xd   :  { %1884 = vmatprep.subr.bf16.mxu0 %v2196_v0 }
  0x10   :  { %1885 = vmatpush3.bf16.msra.mxu0 %v2247_v2 }
  0x11   :  { %1898 = vmatprep.subr.bf16.mxu0 %v2196_v0 }
  0x76   :  { %v2267_v6 = vpop.permute.xlu0 %121 }
  0xde   :  { %v92_v7 = vpop.f32.mrb[0].mxu0 }
  0xdf   :  { %106 = vrot.lane.b32.xlu0 %v92_v7, %s2199_s2  ;;  %v1872_v8 = vpop.f32.mrb[1].mxu0  ;;  %v124_v9 = vadd.f32 %v2267_v6, %v92_v7  ;;  %v98_v14 = vadd.f32 %v1741_v13, %v92_v7 }
  0xe0   :  { %v95_v10 = vpop.f32.mrb[2].mxu0 }
  0xe1   :  { %126 = vrot.lane.b32.xlu1 %v124_v9, %s2198_s24  ;;  %v1873_v11 = vpop.f32.mrb[3].mxu0  ;;  %v1629_v15 = vmul.f32 -1.442695, %v98_v14  ;;  %v1746_v9 = vunpack.c.h.bf16 %v1803_v62 }
  0xe3   :  { %2000 = vpow2.f32 %v1629_v15 }
  0xed   :  { %v2001_v16 = vpop.eup %2000 }
  0xee   :  { %v102_v17 = vadd.f32 1.0, %v2001_v16 }
  0xf0   :  { %2002 = vrcp.f32 %v102_v17 }
  0xfa   :  { %v2003_v24 = vpop.eup %2002 }
 0x151   :  { %v107_v19 = vpop.permute.xlu0 %106 }
 0x152   :  { %v109_v20 = vadd.f32 %v1742_v18, %v107_v19 }
 0x153   :  { %v127_v22 = vpop.permute.xlu1 %126 }
 0x154   :  { %v1630_v21 = vmul.f32 -1.442695, %v109_v20  ;;  %v129_v26 = vmul.f32 %v2003_v24, %v127_v22 }
 0x156   :  { %2004 = vpow2.f32 %v1630_v21  ;;  %v130_v27 = vadd.f32 %v129_v26, %v40_v25 }
 0x158   :  { %2006 = vtanh.f32 %v130_v27 }
 0x160   :  { %v2005_v28 = vpop.eup %2004 }
 0x161   :  { %v113_v29 = vadd.f32 1.0, %v2005_v28 }
 0x162   :  { %v2007_v30 = vpop.eup %2006 }
 0x163   :  { %2008 = vrcp.f32 %v113_v29  ;;  %v132_v31 = vsub.f32 %v34_v4, %v2007_v30 }
 0x16d   :  { %v2009_v32 = vpop.eup %2008 }
 0x16e   :  { %v133_v33 = vmul.f32 %v2009_v32, %v132_v31 }
 0x170   :  { %v134_v34 = vadd.f32 %v2007_v30, %v133_v33 }
 0x172   :  { %v135_v35 = vsel %vm25_vm0, %v134_v34, 0.0 }
 0x173   :  { %136 = vadd.xlane.f32.xlu1 %v135_v35 }
 0x200   :  { %v137_v36 = vpop.xlane.xlu1 %136 }
 0x201   :  { %v139_v37 = vmul.f32 0.03125, %v137_v36 }
 0x203   :  { %v140_v38 = vsub.f32 %v134_v34, %v139_v37 }
 0x205   :  { %v141_v39 = vmul.f32 %v140_v38, %v140_v38 }
 0x207   :  { %v142_v40 = vsel %vm25_vm0, %v141_v39, 0.0 }
 0x208   :  { %143 = vadd.xlane.f32.xlu0 %v142_v40 }
 0x295   :  { %v144_v41 = vpop.xlane.xlu0 %143 }
 0x296   :  { %v145_v42 = vmul.f32 0.03125, %v144_v41 }
 0x298   :  { %v146_v43 = vadd.f32 1e-05, %v145_v42 }
 0x29a   :  { %2010 = vrsqrt.f32 %v146_v43 }
 0x2a4   :  { %v2011_v44 = vpop.eup %2010 }
 0x2a5   :  { %v148_v46 = vmul.f32 %v2011_v44, %v140_v38  ;;  %v1804_v38 = vld [vmem:[%s2644_s0 + $0x18] sm:$0xff]  }
 0x2a6   :  { %v1749_v39 = vunpack.c.l.bf16 %v1804_v38  ;;  %v1750_v44 = vunpack.c.h.bf16 %v1804_v38 }
 0x2a7   :  { %v155_v48 = vmul.f32 %v2283_v45, %v148_v46 }
 0x2a9   :  { %v162_v49 = vadd.f32 %v2288_v47, %v155_v48 }
 0x2ab   :  { %v163_v50 = vpack.c.bf16 %v162_v49, %v162_v49 }
 0x2ad   :  { %165 = vst.msk [vmem:[%s2647_s5] sm:$0xf] %vm164_vm2, %v163_v50  ;;  %1879 = vmatmul.mubr.msk.bf16.vlgmr.msra.gmra.mrb[0].mxu1 %vm25_vm0, %v163_v50  ;;  %v1643_v50 = vld [vmem:[%s2644_s0 + $0x20] sm:$0xff]  }
 0x2ae   :  { %1891 = vmatpush3.bf16.msra.mxu1 %v2234_v1  ;;  %1894 = vmatprep.mubr.msk.bf16.mxu1 %vm2197_vm1, %v2196_v0 }
 0x2af   :  { %1892 = vmatprep.subr.bf16.mxu1 %v2196_v0 }
 0x2b2   :  { %1893 = vmatpush3.bf16.msra.mxu1 %v2247_v2 }
 0x2b3   :  { %1906 = vmatprep.subr.bf16.mxu1 %v2196_v0 }
 0x380   :  { %v210_v51 = vpop.f32.mrb[0].mxu1 }
 0x381   :  { %v234_v52 = vadd.f32 %v210_v51, %v2267_v6  ;;  %224 = vrot.lane.b32.xlu0 %v210_v51, %s2199_s2  ;;  %v1880_v53 = vpop.f32.mrb[1].mxu1  ;;  %v216_v58 = vadd.f32 %v210_v51, %v170_v57 }
 0x382   :  { %v213_v54 = vpop.f32.mrb[2].mxu1  ;;  %v269_v53 = vunpack.c.l.bf16 %v1643_v50 }
 0x383   :  { %236 = vrot.lane.b32.xlu1 %v234_v52, %s2198_s24  ;;  %v1881_v55 = vpop.f32.mrb[3].mxu1  ;;  %v1638_v59 = vmul.f32 -1.442695, %v216_v58 }
 0x385   :  { %2012 = vpow2.f32 %v1638_v59 }
 0x38f   :  { %v2013_v60 = vpop.eup %2012 }
 0x390   :  { %v220_v61 = vadd.f32 1.0, %v2013_v60 }
 0x392   :  { %2014 = vrcp.f32 %v220_v61 }
 0x39c   :  { %v2015_v8 = vpop.eup %2014 }
 0x3f3   :  { %v225_v3 = vpop.permute.xlu0 %224 }
 0x3f4   :  { %v227_v4 = vadd.f32 %v1745_v63, %v225_v3 }
 0x3f5   :  { %v237_v7 = vpop.permute.xlu1 %236 }
 0x3f6   :  { %v1639_v5 = vmul.f32 -1.442695, %v227_v4  ;;  %v239_v10 = vmul.f32 %v2015_v8, %v237_v7 }
 0x3f8   :  { %2016 = vpow2.f32 %v1639_v5  ;;  %v240_v11 = vadd.f32 %v1746_v9, %v239_v10 }
 0x3fa   :  { %2018 = vtanh.f32 %v240_v11 }
 0x402   :  { %v2017_v12 = vpop.eup %2016 }
 0x403   :  { %v231_v13 = vadd.f32 1.0, %v2017_v12 }
 0x404   :  { %v2019_v14 = vpop.eup %2018 }
 0x405   :  { %2020 = vrcp.f32 %v231_v13  ;;  %v242_v15 = vsub.f32 %v162_v49, %v2019_v14 }
 0x40f   :  { %v2021_v16 = vpop.eup %2020 }
 0x410   :  { %v243_v17 = vmul.f32 %v2021_v16, %v242_v15 }
 0x412   :  { %v244_v18 = vadd.f32 %v2019_v14, %v243_v17 }
 0x414   :  { %v245_v19 = vsel %vm25_vm0, %v244_v18, 0.0 }
 0x415   :  { %246 = vadd.xlane.f32.xlu1 %v245_v19 }
 0x4a2   :  { %v247_v20 = vpop.xlane.xlu1 %246 }
 0x4a3   :  { %v248_v21 = vmul.f32 0.03125, %v247_v20 }
 0x4a5   :  { %v249_v22 = vsub.f32 %v244_v18, %v248_v21 }
 0x4a7   :  { %v250_v23 = vmul.f32 %v249_v22, %v249_v22 }
 0x4a9   :  { %v251_v24 = vsel %vm25_vm0, %v250_v23, 0.0 }
 0x4aa   :  { %252 = vadd.xlane.f32.xlu0 %v251_v24 }
 0x537   :  { %v253_v25 = vpop.xlane.xlu0 %252 }
 0x538   :  { %v254_v26 = vmul.f32 0.03125, %v253_v25 }
 0x53a   :  { %v255_v27 = vadd.f32 1e-05, %v254_v26 }
 0x53c   :  { %2022 = vrsqrt.f32 %v255_v27  ;;  %v1805_v27 = vld [vmem:[%s2644_s0 + $0x28] sm:$0xff]  }
 0x546   :  { %v2023_v28 = vpop.eup %2022 }
 0x547   :  { %v257_v29 = vmul.f32 %v2023_v28, %v249_v22  ;;  %v364_v22 = vunpack.c.h.bf16 %v1643_v50  ;;  %v1753_v28 = vunpack.c.l.bf16 %v1805_v27 }
 0x549   :  { %v258_v30 = vmul.f32 %v2283_v45, %v257_v29 }
 0x54b   :  { %v259_v31 = vadd.f32 %v2288_v47, %v258_v30 }
 0x54d   :  { %v260_v32 = vpack.c.bf16 %v259_v31, %v259_v31 }
 0x54f   :  { %1640 = vst.msk [vmem:[%s2647_s5 + $0x4] sm:$0xf] %vm164_vm2, %v260_v32  ;;  %1887 = vmatmul.mubr.msk.bf16.vlgmr.msra.gmra.mrb[4].mxu0 %vm25_vm0, %v260_v32 }
 0x550   :  { %1899 = vmatpush3.bf16.msra.mxu0 %v2234_v1  ;;  %1902 = vmatprep.mubr.msk.bf16.mxu0 %vm2197_vm1, %v2196_v0 }
 0x551   :  { %1900 = vmatprep.subr.bf16.mxu0 %v2196_v0 }
 0x554   :  { %1901 = vmatpush3.bf16.msra.mxu0 %v2247_v2 }
 0x555   :  { %1914 = vmatprep.subr.bf16.mxu0 %v2196_v0 }
 0x622   :  { %v307_v33 = vpop.f32.mrb[4].mxu0 }
 0x623   :  { %v331_v34 = vadd.f32 %v307_v33, %v2267_v6  ;;  %321 = vrot.lane.b32.xlu0 %v307_v33, %s2199_s2  ;;  %v1888_v35 = vpop.f32.mrb[5].mxu0  ;;  %v313_v40 = vadd.f32 %v1749_v39, %v307_v33 }
 0x624   :  { %v310_v36 = vpop.f32.mrb[6].mxu0 }
 0x625   :  { %333 = vrot.lane.b32.xlu1 %v331_v34, %s2198_s24  ;;  %v1889_v37 = vpop.f32.mrb[7].mxu0  ;;  %v1645_v41 = vmul.f32 -1.442695, %v313_v40  ;;  %v1754_v34 = vunpack.c.h.bf16 %v1805_v27 }
 0x627   :  { %2024 = vpow2.f32 %v1645_v41 }
 0x631   :  { %v2025_v42 = vpop.eup %2024 }
 0x632   :  { %v317_v43 = vadd.f32 1.0, %v2025_v42 }
 0x634   :  { %2026 = vrcp.f32 %v317_v43 }
 0x63e   :  { %v2027_v52 = vpop.eup %2026 }
 0x695   :  { %v322_v46 = vpop.permute.xlu0 %321 }
 0x696   :  { %v324_v48 = vadd.f32 %v1750_v44, %v322_v46 }
 0x697   :  { %v334_v51 = vpop.permute.xlu1 %333 }
 0x698   :  { %v1646_v49 = vmul.f32 -1.442695, %v324_v48  ;;  %v336_v54 = vmul.f32 %v2027_v52, %v334_v51 }
 0x69a   :  { %2028 = vpow2.f32 %v1646_v49  ;;  %v337_v55 = vadd.f32 %v336_v54, %v269_v53 }
 0x69c   :  { %2030 = vtanh.f32 %v337_v55 }
 0x6a4   :  { %v2029_v56 = vpop.eup %2028 }
 0x6a5   :  { %v328_v57 = vadd.f32 1.0, %v2029_v56 }
 0x6a6   :  { %v2031_v58 = vpop.eup %2030 }
 0x6a7   :  { %2032 = vrcp.f32 %v328_v57  ;;  %v339_v59 = vsub.f32 %v259_v31, %v2031_v58 }
 0x6b1   :  { %v2033_v60 = vpop.eup %2032 }
 0x6b2   :  { %v340_v61 = vmul.f32 %v2033_v60, %v339_v59 }
 0x6b4   :  { %v341_v62 = vadd.f32 %v2031_v58, %v340_v61 }
 0x6b6   :  { %v342_v63 = vsel %vm25_vm0, %v341_v62, 0.0 }
 0x6b7   :  { %343 = vadd.xlane.f32.xlu1 %v342_v63 }
 0x744   :  { %v344_v3 = vpop.xlane.xlu1 %343 }
 0x745   :  { %v345_v4 = vmul.f32 0.03125, %v344_v3 }
 0x747   :  { %v346_v5 = vsub.f32 %v341_v62, %v345_v4  ;;  %v1806_v4 = vld [vmem:[%s2644_s0 + $0x30] sm:$0xff]  }
 0x749   :  { %v347_v7 = vmul.f32 %v346_v5, %v346_v5 }
 0x74b   :  { %v348_v8 = vsel %vm25_vm0, %v347_v7, 0.0 }
 0x74c   :  { %349 = vadd.xlane.f32.xlu0 %v348_v8 }
 0x7d9   :  { %v350_v9 = vpop.xlane.xlu0 %349 }
 0x7da   :  { %v351_v10 = vmul.f32 0.03125, %v350_v9 }
 0x7dc   :  { %v352_v11 = vadd.f32 1e-05, %v351_v10 }
 0x7de   :  { %2034 = vrsqrt.f32 %v352_v11  ;;  %v1758_v11 = vunpack.c.h.bf16 %v1806_v4 }
 0x7e8   :  { %v2035_v12 = vpop.eup %2034 }
 0x7e9   :  { %v354_v13 = vmul.f32 %v2035_v12, %v346_v5  ;;  %v1757_v5 = vunpack.c.l.bf16 %v1806_v4 }
 0x7eb   :  { %v355_v14 = vmul.f32 %v2283_v45, %v354_v13 }
 0x7ed   :  { %v356_v15 = vadd.f32 %v2288_v47, %v355_v14 }
 0x7ef   :  { %v357_v16 = vpack.c.bf16 %v356_v15, %v356_v15 }
 0x7f1   :  { %1647 = vst.msk [vmem:[%s2647_s5 + $0x8] sm:$0xf] %vm164_vm2, %v357_v16  ;;  %1895 = vmatmul.mubr.msk.bf16.vlgmr.msra.gmra.mrb[4].mxu1 %vm25_vm0, %v357_v16 }
 0x7f2   :  { %1907 = vmatpush3.bf16.msra.mxu1 %v2234_v1  ;;  %1910 = vmatprep.mubr.msk.bf16.mxu1 %vm2197_vm1, %v2196_v0 }
 0x7f3   :  { %1908 = vmatprep.subr.bf16.mxu1 %v2196_v0 }
 0x7f6   :  { %1909 = vmatpush3.bf16.msra.mxu1 %v2247_v2 }
 0x7f7   :  { %1922 = vmatprep.subr.bf16.mxu1 %v2196_v0 }
 0x8c4   :  { %v404_v17 = vpop.f32.mrb[4].mxu1 }
 0x8c5   :  { %v428_v18 = vadd.f32 %v404_v17, %v2267_v6  ;;  %418 = vrot.lane.b32.xlu0 %v404_v17, %s2199_s2  ;;  %v1896_v19 = vpop.f32.mrb[5].mxu1  ;;  %v410_v23 = vadd.f32 %v404_v17, %v364_v22 }
 0x8c6   :  { %v407_v20 = vpop.f32.mrb[6].mxu1 }
 0x8c7   :  { %430 = vrot.lane.b32.xlu1 %v428_v18, %s2198_s24  ;;  %v1897_v21 = vpop.f32.mrb[7].mxu1  ;;  %v1652_v24 = vmul.f32 -1.442695, %v410_v23 }
 0x8c9   :  { %2036 = vpow2.f32 %v1652_v24 }
 0x8d3   :  { %v2037_v25 = vpop.eup %2036 }
 0x8d4   :  { %v414_v26 = vadd.f32 1.0, %v2037_v25 }
 0x8d6   :  { %2038 = vrcp.f32 %v414_v26 }
 0x8e0   :  { %v2039_v33 = vpop.eup %2038 }
 0x937   :  { %v419_v29 = vpop.permute.xlu0 %418 }
 0x938   :  { %v421_v30 = vadd.f32 %v1753_v28, %v419_v29 }
 0x939   :  { %v431_v32 = vpop.permute.xlu1 %430 }
 0x93a   :  { %v1653_v31 = vmul.f32 -1.442695, %v421_v30  ;;  %v433_v35 = vmul.f32 %v2039_v33, %v431_v32 }
 0x93c   :  { %2040 = vpow2.f32 %v1653_v31  ;;  %v434_v36 = vadd.f32 %v1754_v34, %v433_v35 }
 0x93e   :  { %2042 = vtanh.f32 %v434_v36 }
 0x946   :  { %v2041_v37 = vpop.eup %2040 }
 0x947   :  { %v425_v38 = vadd.f32 1.0, %v2041_v37 }
 0x948   :  { %v2043_v39 = vpop.eup %2042 }
 0x949   :  { %2044 = vrcp.f32 %v425_v38  ;;  %v436_v40 = vsub.f32 %v356_v15, %v2043_v39  ;;  %v1657_v15 = vld [vmem:[%s2644_s0 + $0x38] sm:$0xff]  }
 0x94a   :  { %v463_v18 = vunpack.c.l.bf16 %v1657_v15 }
 0x953   :  { %v2045_v41 = vpop.eup %2044 }
 0x954   :  { %v437_v42 = vmul.f32 %v2045_v41, %v436_v40 }
 0x956   :  { %v438_v43 = vadd.f32 %v2043_v39, %v437_v42 }
 0x958   :  { %v439_v44 = vsel %vm25_vm0, %v438_v43, 0.0 }
 0x959   :  { %440 = vadd.xlane.f32.xlu1 %v439_v44 }
 0x9e6   :  { %v441_v46 = vpop.xlane.xlu1 %440 }
 0x9e7   :  { %v442_v48 = vmul.f32 0.03125, %v441_v46 }
 0x9e9   :  { %v443_v49 = vsub.f32 %v438_v43, %v442_v48 }
 0x9eb   :  { %v444_v50 = vmul.f32 %v443_v49, %v443_v49 }
 0x9ed   :  { %v445_v51 = vsel %vm25_vm0, %v444_v50, 0.0 }
 0x9ee   :  { %446 = vadd.xlane.f32.xlu0 %v445_v51 }
 0xa7b   :  { %v447_v52 = vpop.xlane.xlu0 %446 }
 0xa7c   :  { %v448_v53 = vmul.f32 0.03125, %v447_v52 }
 0xa7e   :  { %v449_v54 = vadd.f32 1e-05, %v448_v53 }
 0xa80   :  { %2046 = vrsqrt.f32 %v449_v54  ;;  %v1807_v54 = vld [vmem:[%s2644_s0 + $0x40] sm:$0xff]  }
 0xa8a   :  { %v2047_v55 = vpop.eup %2046 }
 0xa8b   :  { %v451_v56 = vmul.f32 %v2047_v55, %v443_v49  ;;  %v558_v49 = vunpack.c.h.bf16 %v1657_v15  ;;  %v1761_v55 = vunpack.c.l.bf16 %v1807_v54 }
 0xa8d   :  { %v452_v57 = vmul.f32 %v2283_v45, %v451_v56 }
 0xa8f   :  { %v453_v58 = vadd.f32 %v2288_v47, %v452_v57 }
 0xa91   :  { %v454_v59 = vpack.c.bf16 %v453_v58, %v453_v58 }
 0xa93   :  { %1654 = vst.msk [vmem:[%s2647_s5 + $0xc] sm:$0xf] %vm164_vm2, %v454_v59  ;;  %1903 = vmatmul.mubr.msk.bf16.vlgmr.msra.gmra.mrb[8].mxu0 %vm25_vm0, %v454_v59 }
 0xa94   :  { %1915 = vmatpush3.bf16.msra.mxu0 %v2234_v1  ;;  %1918 = vmatprep.mubr.msk.bf16.mxu0 %vm2197_vm1, %v2196_v0 }
 0xa95   :  { %1916 = vmatprep.subr.bf16.mxu0 %v2196_v0 }
 0xa98   :  { %1917 = vmatpush3.bf16.msra.mxu0 %v2247_v2 }
 0xa99   :  { %1930 = vmatprep.subr.bf16.mxu0 %v2196_v0 }
 0xb66   :  { %v501_v60 = vpop.f32.mrb[8].mxu0 }
 0xb67   :  { %v525_v61 = vadd.f32 %v501_v60, %v2267_v6  ;;  %515 = vrot.lane.b32.xlu0 %v501_v60, %s2199_s2  ;;  %v1904_v62 = vpop.f32.mrb[9].mxu0  ;;  %v507_v7 = vadd.f32 %v1757_v5, %v501_v60 }
 0xb68   :  { %v504_v63 = vpop.f32.mrb[10].mxu0 }
 0xb69   :  { %527 = vrot.lane.b32.xlu1 %v525_v61, %s2198_s24  ;;  %v1905_v3 = vpop.f32.mrb[11].mxu0  ;;  %v1659_v8 = vmul.f32 -1.442695, %v507_v7  ;;  %v1762_v61 = vunpack.c.h.bf16 %v1807_v54 }
 0xb6b   :  { %2048 = vpow2.f32 %v1659_v8 }
 0xb75   :  { %v2049_v9 = vpop.eup %2048 }
 0xb76   :  { %v511_v10 = vadd.f32 1.0, %v2049_v9 }
 0xb78   :  { %2050 = vrcp.f32 %v511_v10 }
 0xb82   :  { %v2051_v17 = vpop.eup %2050 }
 0xbd9   :  { %v516_v12 = vpop.permute.xlu0 %515 }
 0xbda   :  { %v518_v13 = vadd.f32 %v1758_v11, %v516_v12 }
 0xbdb   :  { %v528_v16 = vpop.permute.xlu1 %527 }
 0xbdc   :  { %v1660_v14 = vmul.f32 -1.442695, %v518_v13  ;;  %v530_v19 = vmul.f32 %v2051_v17, %v528_v16 }
 0xbde   :  { %2052 = vpow2.f32 %v1660_v14  ;;  %v531_v20 = vadd.f32 %v530_v19, %v463_v18 }
 0xbe0   :  { %2054 = vtanh.f32 %v531_v20 }
 0xbe8   :  { %v2053_v21 = vpop.eup %2052 }
 0xbe9   :  { %v522_v22 = vadd.f32 1.0, %v2053_v21 }
 0xbea   :  { %v2055_v23 = vpop.eup %2054 }
 0xbeb   :  { %2056 = vrcp.f32 %v522_v22  ;;  %v533_v24 = vsub.f32 %v453_v58, %v2055_v23 }
 0xbf5   :  { %v2057_v25 = vpop.eup %2056 }
 0xbf6   :  { %v534_v26 = vmul.f32 %v2057_v25, %v533_v24 }
 0xbf8   :  { %v535_v27 = vadd.f32 %v2055_v23, %v534_v26 }
 0xbfa   :  { %v536_v28 = vsel %vm25_vm0, %v535_v27, 0.0 }
 0xbfb   :  { %537 = vadd.xlane.f32.xlu1 %v536_v28 }
 0xc88   :  { %v538_v29 = vpop.xlane.xlu1 %537 }
 0xc89   :  { %v539_v30 = vmul.f32 0.03125, %v538_v29 }
 0xc8b   :  { %v540_v31 = vsub.f32 %v535_v27, %v539_v30  ;;  %v1808_v30 = vld [vmem:[%s2644_s0 + $0x48] sm:$0xff]  }
 0xc8d   :  { %v541_v32 = vmul.f32 %v540_v31, %v540_v31 }
 0xc8f   :  { %v542_v33 = vsel %vm25_vm0, %v541_v32, 0.0 }
 0xc90   :  { %543 = vadd.xlane.f32.xlu0 %v542_v33 }
 0xd1d   :  { %v544_v34 = vpop.xlane.xlu0 %543 }
 0xd1e   :  { %v545_v35 = vmul.f32 0.03125, %v544_v34 }
 0xd20   :  { %v546_v36 = vadd.f32 1e-05, %v545_v35 }
 0xd22   :  { %2058 = vrsqrt.f32 %v546_v36  ;;  %v1766_v36 = vunpack.c.h.bf16 %v1808_v30 }
 0xd2c   :  { %v2059_v37 = vpop.eup %2058 }
 0xd2d   :  { %v548_v38 = vmul.f32 %v2059_v37, %v540_v31  ;;  %v1765_v31 = vunpack.c.l.bf16 %v1808_v30 }
 0xd2f   :  { %v549_v39 = vmul.f32 %v2283_v45, %v548_v38 }
 0xd31   :  { %v550_v40 = vadd.f32 %v2288_v47, %v549_v39 }
 0xd33   :  { %v551_v41 = vpack.c.bf16 %v550_v40, %v550_v40 }
 0xd35   :  { %1661 = vst.msk [vmem:[%s2647_s5 + $0x10] sm:$0xf] %vm164_vm2, %v551_v41  ;;  %1911 = vmatmul.mubr.msk.bf16.vlgmr.msra.gmra.mrb[8].mxu1 %vm25_vm0, %v551_v41 }
 0xd36   :  { %1923 = vmatpush3.bf16.msra.mxu1 %v2234_v1  ;;  %1926 = vmatprep.mubr.msk.bf16.mxu1 %vm2197_vm1, %v2196_v0 }
 0xd37   :  { %1924 = vmatprep.subr.bf16.mxu1 %v2196_v0 }
 0xd3a   :  { %1925 = vmatpush3.bf16.msra.mxu1 %v2247_v2 }
 0xd3b   :  { %1938 = vmatprep.subr.bf16.mxu1 %v2196_v0 }
 0xe08   :  { %v598_v42 = vpop.f32.mrb[8].mxu1 }
 0xe09   :  { %v622_v43 = vadd.f32 %v598_v42, %v2267_v6  ;;  %612 = vrot.lane.b32.xlu0 %v598_v42, %s2199_s2  ;;  %v1912_v44 = vpop.f32.mrb[9].mxu1  ;;  %v604_v50 = vadd.f32 %v598_v42, %v558_v49 }
 0xe0a   :  { %v601_v46 = vpop.f32.mrb[10].mxu1 }
 0xe0b   :  { %624 = vrot.lane.b32.xlu1 %v622_v43, %s2198_s24  ;;  %v1913_v48 = vpop.f32.mrb[11].mxu1  ;;  %v1666_v51 = vmul.f32 -1.442695, %v604_v50 }
 0xe0d   :  { %2060 = vpow2.f32 %v1666_v51 }
 0xe17   :  { %v2061_v52 = vpop.eup %2060 }
 0xe18   :  { %v608_v53 = vadd.f32 1.0, %v2061_v52 }
 0xe1a   :  { %2062 = vrcp.f32 %v608_v53 }
 0xe24   :  { %v2063_v60 = vpop.eup %2062 }
 0xe7b   :  { %v613_v56 = vpop.permute.xlu0 %612 }
 0xe7c   :  { %v615_v57 = vadd.f32 %v1761_v55, %v613_v56 }
 0xe7d   :  { %v625_v59 = vpop.permute.xlu1 %624 }
 0xe7e   :  { %v1667_v58 = vmul.f32 -1.442695, %v615_v57  ;;  %v627_v62 = vmul.f32 %v2063_v60, %v625_v59 }
 0xe80   :  { %2064 = vpow2.f32 %v1667_v58  ;;  %v628_v63 = vadd.f32 %v1762_v61, %v627_v62 }
 0xe82   :  { %2066 = vtanh.f32 %v628_v63 }
 0xe8a   :  { %v2065_v3 = vpop.eup %2064 }
 0xe8b   :  { %v619_v4 = vadd.f32 1.0, %v2065_v3 }
 0xe8c   :  { %v2067_v5 = vpop.eup %2066 }
 0xe8d   :  { %2068 = vrcp.f32 %v619_v4  ;;  %v630_v7 = vsub.f32 %v550_v40, %v2067_v5  ;;  %v1671_v40 = vld [vmem:[%s2644_s0 + $0x50] sm:$0xff]  }
 0xe8e   :  { %v657_v43 = vunpack.c.l.bf16 %v1671_v40 }
 0xe97   :  { %v2069_v8 = vpop.eup %2068 }
 0xe98   :  { %v631_v9 = vmul.f32 %v2069_v8, %v630_v7 }
 0xe9a   :  { %v632_v10 = vadd.f32 %v2067_v5, %v631_v9 }
 0xe9c   :  { %v633_v11 = vsel %vm25_vm0, %v632_v10, 0.0 }
 0xe9d   :  { %634 = vadd.xlane.f32.xlu1 %v633_v11 }
 0xf2a   :  { %v635_v12 = vpop.xlane.xlu1 %634 }
 0xf2b   :  { %v636_v13 = vmul.f32 0.03125, %v635_v12 }
 0xf2d   :  { %v637_v14 = vsub.f32 %v632_v10, %v636_v13 }
 0xf2f   :  { %v638_v15 = vmul.f32 %v637_v14, %v637_v14 }
 0xf31   :  { %v639_v16 = vsel %vm25_vm0, %v638_v15, 0.0 }
 0xf32   :  { %640 = vadd.xlane.f32.xlu0 %v639_v16 }
 0xfbf   :  { %v641_v17 = vpop.xlane.xlu0 %640 }
 0xfc0   :  { %v642_v18 = vmul.f32 0.03125, %v641_v17 }
 0xfc2   :  { %v643_v19 = vadd.f32 1e-05, %v642_v18 }
 0xfc4   :  { %2070 = vrsqrt.f32 %v643_v19  ;;  %v1809_v19 = vld [vmem:[%s2644_s0 + $0x58] sm:$0xff]  }
 0xfce   :  { %v2071_v20 = vpop.eup %2070 }
 0xfcf   :  { %v645_v21 = vmul.f32 %v2071_v20, %v637_v14  ;;  %v752_v14 = vunpack.c.h.bf16 %v1671_v40  ;;  %v1769_v20 = vunpack.c.l.bf16 %v1809_v19 }
 0xfd1   :  { %v646_v22 = vmul.f32 %v2283_v45, %v645_v21 }
 0xfd3   :  { %v647_v23 = vadd.f32 %v2288_v47, %v646_v22 }
 0xfd5   :  { %v648_v24 = vpack.c.bf16 %v647_v23, %v647_v23 }
 0xfd7   :  { %1668 = vst.msk [vmem:[%s2647_s5 + $0x14] sm:$0xf] %vm164_vm2, %v648_v24  ;;  %1919 = vmatmul.mubr.msk.bf16.vlgmr.msra.gmra.mrb[12].mxu0 %vm25_vm0, %v648_v24 }
 0xfd8   :  { %1931 = vmatpush3.bf16.msra.mxu0 %v2234_v1  ;;  %1934 = vmatprep.mubr.msk.bf16.mxu0 %vm2197_vm1, %v2196_v0 }
 0xfd9   :  { %1932 = vmatprep.subr.bf16.mxu0 %v2196_v0 }
 0xfdc   :  { %1933 = vmatpush3.bf16.msra.mxu0 %v2247_v2 }
 0xfdd   :  { %1946 = vmatprep.subr.bf16.mxu0 %v2196_v0 }
0x10aa   :  { %v695_v25 = vpop.f32.mrb[12].mxu0 }
0x10ab   :  { %v719_v26 = vadd.f32 %v695_v25, %v2267_v6  ;;  %709 = vrot.lane.b32.xlu0 %v695_v25, %s2199_s2  ;;  %v1920_v27 = vpop.f32.mrb[13].mxu0  ;;  %v701_v32 = vadd.f32 %v1765_v31, %v695_v25 }
0x10ac   :  { %v698_v28 = vpop.f32.mrb[14].mxu0 }
0x10ad   :  { %721 = vrot.lane.b32.xlu1 %v719_v26, %s2198_s24  ;;  %v1921_v29 = vpop.f32.mrb[15].mxu0  ;;  %v1673_v33 = vmul.f32 -1.442695, %v701_v32  ;;  %v1770_v26 = vunpack.c.h.bf16 %v1809_v19 }
0x10af   :  { %2072 = vpow2.f32 %v1673_v33 }
0x10b9   :  { %v2073_v34 = vpop.eup %2072 }
0x10ba   :  { %v705_v35 = vadd.f32 1.0, %v2073_v34 }
0x10bc   :  { %2074 = vrcp.f32 %v705_v35 }
0x10c6   :  { %v2075_v42 = vpop.eup %2074 }
0x111d   :  { %v710_v37 = vpop.permute.xlu0 %709 }
0x111e   :  { %v712_v38 = vadd.f32 %v1766_v36, %v710_v37 }
0x111f   :  { %v722_v41 = vpop.permute.xlu1 %721 }
0x1120   :  { %v1674_v39 = vmul.f32 -1.442695, %v712_v38  ;;  %v724_v44 = vmul.f32 %v2075_v42, %v722_v41 }
0x1122   :  { %2076 = vpow2.f32 %v1674_v39  ;;  %v725_v46 = vadd.f32 %v724_v44, %v657_v43 }
0x1124   :  { %2078 = vtanh.f32 %v725_v46 }
0x112c   :  { %v2077_v48 = vpop.eup %2076 }
0x112d   :  { %v716_v49 = vadd.f32 1.0, %v2077_v48 }
0x112e   :  { %v2079_v50 = vpop.eup %2078 }
0x112f   :  { %2080 = vrcp.f32 %v716_v49  ;;  %v727_v51 = vsub.f32 %v647_v23, %v2079_v50 }
0x1139   :  { %v2081_v52 = vpop.eup %2080 }
0x113a   :  { %v728_v53 = vmul.f32 %v2081_v52, %v727_v51 }
0x113c   :  { %v729_v54 = vadd.f32 %v2079_v50, %v728_v53 }
0x113e   :  { %v730_v55 = vsel %vm25_vm0, %v729_v54, 0.0 }
0x113f   :  { %731 = vadd.xlane.f32.xlu1 %v730_v55 }
0x11cc   :  { %v732_v56 = vpop.xlane.xlu1 %731 }
0x11cd   :  { %v733_v57 = vmul.f32 0.03125, %v732_v56 }
0x11cf   :  { %v734_v58 = vsub.f32 %v729_v54, %v733_v57 }
0x11d1   :  { %v735_v59 = vmul.f32 %v734_v58, %v734_v58 }
0x11d3   :  { %v736_v60 = vsel %vm25_vm0, %v735_v59, 0.0 }
0x11d4   :  { %737 = vadd.xlane.f32.xlu0 %v736_v60 }
0x1261   :  { %v738_v61 = vpop.xlane.xlu0 %737 }
0x1262   :  { %v739_v62 = vmul.f32 0.03125, %v738_v61 }
0x1264   :  { %v740_v63 = vadd.f32 1e-05, %v739_v62 }
0x1266   :  { %2082 = vrsqrt.f32 %v740_v63 }
0x1270   :  { %v2083_v3 = vpop.eup %2082 }
0x1271   :  { %v742_v4 = vmul.f32 %v2083_v3, %v734_v58 }
0x1273   :  { %v743_v5 = vmul.f32 %v2283_v45, %v742_v4  ;;  %v1685_v4 = vld [vmem:[%s2644_s0 + $0x68] sm:$0xff]  }
0x1275   :  { %v744_v7 = vadd.f32 %v2288_v47, %v743_v5 }
0x1277   :  { %v745_v8 = vpack.c.bf16 %v744_v7, %v744_v7 }
0x1279   :  { %1675 = vst.msk [vmem:[%s2647_s5 + $0x18] sm:$0xf] %vm164_vm2, %v745_v8  ;;  %1927 = vmatmul.mubr.msk.bf16.vlgmr.msra.gmra.mrb[12].mxu1 %vm25_vm0, %v745_v8  ;;  %v851_v8 = vunpack.c.l.bf16 %v1685_v4 }
0x127a   :  { %1939 = vmatpush3.bf16.msra.mxu1 %v2234_v1  ;;  %1942 = vmatprep.mubr.msk.bf16.mxu1 %vm2197_vm1, %v2196_v0 }
0x127b   :  { %1940 = vmatprep.subr.bf16.mxu1 %v2196_v0 }
0x127e   :  { %1941 = vmatpush3.bf16.msra.mxu1 %v2247_v2 }
0x127f   :  { %1954 = vmatprep.subr.bf16.mxu1 %v2196_v0 }
0x134c   :  { %v792_v9 = vpop.f32.mrb[12].mxu1 }
0x134d   :  { %v816_v10 = vadd.f32 %v792_v9, %v2267_v6  ;;  %806 = vrot.lane.b32.xlu0 %v792_v9, %s2199_s2  ;;  %v1928_v11 = vpop.f32.mrb[13].mxu1  ;;  %v798_v15 = vadd.f32 %v792_v9, %v752_v14 }
0x134e   :  { %v795_v12 = vpop.f32.mrb[14].mxu1 }
0x134f   :  { %818 = vrot.lane.b32.xlu1 %v816_v10, %s2198_s24  ;;  %v1929_v13 = vpop.f32.mrb[15].mxu1  ;;  %v1680_v16 = vmul.f32 -1.442695, %v798_v15 }
0x1351   :  { %2084 = vpow2.f32 %v1680_v16 }
0x135b   :  { %v2085_v17 = vpop.eup %2084 }
0x135c   :  { %v802_v18 = vadd.f32 1.0, %v2085_v17 }
0x135e   :  { %2086 = vrcp.f32 %v802_v18 }
0x1368   :  { %v2087_v25 = vpop.eup %2086 }
0x13bf   :  { %v807_v21 = vpop.permute.xlu0 %806 }
0x13c0   :  { %v809_v22 = vadd.f32 %v1769_v20, %v807_v21 }
0x13c1   :  { %v819_v24 = vpop.permute.xlu1 %818 }
0x13c2   :  { %v1681_v23 = vmul.f32 -1.442695, %v809_v22  ;;  %v821_v27 = vmul.f32 %v2087_v25, %v819_v24 }
0x13c4   :  { %2088 = vpow2.f32 %v1681_v23  ;;  %v822_v28 = vadd.f32 %v1770_v26, %v821_v27 }
0x13c6   :  { %2090 = vtanh.f32 %v822_v28 }
0x13ce   :  { %v2089_v29 = vpop.eup %2088 }
0x13cf   :  { %v813_v30 = vadd.f32 1.0, %v2089_v29 }
0x13d0   :  { %v2091_v31 = vpop.eup %2090 }
0x13d1   :  { %2092 = vrcp.f32 %v813_v30  ;;  %v824_v32 = vsub.f32 %v744_v7, %v2091_v31 }
0x13db   :  { %v2093_v33 = vpop.eup %2092 }
0x13dc   :  { %v825_v34 = vmul.f32 %v2093_v33, %v824_v32  ;;  %v2483_v32 = vld [vmem:[%s2642_s1] sm:$0xff]  }
0x13de   :  { %v826_v35 = vadd.f32 %v2091_v31, %v825_v34 }
0x13e0   :  { %v827_v36 = vsel %vm25_vm0, %v826_v35, 0.0 }
0x13e1   :  { %828 = vadd.xlane.f32.xlu1 %v827_v36 }
0x146e   :  { %v829_v37 = vpop.xlane.xlu1 %828 }
0x146f   :  { %v830_v38 = vmul.f32 0.03125, %v829_v37  ;;  %v946_v37 = vunpack.c.h.bf16 %v1685_v4 }
0x1471   :  { %v831_v39 = vsub.f32 %v826_v35, %v830_v38 }
0x1473   :  { %v832_v40 = vmul.f32 %v831_v39, %v831_v39 }
0x1475   :  { %v833_v41 = vsel %vm25_vm0, %v832_v40, 0.0 }
0x1476   :  { %834 = vadd.xlane.f32.xlu0 %v833_v41 }
0x1503   :  { %v835_v42 = vpop.xlane.xlu0 %834 }
0x1504   :  { %v836_v43 = vmul.f32 0.03125, %v835_v42  ;;  %v1811_v42 = vld [vmem:[%s2644_s0 + $0x70] sm:$0xff]  }
0x1506   :  { %v837_v44 = vadd.f32 1e-05, %v836_v43  ;;  %v1777_v43 = vunpack.c.l.bf16 %v1811_v42 }
0x1508   :  { %2094 = vrsqrt.f32 %v837_v44 }
0x1512   :  { %v2095_v46 = vpop.eup %2094 }
0x1513   :  { %v839_v48 = vmul.f32 %v2095_v46, %v831_v39 }
0x1515   :  { %v840_v49 = vmul.f32 %v2283_v45, %v839_v48 }
0x1517   :  { %v841_v50 = vadd.f32 %v2288_v47, %v840_v49 }
0x1519   :  { %v842_v51 = vpack.c.bf16 %v841_v50, %v841_v50 }
0x151b   :  { %1682 = vst.msk [vmem:[%s2647_s5 + $0x1c] sm:$0xf] %vm164_vm2, %v842_v51  ;;  %1935 = vmatmul.mubr.msk.bf16.vlgmr.msra.gmra.mrb[16].mxu0 %vm25_vm0, %v842_v51  ;;  %v1778_v51 = vunpack.c.h.bf16 %v1811_v42 }
0x151c   :  { %1947 = vmatpush3.bf16.msra.mxu0 %v2234_v1  ;;  %1950 = vmatprep.mubr.msk.bf16.mxu0 %vm2197_vm1, %v2196_v0  ;;  %v1810_v1 = vld [vmem:[%s2644_s0 + $0x60] sm:$0xff]  }
0x151d   :  { %1948 = vmatprep.subr.bf16.mxu0 %v2196_v0  ;;  %v1773_v57 = vunpack.c.l.bf16 %v1810_v1  ;;  %v1774_v61 = vunpack.c.h.bf16 %v1810_v1 }
0x1520   :  { %1949 = vmatpush3.bf16.msra.mxu0 %v2247_v2 }
0x1521   :  { %1962 = vmatprep.subr.bf16.mxu0 %v2196_v0 }
0x15ee   :  { %v889_v52 = vpop.f32.mrb[16].mxu0 }
0x15ef   :  { %v913_v53 = vadd.f32 %v889_v52, %v2267_v6  ;;  %903 = vrot.lane.b32.xlu0 %v889_v52, %s2199_s2  ;;  %v1936_v54 = vpop.f32.mrb[17].mxu0  ;;  %v895_v58 = vadd.f32 %v1773_v57, %v889_v52 }
0x15f0   :  { %v892_v55 = vpop.f32.mrb[18].mxu0 }
0x15f1   :  { %915 = vrot.lane.b32.xlu1 %v913_v53, %s2198_s24  ;;  %v1937_v56 = vpop.f32.mrb[19].mxu0  ;;  %v1687_v59 = vmul.f32 -1.442695, %v895_v58 }
0x15f3   :  { %2096 = vpow2.f32 %v1687_v59 }
0x15fd   :  { %v2097_v2 = vpop.eup %2096 }
0x15fe   :  { %v899_v60 = vadd.f32 1.0, %v2097_v2 }
0x1600   :  { %2098 = vrcp.f32 %v899_v60 }
0x160a   :  { %v2099_v7 = vpop.eup %2098 }
0x1661   :  { %v904_v62 = vpop.permute.xlu0 %903 }
0x1662   :  { %v906_v63 = vadd.f32 %v1774_v61, %v904_v62 }
0x1663   :  { %v916_v5 = vpop.permute.xlu1 %915 }
0x1664   :  { %v1688_v3 = vmul.f32 -1.442695, %v906_v63  ;;  %v918_v9 = vmul.f32 %v2099_v7, %v916_v5 }
0x1666   :  { %2100 = vpow2.f32 %v1688_v3  ;;  %v919_v10 = vadd.f32 %v918_v9, %v851_v8 }
0x1668   :  { %2102 = vtanh.f32 %v919_v10  ;;  %v2507_v10 = vld [vmem:[%s2645_s3] ss:$0 sm:$0xff] }
0x1670   :  { %v2101_v11 = vpop.eup %2100 }
0x1671   :  { %v910_v12 = vadd.f32 1.0, %v2101_v11 }
0x1672   :  { %v2103_v13 = vpop.eup %2102 }
0x1673   :  { %2104 = vrcp.f32 %v910_v12  ;;  %v921_v14 = vsub.f32 %v841_v50, %v2103_v13  ;;  %v2513_v12 = vld [vmem:[%s2646_s4] ss:$0 sm:$0xff] }
0x167d   :  { %v2105_v15 = vpop.eup %2104 }
0x167e   :  { %v922_v16 = vmul.f32 %v2105_v15, %v921_v14 }
0x1680   :  { %v923_v17 = vadd.f32 %v2103_v13, %v922_v16 }
0x1682   :  { %v924_v18 = vsel %vm25_vm0, %v923_v17, 0.0 }
0x1683   :  { %925 = vadd.xlane.f32.xlu1 %v924_v18 }
0x1710   :  { %v926_v19 = vpop.xlane.xlu1 %925 }
0x1711   :  { %v927_v20 = vmul.f32 0.03125, %v926_v19 }
0x1713   :  { %v928_v21 = vsub.f32 %v923_v17, %v927_v20  ;;  %v1812_v20 = vld [vmem:[%s2644_s0 + $0x78] sm:$0xff]  }
0x1715   :  { %v929_v22 = vmul.f32 %v928_v21, %v928_v21 }
0x1717   :  { %v930_v23 = vsel %vm25_vm0, %v929_v22, 0.0 }
0x1718   :  { %931 = vadd.xlane.f32.xlu0 %v930_v23 }
0x17a5   :  { %v932_v24 = vpop.xlane.xlu0 %931 }
0x17a6   :  { %v933_v25 = vmul.f32 0.03125, %v932_v24 }
0x17a8   :  { %v934_v26 = vadd.f32 1e-05, %v933_v25 }
0x17aa   :  { %2106 = vrsqrt.f32 %v934_v26  ;;  %v1782_v26 = vunpack.c.h.bf16 %v1812_v20 }
0x17b4   :  { %v2107_v27 = vpop.eup %2106 }
0x17b5   :  { %v936_v28 = vmul.f32 %v2107_v27, %v928_v21  ;;  %v1781_v21 = vunpack.c.l.bf16 %v1812_v20 }
0x17b7   :  { %v937_v29 = vmul.f32 %v2283_v45, %v936_v28  ;;  %v2492_v45 = vld [vmem:[%s2642_s1 + $0x8] sm:$0xff]  }
0x17b9   :  { %v938_v30 = vadd.f32 %v2288_v47, %v937_v29 }
0x17bb   :  { %v939_v31 = vpack.c.bf16 %v938_v30, %v938_v30 }
0x17bd   :  { %1689 = vst.msk [vmem:[%s2647_s5 + $0x20] sm:$0xf] %vm164_vm2, %v939_v31  ;;  %1943 = vmatmul.mubr.msk.bf16.vlgmr.msra.gmra.mrb[16].mxu1 %vm25_vm0, %v939_v31 }
0x17be   :  { %1955 = vmatpush3.bf16.msra.mxu1 %v2483_v32  ;;  %1958 = vmatprep.mubr.msk.bf16.mxu1 %vm2197_vm1, %v2196_v0 }
0x17bf   :  { %1956 = vmatprep.subr.bf16.mxu1 %v2196_v0 }
0x17c2   :  { %1957 = vmatpush3.bf16.msra.mxu1 %v2492_v45 }
0x17c3   :  { %1970 = vmatprep.subr.bf16.mxu1 %v2196_v0 }
0x1890   :  { %v986_v47 = vpop.f32.mrb[16].mxu1 }
0x1891   :  { %v1010_v33 = vadd.f32 %v986_v47, %v2267_v6  ;;  %1000 = vrot.lane.b32.xlu0 %v986_v47, %s2199_s2  ;;  %v1944_v34 = vpop.f32.mrb[17].mxu1  ;;  %v992_v38 = vadd.f32 %v986_v47, %v946_v37 }
0x1892   :  { %v989_v35 = vpop.f32.mrb[18].mxu1 }
0x1893   :  { %1012 = vrot.lane.b32.xlu1 %v1010_v33, %s2198_s24  ;;  %v1945_v36 = vpop.f32.mrb[19].mxu1  ;;  %v1694_v39 = vmul.f32 -1.442695, %v992_v38 }
0x1895   :  { %2108 = vpow2.f32 %v1694_v39 }
0x189f   :  { %v2109_v40 = vpop.eup %2108 }
0x18a0   :  { %v996_v41 = vadd.f32 1.0, %v2109_v40 }
0x18a2   :  { %2110 = vrcp.f32 %v996_v41 }
0x18ac   :  { %v2111_v50 = vpop.eup %2110 }
0x1903   :  { %v1001_v44 = vpop.permute.xlu0 %1000 }
0x1904   :  { %v1003_v46 = vadd.f32 %v1777_v43, %v1001_v44 }
0x1905   :  { %v1013_v49 = vpop.permute.xlu1 %1012 }
0x1906   :  { %v1695_v48 = vmul.f32 -1.442695, %v1003_v46  ;;  %v1015_v52 = vmul.f32 %v2111_v50, %v1013_v49 }
0x1908   :  { %2112 = vpow2.f32 %v1695_v48  ;;  %v1016_v53 = vadd.f32 %v1778_v51, %v1015_v52 }
0x190a   :  { %2114 = vtanh.f32 %v1016_v53 }
0x1912   :  { %v2113_v54 = vpop.eup %2112 }
0x1913   :  { %v1007_v55 = vadd.f32 1.0, %v2113_v54 }
0x1914   :  { %v2115_v56 = vpop.eup %2114 }
0x1915   :  { %2116 = vrcp.f32 %v1007_v55  ;;  %v1018_v1 = vsub.f32 %v938_v30, %v2115_v56  ;;  %v1699_v30 = vld [vmem:[%s2644_s0 + $0x80] sm:$0xff]  }
0x1916   :  { %v1045_v33 = vunpack.c.l.bf16 %v1699_v30 }
0x191f   :  { %v2117_v57 = vpop.eup %2116 }
0x1920   :  { %v1019_v58 = vmul.f32 %v2117_v57, %v1018_v1 }
0x1922   :  { %v1020_v59 = vadd.f32 %v2115_v56, %v1019_v58 }
0x1924   :  { %v1021_v2 = vsel %vm25_vm0, %v1020_v59, 0.0 }
0x1925   :  { %1022 = vadd.xlane.f32.xlu1 %v1021_v2 }
0x19b2   :  { %v1023_v60 = vpop.xlane.xlu1 %1022 }
0x19b3   :  { %v1024_v61 = vmul.f32 0.03125, %v1023_v60 }
0x19b5   :  { %v1025_v62 = vsub.f32 %v1020_v59, %v1024_v61 }
0x19b7   :  { %v1026_v63 = vmul.f32 %v1025_v62, %v1025_v62 }
0x19b9   :  { %v1027_v3 = vsel %vm25_vm0, %v1026_v63, 0.0 }
0x19ba   :  { %1028 = vadd.xlane.f32.xlu0 %v1027_v3 }
0x1a47   :  { %v1029_v4 = vpop.xlane.xlu0 %1028 }
0x1a48   :  { %v1030_v5 = vmul.f32 0.03125, %v1029_v4 }
0x1a4a   :  { %v1031_v7 = vadd.f32 1e-05, %v1030_v5 }
0x1a4c   :  { %2118 = vrsqrt.f32 %v1031_v7  ;;  %v1813_v7 = vld [vmem:[%s2644_s0 + $0x88] sm:$0xff]  }
0x1a56   :  { %v2119_v8 = vpop.eup %2118 }
0x1a57   :  { %v1033_v9 = vmul.f32 %v2119_v8, %v1025_v62  ;;  %v1140_v62 = vunpack.c.h.bf16 %v1699_v30  ;;  %v1785_v8 = vunpack.c.l.bf16 %v1813_v7 }
0x1a59   :  { %v1034_v11 = vmul.f32 %v2507_v10, %v1033_v9 }
0x1a5b   :  { %v1035_v13 = vadd.f32 %v2513_v12, %v1034_v11 }
0x1a5d   :  { %v1036_v14 = vpack.c.bf16 %v1035_v13, %v1035_v13 }
0x1a5f   :  { %1696 = vst.msk [vmem:[%s2647_s5 + $0x24] sm:$0xf] %vm164_vm2, %v1036_v14  ;;  %1951 = vmatmul.mubr.msk.bf16.vlgmr.msra.gmra.mrb[20].mxu0 %vm25_vm0, %v1036_v14 }
0x1a60   :  { %1963 = vmatpush3.bf16.msra.mxu0 %v2483_v32  ;;  %1966 = vmatprep.mubr.msk.bf16.mxu0 %vm2197_vm1, %v2196_v0 }
0x1a61   :  { %1964 = vmatprep.subr.bf16.mxu0 %v2196_v0 }
0x1a64   :  { %1965 = vmatpush3.bf16.msra.mxu0 %v2492_v45 }
0x1a65   :  { %1978 = vmatprep.subr.bf16.mxu0 %v2196_v0 }
0x1b32   :  { %v1083_v15 = vpop.f32.mrb[20].mxu0 }
0x1b33   :  { %v1107_v16 = vadd.f32 %v1083_v15, %v2267_v6  ;;  %1097 = vrot.lane.b32.xlu0 %v1083_v15, %s2199_s2  ;;  %v1952_v17 = vpop.f32.mrb[21].mxu0  ;;  %v1089_v22 = vadd.f32 %v1781_v21, %v1083_v15 }
0x1b34   :  { %v1086_v18 = vpop.f32.mrb[22].mxu0 }
0x1b35   :  { %1109 = vrot.lane.b32.xlu1 %v1107_v16, %s2198_s24  ;;  %v1953_v19 = vpop.f32.mrb[23].mxu0  ;;  %v1701_v23 = vmul.f32 -1.442695, %v1089_v22  ;;  %v1786_v16 = vunpack.c.h.bf16 %v1813_v7 }
0x1b37   :  { %2120 = vpow2.f32 %v1701_v23 }
0x1b41   :  { %v2121_v24 = vpop.eup %2120 }
0x1b42   :  { %v1093_v25 = vadd.f32 1.0, %v2121_v24 }
0x1b44   :  { %2122 = vrcp.f32 %v1093_v25 }
0x1b4e   :  { %v2123_v47 = vpop.eup %2122 }
0x1ba5   :  { %v1098_v27 = vpop.permute.xlu0 %1097 }
0x1ba6   :  { %v1100_v28 = vadd.f32 %v1782_v26, %v1098_v27 }
0x1ba7   :  { %v1110_v31 = vpop.permute.xlu1 %1109 }
0x1ba8   :  { %v1702_v29 = vmul.f32 -1.442695, %v1100_v28  ;;  %v1112_v34 = vmul.f32 %v2123_v47, %v1110_v31 }
0x1baa   :  { %2124 = vpow2.f32 %v1702_v29  ;;  %v1113_v35 = vadd.f32 %v1112_v34, %v1045_v33 }
0x1bac   :  { %2126 = vtanh.f32 %v1113_v35 }
0x1bb4   :  { %v2125_v36 = vpop.eup %2124 }
0x1bb5   :  { %v1104_v37 = vadd.f32 1.0, %v2125_v36 }
0x1bb6   :  { %v2127_v38 = vpop.eup %2126 }
0x1bb7   :  { %2128 = vrcp.f32 %v1104_v37  ;;  %v1115_v39 = vsub.f32 %v1035_v13, %v2127_v38 }
0x1bc1   :  { %v2129_v40 = vpop.eup %2128 }
0x1bc2   :  { %v1116_v41 = vmul.f32 %v2129_v40, %v1115_v39 }
0x1bc4   :  { %v1117_v42 = vadd.f32 %v2127_v38, %v1116_v41 }
0x1bc6   :  { %v1118_v43 = vsel %vm25_vm0, %v1117_v42, 0.0 }
0x1bc7   :  { %1119 = vadd.xlane.f32.xlu1 %v1118_v43 }
0x1c54   :  { %v1120_v44 = vpop.xlane.xlu1 %1119 }
0x1c55   :  { %v1121_v46 = vmul.f32 0.03125, %v1120_v44 }
0x1c57   :  { %v1122_v48 = vsub.f32 %v1117_v42, %v1121_v46  ;;  %v1814_v46 = vld [vmem:[%s2644_s0 + $0x90] sm:$0xff]  }
0x1c59   :  { %v1123_v49 = vmul.f32 %v1122_v48, %v1122_v48 }
0x1c5b   :  { %v1124_v50 = vsel %vm25_vm0, %v1123_v49, 0.0 }
0x1c5c   :  { %1125 = vadd.xlane.f32.xlu0 %v1124_v50 }
0x1ce9   :  { %v1126_v51 = vpop.xlane.xlu0 %1125 }
0x1cea   :  { %v1127_v52 = vmul.f32 0.03125, %v1126_v51 }
0x1cec   :  { %v1128_v53 = vadd.f32 1e-05, %v1127_v52 }
0x1cee   :  { %2130 = vrsqrt.f32 %v1128_v53  ;;  %v1790_v53 = vunpack.c.h.bf16 %v1814_v46 }
0x1cf8   :  { %v2131_v54 = vpop.eup %2130 }
0x1cf9   :  { %v1130_v55 = vmul.f32 %v2131_v54, %v1122_v48  ;;  %v1789_v48 = vunpack.c.l.bf16 %v1814_v46 }
0x1cfb   :  { %v1131_v56 = vmul.f32 %v2507_v10, %v1130_v55 }
0x1cfd   :  { %v1132_v1 = vadd.f32 %v2513_v12, %v1131_v56 }
0x1cff   :  { %v1133_v57 = vpack.c.bf16 %v1132_v1, %v1132_v1 }
0x1d01   :  { %1703 = vst.msk [vmem:[%s2647_s5 + $0x28] sm:$0xf] %vm164_vm2, %v1133_v57  ;;  %1959 = vmatmul.mubr.msk.bf16.vlgmr.msra.gmra.mrb[20].mxu1 %vm25_vm0, %v1133_v57 }
0x1d02   :  { %1971 = vmatpush3.bf16.msra.mxu1 %v2483_v32  ;;  %1974 = vmatprep.mubr.msk.bf16.mxu1 %vm2197_vm1, %v2196_v0 }
0x1d03   :  { %1972 = vmatprep.subr.bf16.mxu1 %v2196_v0 }
0x1d06   :  { %1973 = vmatpush3.bf16.msra.mxu1 %v2492_v45 }
0x1d07   :  { %1986 = vmatprep.subr.bf16.mxu1 %v2196_v0 }
0x1dd4   :  { %v1180_v58 = vpop.f32.mrb[20].mxu1 }
0x1dd5   :  { %v1204_v59 = vadd.f32 %v1180_v58, %v2267_v6  ;;  %1194 = vrot.lane.b32.xlu0 %v1180_v58, %s2199_s2  ;;  %v1960_v2 = vpop.f32.mrb[21].mxu1  ;;  %v1186_v63 = vadd.f32 %v1180_v58, %v1140_v62 }
0x1dd6   :  { %v1183_v60 = vpop.f32.mrb[22].mxu1 }
0x1dd7   :  { %1206 = vrot.lane.b32.xlu1 %v1204_v59, %s2198_s24  ;;  %v1961_v61 = vpop.f32.mrb[23].mxu1  ;;  %v1708_v3 = vmul.f32 -1.442695, %v1186_v63 }
0x1dd9   :  { %2132 = vpow2.f32 %v1708_v3 }
0x1de3   :  { %v2133_v4 = vpop.eup %2132 }
0x1de4   :  { %v1190_v5 = vadd.f32 1.0, %v2133_v4 }
0x1de6   :  { %2134 = vrcp.f32 %v1190_v5 }
0x1df0   :  { %v2135_v15 = vpop.eup %2134 }
0x1e47   :  { %v1195_v9 = vpop.permute.xlu0 %1194 }
0x1e48   :  { %v1197_v11 = vadd.f32 %v1785_v8, %v1195_v9 }
0x1e49   :  { %v1207_v14 = vpop.permute.xlu1 %1206 }
0x1e4a   :  { %v1709_v13 = vmul.f32 -1.442695, %v1197_v11  ;;  %v1209_v17 = vmul.f32 %v2135_v15, %v1207_v14 }
0x1e4c   :  { %2136 = vpow2.f32 %v1709_v13  ;;  %v1210_v18 = vadd.f32 %v1786_v16, %v1209_v17 }
0x1e4e   :  { %2138 = vtanh.f32 %v1210_v18 }
0x1e56   :  { %v2137_v19 = vpop.eup %2136 }
0x1e57   :  { %v1201_v20 = vadd.f32 1.0, %v2137_v19 }
0x1e58   :  { %v2139_v21 = vpop.eup %2138 }
0x1e59   :  { %2140 = vrcp.f32 %v1201_v20  ;;  %v1212_v22 = vsub.f32 %v1132_v1, %v2139_v21  ;;  %v1713_v1 = vld [vmem:[%s2644_s0 + $0x98] sm:$0xff]  }
0x1e5a   :  { %v1239_v59 = vunpack.c.l.bf16 %v1713_v1 }
0x1e63   :  { %v2141_v23 = vpop.eup %2140 }
0x1e64   :  { %v1213_v24 = vmul.f32 %v2141_v23, %v1212_v22 }
0x1e66   :  { %v1214_v25 = vadd.f32 %v2139_v21, %v1213_v24 }
0x1e68   :  { %v1215_v26 = vsel %vm25_vm0, %v1214_v25, 0.0 }
0x1e69   :  { %1216 = vadd.xlane.f32.xlu1 %v1215_v26 }
0x1ef6   :  { %v1217_v27 = vpop.xlane.xlu1 %1216 }
0x1ef7   :  { %v1218_v28 = vmul.f32 0.03125, %v1217_v27 }
0x1ef9   :  { %v1219_v29 = vsub.f32 %v1214_v25, %v1218_v28 }
0x1efb   :  { %v1220_v30 = vmul.f32 %v1219_v29, %v1219_v29 }
0x1efd   :  { %v1221_v31 = vsel %vm25_vm0, %v1220_v30, 0.0 }
0x1efe   :  { %1222 = vadd.xlane.f32.xlu0 %v1221_v31 }
0x1f8b   :  { %v1223_v47 = vpop.xlane.xlu0 %1222 }
0x1f8c   :  { %v1224_v33 = vmul.f32 0.03125, %v1223_v47 }
0x1f8e   :  { %v1225_v34 = vadd.f32 1e-05, %v1224_v33 }
0x1f90   :  { %2142 = vrsqrt.f32 %v1225_v34 }
0x1f9a   :  { %v2143_v35 = vpop.eup %2142 }
0x1f9b   :  { %v1227_v36 = vmul.f32 %v2143_v35, %v1219_v29  ;;  %v1334_v29 = vunpack.c.h.bf16 %v1713_v1 }
0x1f9d   :  { %v1228_v37 = vmul.f32 %v2507_v10, %v1227_v36 }
0x1f9f   :  { %v1229_v38 = vadd.f32 %v2513_v12, %v1228_v37 }
0x1fa1   :  { %v1230_v39 = vpack.c.bf16 %v1229_v38, %v1229_v38 }
0x1fa3   :  { %1710 = vst.msk [vmem:[%s2647_s5 + $0x2c] sm:$0xf] %vm164_vm2, %v1230_v39  ;;  %1967 = vmatmul.mubr.msk.bf16.vlgmr.msra.gmra.mrb[24].mxu0 %vm25_vm0, %v1230_v39 }
0x1fa4   :  { %1979 = vmatpush3.bf16.msra.mxu0 %v2483_v32  ;;  %1982 = vmatprep.mubr.msk.bf16.mxu0 %vm2197_vm1, %v2196_v0 }
0x1fa5   :  { %1980 = vmatprep.subr.bf16.mxu0 %v2196_v0 }
0x1fa8   :  { %1981 = vmatpush3.bf16.msra.mxu0 %v2492_v45 }
0x2076   :  { %v1277_v40 = vpop.f32.mrb[24].mxu0 }
0x2077   :  { %v1301_v41 = vadd.f32 %v1277_v40, %v2267_v6  ;;  %1291 = vrot.lane.b32.xlu0 %v1277_v40, %s2199_s2  ;;  %v1968_v42 = vpop.f32.mrb[25].mxu0  ;;  %v1283_v49 = vadd.f32 %v1789_v48, %v1277_v40 }
0x2078   :  { %v1280_v43 = vpop.f32.mrb[26].mxu0 }
0x2079   :  { %1303 = vrot.lane.b32.xlu1 %v1301_v41, %s2198_s24  ;;  %v1969_v44 = vpop.f32.mrb[27].mxu0  ;;  %v1715_v50 = vmul.f32 -1.442695, %v1283_v49 }
0x207b   :  { %2144 = vpow2.f32 %v1715_v50 }
0x2085   :  { %v2145_v51 = vpop.eup %2144 }
0x2086   :  { %v1287_v52 = vadd.f32 1.0, %v2145_v51 }
0x2088   :  { %2146 = vrcp.f32 %v1287_v52 }
0x2092   :  { %v2147_v58 = vpop.eup %2146 }
0x20e9   :  { %v1292_v54 = vpop.permute.xlu0 %1291 }
0x20ea   :  { %v1294_v55 = vadd.f32 %v1790_v53, %v1292_v54 }
0x20eb   :  { %v1304_v57 = vpop.permute.xlu1 %1303 }
0x20ec   :  { %v1716_v56 = vmul.f32 -1.442695, %v1294_v55  ;;  %v1306_v2 = vmul.f32 %v2147_v58, %v1304_v57 }
0x20ee   :  { %2148 = vpow2.f32 %v1716_v56  ;;  %v1307_v60 = vadd.f32 %v1306_v2, %v1239_v59 }
0x20f0   :  { %2150 = vtanh.f32 %v1307_v60 }
0x20f8   :  { %v2149_v61 = vpop.eup %2148 }
0x20f9   :  { %v1298_v62 = vadd.f32 1.0, %v2149_v61 }
0x20fa   :  { %v2151_v63 = vpop.eup %2150 }
0x20fb   :  { %2152 = vrcp.f32 %v1298_v62  ;;  %v1309_v3 = vsub.f32 %v1229_v38, %v2151_v63 }
0x2105   :  { %v2153_v4 = vpop.eup %2152 }
0x2106   :  { %v1310_v5 = vmul.f32 %v2153_v4, %v1309_v3 }
0x2108   :  { %v1311_v7 = vadd.f32 %v2151_v63, %v1310_v5 }
0x210a   :  { %v1312_v8 = vsel %vm25_vm0, %v1311_v7, 0.0 }
0x210b   :  { %1313 = vadd.xlane.f32.xlu1 %v1312_v8 }
0x2198   :  { %v1314_v9 = vpop.xlane.xlu1 %1313 }
0x2199   :  { %v1315_v11 = vmul.f32 0.03125, %v1314_v9 }
0x219b   :  { %v1316_v13 = vsub.f32 %v1311_v7, %v1315_v11  ;;  %v1816_v7 = vld [vmem:[%s2644_s0 + $0xa8] sm:$0xff]  }
0x219c   :  { %v1797_v8 = vunpack.c.l.bf16 %v1816_v7 }
0x219d   :  { %v1317_v14 = vmul.f32 %v1316_v13, %v1316_v13 }
0x219f   :  { %v1318_v15 = vsel %vm25_vm0, %v1317_v14, 0.0 }
0x21a0   :  { %1319 = vadd.xlane.f32.xlu0 %v1318_v15  ;;  %v1798_v15 = vunpack.c.h.bf16 %v1816_v7 }
0x222d   :  { %v1320_v16 = vpop.xlane.xlu0 %1319 }
0x222e   :  { %v1321_v17 = vmul.f32 0.03125, %v1320_v16 }
0x2230   :  { %v1322_v18 = vadd.f32 1e-05, %v1321_v17 }
0x2232   :  { %2154 = vrsqrt.f32 %v1322_v18 }
0x223c   :  { %v2155_v19 = vpop.eup %2154 }
0x223d   :  { %v1324_v20 = vmul.f32 %v2155_v19, %v1316_v13  ;;  %v1727_v19 = vld [vmem:[%s2644_s0 + $0xb0] sm:$0xff]  }
0x223f   :  { %v1325_v21 = vmul.f32 %v2507_v10, %v1324_v20 }
0x2241   :  { %v1326_v22 = vadd.f32 %v2513_v12, %v1325_v21 }
0x2243   :  { %v1327_v23 = vpack.c.bf16 %v1326_v22, %v1326_v22 }
0x2245   :  { %1717 = vst.msk [vmem:[%s2647_s5 + $0x30] sm:$0xf] %vm164_vm2, %v1327_v23  ;;  %1975 = vmatmul.mubr.msk.bf16.vlgmr.msra.gmra.mrb[24].mxu1 %vm25_vm0, %v1327_v23 }
0x2246   :  { %1987 = vmatpush3.bf16.msra.mxu1 %v2483_v32  ;;  %1990 = vmatprep.mubr.msk.bf16.mxu1 %vm2197_vm1, %v2196_v0 }
0x2247   :  { %1988 = vmatprep.subr.bf16.mxu1 %v2196_v0  ;;  %v1815_v0 = vld [vmem:[%s2644_s0 + $0xa0] sm:$0xff]  }
0x2248   :  { %v1794_v38 = vunpack.c.h.bf16 %v1815_v0 }
0x224a   :  { %1989 = vmatpush3.bf16.msra.mxu1 %v2492_v45  ;;  %v1793_v45 = vunpack.c.l.bf16 %v1815_v0 }
0x2318   :  { %v1374_v24 = vpop.f32.mrb[24].mxu1 }
0x2319   :  { %v1398_v25 = vadd.f32 %v1374_v24, %v2267_v6  ;;  %1388 = vrot.lane.b32.xlu0 %v1374_v24, %s2199_s2  ;;  %v1976_v26 = vpop.f32.mrb[25].mxu1  ;;  %v1380_v30 = vadd.f32 %v1374_v24, %v1334_v29 }
0x231a   :  { %v1377_v27 = vpop.f32.mrb[26].mxu1 }
0x231b   :  { %1400 = vrot.lane.b32.xlu1 %v1398_v25, %s2198_s24  ;;  %v1977_v28 = vpop.f32.mrb[27].mxu1  ;;  %v1722_v32 = vmul.f32 -1.442695, %v1380_v30 }
0x231d   :  { %2156 = vpow2.f32 %v1722_v32 }
0x2327   :  { %v2157_v31 = vpop.eup %2156 }
0x2328   :  { %v1384_v47 = vadd.f32 1.0, %v2157_v31 }
0x232a   :  { %2158 = vrcp.f32 %v1384_v47 }
0x2334   :  { %v2159_v37 = vpop.eup %2158 }
0x238b   :  { %v1389_v33 = vpop.permute.xlu0 %1388 }
0x238c   :  { %v1391_v34 = vadd.f32 %v1793_v45, %v1389_v33 }
0x238d   :  { %v1401_v36 = vpop.permute.xlu1 %1400 }
0x238e   :  { %v1723_v35 = vmul.f32 -1.442695, %v1391_v34  ;;  %v1403_v39 = vmul.f32 %v2159_v37, %v1401_v36 }
0x2390   :  { %2160 = vpow2.f32 %v1723_v35  ;;  %v1404_v40 = vadd.f32 %v1794_v38, %v1403_v39 }
0x2392   :  { %2162 = vtanh.f32 %v1404_v40 }
0x239a   :  { %v2161_v41 = vpop.eup %2160 }
0x239b   :  { %v1395_v42 = vadd.f32 1.0, %v2161_v41 }
0x239c   :  { %v2163_v43 = vpop.eup %2162 }
0x239d   :  { %2164 = vrcp.f32 %v1395_v42  ;;  %v1406_v44 = vsub.f32 %v1326_v22, %v2163_v43  ;;  %v1433_v22 = vunpack.c.l.bf16 %v1727_v19 }
0x23a7   :  { %v2165_v46 = vpop.eup %2164 }
0x23a8   :  { %v1407_v48 = vmul.f32 %v2165_v46, %v1406_v44 }
0x23aa   :  { %v1408_v49 = vadd.f32 %v2163_v43, %v1407_v48 }
0x23ac   :  { %v1409_v50 = vsel %vm25_vm0, %v1408_v49, 0.0 }
0x23ad   :  { %1410 = vadd.xlane.f32.xlu1 %v1409_v50  ;;  %v1528_v50 = vunpack.c.h.bf16 %v1727_v19 }
0x243a   :  { %v1411_v51 = vpop.xlane.xlu1 %1410 }
0x243b   :  { %v1412_v52 = vmul.f32 0.03125, %v1411_v51 }
0x243d   :  { %v1413_v53 = vsub.f32 %v1408_v49, %v1412_v52 }
0x243f   :  { %v1414_v54 = vmul.f32 %v1413_v53, %v1413_v53 }
0x2441   :  { %v1415_v55 = vsel %vm25_vm0, %v1414_v54, 0.0 }
0x2442   :  { %1416 = vadd.xlane.f32.xlu0 %v1415_v55  ;;  %v1817_v55 = vld [vmem:[%s2644_s0 + $0xb8] sm:$0xff]  }
0x24cf   :  { %v1417_v56 = vpop.xlane.xlu0 %1416 }
0x24d0   :  { %v1418_v1 = vmul.f32 0.03125, %v1417_v56  ;;  %v1801_v56 = vunpack.c.l.bf16 %v1817_v55 }
0x24d2   :  { %v1419_v57 = vadd.f32 1e-05, %v1418_v1 }
0x24d4   :  { %2166 = vrsqrt.f32 %v1419_v57 }
0x24de   :  { %v2167_v58 = vpop.eup %2166 }
0x24df   :  { %v1421_v59 = vmul.f32 %v2167_v58, %v1413_v53 }
0x24e1   :  { %v1422_v2 = vmul.f32 %v2507_v10, %v1421_v59 }
0x24e3   :  { %v1423_v60 = vadd.f32 %v2513_v12, %v1422_v2  ;;  %v1802_v2 = vunpack.c.h.bf16 %v1817_v55 }
0x24e5   :  { %v1424_v61 = vpack.c.bf16 %v1423_v60, %v1423_v60 }
0x24e7   :  { %1724 = vst.msk [vmem:[%s2647_s5 + $0x34] sm:$0xf] %vm164_vm2, %v1424_v61  ;;  %1983 = vmatmul.mubr.msk.bf16.vlgmr.msra.gmra.mrb[28].mxu0 %vm25_vm0, %v1424_v61 }
0x25ba   :  { %v1471_v62 = vpop.f32.mrb[28].mxu0 }
0x25bb   :  { %v1495_v63 = vadd.f32 %v1471_v62, %v2267_v6  ;;  %1485 = vrot.lane.b32.xlu0 %v1471_v62, %s2199_s2  ;;  %v1984_v3 = vpop.f32.mrb[29].mxu0  ;;  %v1477_v9 = vadd.f32 %v1797_v8, %v1471_v62 }
0x25bc   :  { %v1474_v4 = vpop.f32.mrb[30].mxu0 }
0x25bd   :  { %1497 = vrot.lane.b32.xlu1 %v1495_v63, %s2198_s24  ;;  %v1985_v5 = vpop.f32.mrb[31].mxu0  ;;  %v1729_v11 = vmul.f32 -1.442695, %v1477_v9 }
0x25bf   :  { %2168 = vpow2.f32 %v1729_v11 }
0x25c9   :  { %v2169_v13 = vpop.eup %2168 }
0x25ca   :  { %v1481_v14 = vadd.f32 1.0, %v2169_v13 }
0x25cc   :  { %2170 = vrcp.f32 %v1481_v14 }
0x25d6   :  { %v2171_v21 = vpop.eup %2170 }
0x262d   :  { %v1486_v16 = vpop.permute.xlu0 %1485 }
0x262e   :  { %v1488_v17 = vadd.f32 %v1798_v15, %v1486_v16 }
0x262f   :  { %v1498_v20 = vpop.permute.xlu1 %1497 }
0x2630   :  { %v1730_v18 = vmul.f32 -1.442695, %v1488_v17  ;;  %v1500_v23 = vmul.f32 %v2171_v21, %v1498_v20 }
0x2632   :  { %2172 = vpow2.f32 %v1730_v18  ;;  %v1501_v24 = vadd.f32 %v1500_v23, %v1433_v22 }
0x2634   :  { %2174 = vtanh.f32 %v1501_v24 }
0x263c   :  { %v2173_v25 = vpop.eup %2172 }
0x263d   :  { %v1492_v26 = vadd.f32 1.0, %v2173_v25 }
0x263e   :  { %v2175_v27 = vpop.eup %2174 }
0x263f   :  { %2176 = vrcp.f32 %v1492_v26  ;;  %v1503_v28 = vsub.f32 %v1423_v60, %v2175_v27 }
0x2649   :  { %v2177_v29 = vpop.eup %2176 }
0x264a   :  { %v1504_v30 = vmul.f32 %v2177_v29, %v1503_v28 }
0x264c   :  { %v1505_v32 = vadd.f32 %v2175_v27, %v1504_v30 }
0x264e   :  { %v1506_v31 = vsel %vm25_vm0, %v1505_v32, 0.0 }
0x264f   :  { %1507 = vadd.xlane.f32.xlu1 %v1506_v31 }
0x26dc   :  { %v1508_v47 = vpop.xlane.xlu1 %1507 }
0x26dd   :  { %v1509_v0 = vmul.f32 0.03125, %v1508_v47 }
0x26df   :  { %v1510_v45 = vsub.f32 %v1505_v32, %v1509_v0 }
0x26e1   :  { %v1511_v33 = vmul.f32 %v1510_v45, %v1510_v45 }
0x26e3   :  { %v1512_v34 = vsel %vm25_vm0, %v1511_v33, 0.0 }
0x26e4   :  { %1513 = vadd.xlane.f32.xlu0 %v1512_v34 }
0x2771   :  { %v1514_v35 = vpop.xlane.xlu0 %1513 }
0x2772   :  { %v1515_v36 = vmul.f32 0.03125, %v1514_v35 }
0x2774   :  { %v1516_v37 = vadd.f32 1e-05, %v1515_v36 }
0x2776   :  { %2178 = vrsqrt.f32 %v1516_v37 }
0x2780   :  { %v2179_v38 = vpop.eup %2178 }
0x2781   :  { %v1518_v39 = vmul.f32 %v2179_v38, %v1510_v45 }
0x2783   :  { %v1519_v40 = vmul.f32 %v2507_v10, %v1518_v39 }
0x2785   :  { %v1520_v41 = vadd.f32 %v2513_v12, %v1519_v40 }
0x2787   :  { %v1521_v42 = vpack.c.bf16 %v1520_v41, %v1520_v41 }
0x2789   :  { %1731 = vst.msk [vmem:[%s2647_s5 + $0x38] sm:$0xf] %vm164_vm2, %v1521_v42  ;;  %1991 = vmatmul.mubr.msk.bf16.vlgmr.msra.gmra.mrb[28].mxu1 %vm25_vm0, %v1521_v42 }
0x285c   :  { %v1568_v43 = vpop.f32.mrb[28].mxu1 }
0x285d   :  { %v1592_v44 = vadd.f32 %v1568_v43, %v2267_v6  ;;  %1582 = vrot.lane.b32.xlu0 %v1568_v43, %s2199_s2  ;;  %v1992_v46 = vpop.f32.mrb[29].mxu1  ;;  %v1574_v51 = vadd.f32 %v1568_v43, %v1528_v50 }
0x285e   :  { %v1571_v48 = vpop.f32.mrb[30].mxu1 }
0x285f   :  { %1594 = vrot.lane.b32.xlu1 %v1592_v44, %s2198_s24  ;;  %v1993_v49 = vpop.f32.mrb[31].mxu1  ;;  %v1736_v52 = vmul.f32 -1.442695, %v1574_v51 }
0x2861   :  { %2180 = vpow2.f32 %v1736_v52 }
0x286b   :  { %v2181_v53 = vpop.eup %2180 }
0x286c   :  { %v1578_v54 = vadd.f32 1.0, %v2181_v53 }
0x286e   :  { %2182 = vrcp.f32 %v1578_v54 }
0x2878   :  { %v2183_v59 = vpop.eup %2182 }
0x28cf   :  { %v1583_v6 = vpop.permute.xlu0 %1582 }
0x28d0   :  { %v1585_v1 = vadd.f32 %v1801_v56, %v1583_v6 }
0x28d1   :  { %v1595_v58 = vpop.permute.xlu1 %1594 }
0x28d2   :  { %v1737_v57 = vmul.f32 -1.442695, %v1585_v1  ;;  %v1597_v60 = vmul.f32 %v2183_v59, %v1595_v58 }
0x28d4   :  { %2184 = vpow2.f32 %v1737_v57  ;;  %v1598_v61 = vadd.f32 %v1802_v2, %v1597_v60 }
0x28d6   :  { %2186 = vtanh.f32 %v1598_v61 }
0x28de   :  { %v2185_v62 = vpop.eup %2184 }
0x28df   :  { %v1589_v63 = vadd.f32 1.0, %v2185_v62 }
0x28e0   :  { %v2187_v3 = vpop.eup %2186 }
0x28e1   :  { %2188 = vrcp.f32 %v1589_v63  ;;  %v1600_v4 = vsub.f32 %v1520_v41, %v2187_v3 }
0x28eb   :  { %v2189_v5 = vpop.eup %2188 }
0x28ec   :  { %v1601_v7 = vmul.f32 %v2189_v5, %v1600_v4 }
0x28ee   :  { %v1602_v8 = vadd.f32 %v2187_v3, %v1601_v7 }
0x28f0   :  { %v1603_v9 = vsel %vm25_vm0, %v1602_v8, 0.0 }
0x28f1   :  { %1604 = vadd.xlane.f32.xlu1 %v1603_v9 }
0x297e   :  { %v1605_v11 = vpop.xlane.xlu1 %1604 }
0x297f   :  { %v1606_v13 = vmul.f32 0.03125, %v1605_v11 }
0x2981   :  { %v1607_v14 = vsub.f32 %v1602_v8, %v1606_v13 }
0x2983   :  { %v1608_v15 = vmul.f32 %v1607_v14, %v1607_v14 }
0x2985   :  { %v1609_v16 = vsel %vm25_vm0, %v1608_v15, 0.0 }
0x2986   :  { %1610 = vadd.xlane.f32.xlu0 %v1609_v16 }
0x2a13   :  { %v1611_v17 = vpop.xlane.xlu0 %1610 }
0x2a14   :  { %v1612_v18 = vmul.f32 0.03125, %v1611_v17 }
0x2a16   :  { %v1613_v19 = vadd.f32 1e-05, %v1612_v18 }
0x2a18   :  { %2190 = vrsqrt.f32 %v1613_v19 }
0x2a22   :  { %v2191_v20 = vpop.eup %2190 }
0x2a23   :  { %v1615_v21 = vmul.f32 %v2191_v20, %v1607_v14 }
0x2a25   :  { %v1616_v22 = vmul.f32 %v2507_v10, %v1615_v21 }
0x2a27   :  { %v1617_v23 = vadd.f32 %v2513_v12, %v1616_v22 }
0x2a29   :  { %v1618_v24 = vpack.c.bf16 %v1617_v23, %v1617_v23  ;;  %1621 = vst.msk [vmem:[#allocation2] sm:$0xff] %vm25_vm0, %v1617_v23 }
0x2a2b   :  { %1738 = vst.msk [vmem:[%s2647_s5 + $0x3c] sm:$0xf] %vm164_vm2, %v1618_v24 }

</bundles_post_ra>
